<compile_context>
chip_gen: v6e
topology: v6e:2x2x1
jax: 0.10.0
libtpu: 0.0.40
codegen_flags: <defaults>
</compile_context>

<pallas_src>
import numpy as np
import jax
import jax.numpy as jnp
from jax import lax
from jax.experimental import pallas as pl
from jax.experimental.pallas import tpu as pltpu


_GX = ((2.0, 0.0, -2.0), (4.0, 0.0, -4.0), (2.0, 0.0, -2.0))
_GY = ((2.0, 4.0, 2.0), (0.0, 0.0, 0.0), (-2.0, -4.0, -2.0))


# --------------------------- fused Pallas kernel -----------------------------

def _reb_fused_kernel(x_ref, tg_ref, w1_ref, b1_ref, w2_ref, b2_ref,
                      rh_ref, rw_ref, w_in_ref, b_in_ref,
                      wd1_ref, bd1_ref, wd2_ref, bd2_ref,
                      o_ref, rp_ref):
    """Entire REB.forward for one batch element; everything stays in VMEM."""
    HW, C = x_ref.shape[1], x_ref.shape[2]
    Cm = w1_ref.shape[1]
    H, Hs = rh_ref.shape           # resize: (H, Ht-2) one-hot rows
    Ws, W = rw_ref.shape           # resize: (Wt-2, W) one-hot cols
    Ho, Wo = H - 2, W - 2

    xb = x_ref[0]                                                  # (HW, C)

    # ---- conv_bt[0]: 1x1 conv + ReLU (channel matmul on the MXU) ----
    r = jnp.dot(xb, w1_ref[...], preferred_element_type=jnp.float32)
    r = jnp.maximum(r + b1_ref[...], 0.0)                          # (HW, Cm)

    # ---- conv_bt[2]: 3x3 conv, padding=1, + ReLU (pad via VMEM scratch) ----
    rp_ref[...] = jnp.zeros(rp_ref.shape, rp_ref.dtype)
    rp_ref[1:H + 1, 1:W + 1, :] = r.reshape(H, W, Cm)
    # TODO(synk): im2col into a single (HW, 9*Cm) matmul was considered but
    # kept as 9 accumulating MXU dots to avoid unaligned lane concat/stores.
    acc = jnp.zeros((HW, C), jnp.float32)
    for dy in range(3):
        for dx in range(3):
            patch = rp_ref[dy:dy + H, dx:dx + W, :].reshape(HW, Cm)
            acc = acc + jnp.dot(patch, w2_ref[dy, dx],
                                preferred_element_type=jnp.float32)
    r2 = jnp.maximum(acc + b2_ref[...], 0.0)                       # (HW, C)

    # ---- Sobel(TG): fixed 3x3 valid conv, square, sum, sqrt ----
    gx = jnp.zeros((Hs, Ws), jnp.float32)
    gy = jnp.zeros((Hs, Ws), jnp.float32)
    for dy in range(3):
        for dx in range(3):
            tap = tg_ref[0, dy:dy + Hs, dx:dx + Ws]
            if _GX[dy][dx] != 0.0:
                gx = gx + _GX[dy][dx] * tap
            if _GY[dy][dx] != 0.0:
                gy = gy + _GY[dy][dx] * tap
    edge = jnp.sqrt(gx * gx + gy * gy)                             # (Hs, Ws)

    # ---- nearest resize to (H, W) via static one-hot matmuls (exact) ----
    edge_r = jnp.dot(jnp.dot(rh_ref[...], edge,
                             preferred_element_type=jnp.float32),
                     rw_ref[...], preferred_element_type=jnp.float32)  # (H, W)

    # ---- conv_in (3x3 valid, 1->C) + ReLU + global average pool ----
    acc2 = jnp.zeros((Ho, Wo, C), jnp.float32)
    k = 0
    for dy in range(3):
        for dx in range(3):
            tap = edge_r[dy:dy + Ho, dx:dx + Wo]
            acc2 = acc2 + tap[:, :, None] * w_in_ref[k][None, None, :]
            k += 1
    acc2 = jnp.maximum(acc2 + b_in_ref[...], 0.0)
    y = jnp.mean(acc2, axis=(0, 1)).reshape(1, C)                  # (1, C)

    # ---- conv_du gate: sigmoid(FC2(ReLU(FC1(y)))) ----
    h = jnp.dot(y, wd1_ref[...], preferred_element_type=jnp.float32)
    h = jnp.maximum(h + bd1_ref[...], 0.0)
    z = jnp.dot(h, wd2_ref[...], preferred_element_type=jnp.float32) + bd2_ref[...]
    s = 1.0 / (1.0 + jnp.exp(-z))                                  # (1, C)

    # ---- epilogue: out = x + conv_bt(x) * gate (residual fused into store) --
    o_ref[...] = (xb + r2 * s).reshape(1, HW, C)


# ------------------------------ wrapper --------------------------------------

def reb_forward(x_nchw, tg_nchw, params):
    x = jnp.transpose(x_nchw, (0, 2, 3, 1)).astype(jnp.float32)    # NHWC
    tg = tg_nchw[:, 0].astype(jnp.float32)                         # (N, Ht, Wt)
    N, H, W, C = x.shape
    Ht, Wt = tg.shape[1], tg.shape[2]
    Hs, Ws = Ht - 2, Wt - 2
    Cm = params["w1"].shape[1]
    Cr = params["w_d1"].shape[1]

    # Static nearest-neighbour selection matrices (PyTorch F.interpolate
    # 'nearest' floor semantics):  edge_r = RH @ edge @ RW  (exact one-hots).
    hi = (np.arange(H) * Hs) // H
    wi = (np.arange(W) * Ws) // W
    rh = np.zeros((H, Hs), np.float32)
    rh[np.arange(H), hi] = 1.0
    rw = np.zeros((Ws, W), np.float32)
    rw[wi, np.arange(W)] = 1.0

    x_flat = x.reshape(N, H * W, C)

    def rep(ndim):
        return lambda n: (0,) * ndim

    out_flat = pl.pallas_call(
        _reb_fused_kernel,
        out_shape=jax.ShapeDtypeStruct((N, H * W, C), jnp.float32),
        grid=(N,),
        in_specs=[
            pl.BlockSpec((1, H * W, C), lambda n: (n, 0, 0)),      # x
            pl.BlockSpec((1, Ht, Wt), lambda n: (n, 0, 0)),        # TG
            pl.BlockSpec((C, Cm), rep(2)),                         # w1
            pl.BlockSpec((1, Cm), rep(2)),                         # b1
            pl.BlockSpec((3, 3, Cm, C), rep(4)),                   # w2
            pl.BlockSpec((1, C), rep(2)),                          # b2
            pl.BlockSpec((H, Hs), rep(2)),                         # RH (resize)
            pl.BlockSpec((Ws, W), rep(2)),                         # RW (resize)
            pl.BlockSpec((9, C), rep(2)),                          # w_in
            pl.BlockSpec((1, C), rep(2)),                          # b_in
            pl.BlockSpec((C, Cr), rep(2)),                         # w_d1
            pl.BlockSpec((1, Cr), rep(2)),                         # b_d1
            pl.BlockSpec((Cr, C), rep(2)),                         # w_d2
            pl.BlockSpec((1, C), rep(2)),                          # b_d2
        ],
        out_specs=pl.BlockSpec((1, H * W, C), lambda n: (n, 0, 0)),
        scratch_shapes=[pltpu.VMEM((H + 2, W + 2, Cm), jnp.float32)],
        compiler_params=pltpu.CompilerParams(
            dimension_semantics=("parallel",)),
    )(x_flat, tg, params["w1"], params["b1"], params["w2"], params["b2"],
      jnp.asarray(rh), jnp.asarray(rw),
      params["w_in"], params["b_in"],
      params["w_d1"], params["b_d1"], params["w_d2"], params["b_d2"])

    return jnp.transpose(out_flat.reshape(N, H, W, C), (0, 3, 1, 2))   # NCHW


# --------------------------- pure-JAX reference -------------------------------

def reb_reference(x_nchw, tg_nchw, params):
    P = lax.Precision.HIGHEST
    x = jnp.transpose(x_nchw, (0, 2, 3, 1)).astype(jnp.float32)
    tg = tg_nchw[:, 0].astype(jnp.float32)
    N, H, W, C = x.shape
    r = jnp.maximum(
        jnp.einsum("nhwc,cd->nhwd", x, params["w1"], precision=P) + params["b1"], 0.0)
    rp = jnp.pad(r, ((0, 0), (1, 1), (1, 1), (0, 0)))
    r2 = lax.conv_general_dilated(rp, params["w2"], (1, 1), "VALID",
                                  dimension_numbers=("NHWC", "HWIO", "NHWC"),
                                  precision=P)
    r2 = jnp.maximum(r2 + params["b2"], 0.0)
    gxk = jnp.array([[2.0, 0.0, -2.0], [4.0, 0.0, -4.0], [2.0, 0.0, -2.0]])
    gyk = jnp.array([[2.0, 4.0, 2.0], [0.0, 0.0, 0.0], [-2.0, -4.0, -2.0]])
    sob_w = jnp.stack([gxk, gyk], axis=-1)[:, :, None, :]          # (3,3,1,2)
    g = lax.conv_general_dilated(tg[..., None], sob_w, (1, 1), "VALID",
                                 dimension_numbers=("NHWC", "HWIO", "NHWC"),
                                 precision=P)
    edge = jnp.sqrt(jnp.sum(g * g, axis=-1))
    Hs, Ws = edge.shape[1], edge.shape[2]
    hi = (jnp.arange(H) * Hs) // H
    wi = (jnp.arange(W) * Ws) // W
    edge_r = edge[:, hi, :][:, :, wi]
    w_in = params["w_in"].reshape(3, 3, 1, C)
    c = lax.conv_general_dilated(edge_r[..., None], w_in, (1, 1), "VALID",
                                 dimension_numbers=("NHWC", "HWIO", "NHWC"),
                                 precision=P)
    c = jnp.maximum(c + params["b_in"], 0.0)
    y = jnp.mean(c, axis=(1, 2))
    h1 = jnp.maximum(y @ params["w_d1"] + params["b_d1"], 0.0)
    s = jax.nn.sigmoid(h1 @ params["w_d2"] + params["b_d2"])
    out = x + r2 * s[:, None, None, :]
    return jnp.transpose(out, (0, 3, 1, 2))


# --------------------------------- main ---------------------------------------

if __name__ == "__main__":
    key = jax.random.PRNGKey(0)
    kx, ktg, *kp = jax.random.split(key, 12)

    N, C, H, W = 2, 48, 16, 16          # channel=48 -> channel//3=16, //16=3
    Ht, Wt = 20, 20
    Cm, Cr = C // 3, C // 16

    x = jax.random.normal(kx, (N, C, H, W), jnp.float32)
    tg = jax.random.normal(ktg, (N, 1, Ht, Wt), jnp.float32)

    params = {
        "w1":   0.10 * jax.random.normal(kp[0], (C, Cm), jnp.float32),
        "b1":   0.10 * jax.random.normal(kp[1], (1, Cm), jnp.float32),
        "w2":   0.10 * jax.random.normal(kp[2], (3, 3, Cm, C), jnp.float32),
        "b2":   0.10 * jax.random.normal(kp[3], (1, C), jnp.float32),
        "w_in": 0.05 * jax.random.normal(kp[4], (9, C), jnp.float32),
        "b_in": 0.05 * jax.random.normal(kp[5], (1, C), jnp.float32),
        "w_d1": 0.10 * jax.random.normal(kp[6], (C, Cr), jnp.float32),
        "b_d1": 0.10 * jax.random.normal(kp[7], (1, Cr), jnp.float32),
        "w_d2": 0.10 * jax.random.normal(kp[8], (Cr, C), jnp.float32),
        "b_d2": 0.10 * jax.random.normal(kp[9], (1, C), jnp.float32),
    }

    out = jax.block_until_ready(jax.jit(reb_forward)(x, tg, params))
    ref = jax.block_until_ready(reb_reference(x, tg, params))

    assert out.shape == (N, C, H, W)
    np.testing.assert_allclose(np.asarray(out), np.asarray(ref),
                               rtol=2e-2, atol=2e-2)
    print("KERNEL_OK")
</pallas_src>

<mosaic_0001>
module attributes {stable_mosaic.version = 11 : i64} {
  func.func @_reb_fused_kernel(%arg0: i32, %arg1: memref<1x256x48xf32, #tpu.memory_space<vmem>>, %arg2: memref<1x20x20xf32, #tpu.memory_space<vmem>>, %arg3: memref<48x16xf32, #tpu.memory_space<vmem>>, %arg4: memref<1x16xf32, #tpu.memory_space<vmem>>, %arg5: memref<3x3x16x48xf32, #tpu.memory_space<vmem>>, %arg6: memref<1x48xf32, #tpu.memory_space<vmem>>, %arg7: memref<16x18xf32, #tpu.memory_space<vmem>>, %arg8: memref<18x16xf32, #tpu.memory_space<vmem>>, %arg9: memref<9x48xf32, #tpu.memory_space<vmem>>, %arg10: memref<1x48xf32, #tpu.memory_space<vmem>>, %arg11: memref<48x3xf32, #tpu.memory_space<vmem>>, %arg12: memref<1x3xf32, #tpu.memory_space<vmem>>, %arg13: memref<3x48xf32, #tpu.memory_space<vmem>>, %arg14: memref<1x48xf32, #tpu.memory_space<vmem>>, %arg15: memref<1x256x48xf32, #tpu.memory_space<vmem>>, %arg16: memref<18x18x16xf32, #tpu.memory_space<vmem>>) attributes {dimension_semantics = [#tpu.dimension_semantics<parallel>], iteration_bounds = array<i64: 2>, scalar_prefetch = 0 : i64, scratch_operands = 1 : i64, tpu.core_type = #tpu.core_type<tc>, window_params = [{transform_indices = @transform_0, window_bounds = array<i64: 1, 256, 48>}, {transform_indices = @transform_1, window_bounds = array<i64: 1, 20, 20>}, {pipeline_mode = #tpu.pipeline_mode<synchronous>, transform_indices = @transform_2, window_bounds = array<i64: 48, 16>}, {pipeline_mode = #tpu.pipeline_mode<synchronous>, transform_indices = @transform_3, window_bounds = array<i64: 1, 16>}, {pipeline_mode = #tpu.pipeline_mode<synchronous>, transform_indices = @transform_4, window_bounds = array<i64: 3, 3, 16, 48>}, {pipeline_mode = #tpu.pipeline_mode<synchronous>, transform_indices = @transform_5, window_bounds = array<i64: 1, 48>}, {pipeline_mode = #tpu.pipeline_mode<synchronous>, transform_indices = @transform_6, window_bounds = array<i64: 16, 18>}, {pipeline_mode = #tpu.pipeline_mode<synchronous>, transform_indices = @transform_7, window_bounds = array<i64: 18, 16>}, {pipeline_mode = #tpu.pipeline_mode<synchronous>, transform_indices = @transform_8, window_bounds = array<i64: 9, 48>}, {pipeline_mode = #tpu.pipeline_mode<synchronous>, transform_indices = @transform_9, window_bounds = array<i64: 1, 48>}, {pipeline_mode = #tpu.pipeline_mode<synchronous>, transform_indices = @transform_10, window_bounds = array<i64: 48, 3>}, {pipeline_mode = #tpu.pipeline_mode<synchronous>, transform_indices = @transform_11, window_bounds = array<i64: 1, 3>}, {pipeline_mode = #tpu.pipeline_mode<synchronous>, transform_indices = @transform_12, window_bounds = array<i64: 3, 48>}, {pipeline_mode = #tpu.pipeline_mode<synchronous>, transform_indices = @transform_13, window_bounds = array<i64: 1, 48>}, {transform_indices = @transform_14, window_bounds = array<i64: 1, 256, 48>}]} {
    %c0 = arith.constant 0 : index
    %c0_0 = arith.constant 0 : index
    %c0_1 = arith.constant 0 : index
    %0 = vector.load %arg1[%c0, %c0_0, %c0_1] : memref<1x256x48xf32, #tpu.memory_space<vmem>>, vector<1x256x48xf32>
    %1 = vector.shape_cast %0 : vector<1x256x48xf32> to vector<256x48xf32>
    %c0_2 = arith.constant 0 : index
    %c0_3 = arith.constant 0 : index
    %2 = vector.load %arg3[%c0_2, %c0_3] : memref<48x16xf32, #tpu.memory_space<vmem>>, vector<48x16xf32>
    %cst = arith.constant dense<0.000000e+00> : vector<256x16xf32>
    %3 = tpu.matmul %1, %2, %cst {dimension_numbers = #tpu.dot_dimension_numbers<[1], [0], [0], [1], [0, 0, 1, 1], [], []>} : vector<256x48xf32>, vector<48x16xf32>, vector<256x16xf32> -> vector<256x16xf32>
    %c0_4 = arith.constant 0 : index
    %c0_5 = arith.constant 0 : index
    %4 = vector.load %arg4[%c0_4, %c0_5] : memref<1x16xf32, #tpu.memory_space<vmem>>, vector<1x16xf32>
    %5 = vector.broadcast %4 : vector<1x16xf32> to vector<256x16xf32>
    %6 = arith.addf %3, %5 : vector<256x16xf32>
    %cst_6 = arith.constant 0.000000e+00 : f32
    %7 = vector.broadcast %cst_6 : f32 to vector<256x16xf32>
    %8 = arith.maximumf %6, %7 : vector<256x16xf32>
    %cst_7 = arith.constant 0.000000e+00 : f32
    %9 = vector.broadcast %cst_7 : f32 to vector<18x18x16xf32>
    %c0_8 = arith.constant 0 : index
    %c0_9 = arith.constant 0 : index
    %c0_10 = arith.constant 0 : index
    %10 = vector.load %arg16[%c0_8, %c0_9, %c0_10] : memref<18x18x16xf32, #tpu.memory_space<vmem>>, vector<18x18x16xf32>
    tpu.vector_store %arg16[%c0_8, %c0_9, %c0_10], %9 {strides = array<i32>} : memref<18x18x16xf32, #tpu.memory_space<vmem>>, vector<18x18x16xf32>,
    %11 = vector.shape_cast %8 : vector<256x16xf32> to vector<16x16x16xf32>
    %c1 = arith.constant 1 : index
    %c1_11 = arith.constant 1 : index
    %c0_12 = arith.constant 0 : index
    %12 = vector.load %arg16[%c1, %c1_11, %c0_12] : memref<18x18x16xf32, #tpu.memory_space<vmem>>, vector<16x16x16xf32>
    tpu.vector_store %arg16[%c1, %c1_11, %c0_12], %11 {strides = array<i32>} : memref<18x18x16xf32, #tpu.memory_space<vmem>>, vector<16x16x16xf32>,
    %cst_13 = arith.constant 0.000000e+00 : f32
    %13 = vector.broadcast %cst_13 : f32 to vector<256x48xf32>
    %c0_14 = arith.constant 0 : index
    %c0_15 = arith.constant 0 : index
    %c0_16 = arith.constant 0 : index
    %14 = vector.load %arg16[%c0_14, %c0_15, %c0_16] : memref<18x18x16xf32, #tpu.memory_space<vmem>>, vector<16x16x16xf32>
    %15 = vector.shape_cast %14 : vector<16x16x16xf32> to vector<256x16xf32>
    %c0_17 = arith.constant 0 : index
    %c0_18 = arith.constant 0 : index
    %c0_19 = arith.constant 0 : index
    %c0_20 = arith.constant 0 : index
    %16 = vector.load %arg5[%c0_17, %c0_18, %c0_19, %c0_20] : memref<3x3x16x48xf32, #tpu.memory_space<vmem>>, vector<1x1x16x48xf32>
    %17 = vector.shape_cast %16 : vector<1x1x16x48xf32> to vector<16x48xf32>
    %cst_21 = arith.constant dense<0.000000e+00> : vector<256x48xf32>
    %18 = tpu.matmul %15, %17, %cst_21 {dimension_numbers = #tpu.dot_dimension_numbers<[1], [0], [0], [1], [0, 0, 1, 1], [], []>} : vector<256x16xf32>, vector<16x48xf32>, vector<256x48xf32> -> vector<256x48xf32>
    %19 = arith.addf %13, %18 : vector<256x48xf32>
    %c0_22 = arith.constant 0 : index
    %c1_23 = arith.constant 1 : index
    %c0_24 = arith.constant 0 : index
    %20 = vector.load %arg16[%c0_22, %c1_23, %c0_24] : memref<18x18x16xf32, #tpu.memory_space<vmem>>, vector<16x16x16xf32>
    %21 = vector.shape_cast %20 : vector<16x16x16xf32> to vector<256x16xf32>
    %c0_25 = arith.constant 0 : index
    %c1_26 = arith.constant 1 : index
    %c0_27 = arith.constant 0 : index
    %c0_28 = arith.constant 0 : index
    %22 = vector.load %arg5[%c0_25, %c1_26, %c0_27, %c0_28] : memref<3x3x16x48xf32, #tpu.memory_space<vmem>>, vector<1x1x16x48xf32>
    %23 = vector.shape_cast %22 : vector<1x1x16x48xf32> to vector<16x48xf32>
    %cst_29 = arith.constant dense<0.000000e+00> : vector<256x48xf32>
    %24 = tpu.matmul %21, %23, %cst_29 {dimension_numbers = #tpu.dot_dimension_numbers<[1], [0], [0], [1], [0, 0, 1, 1], [], []>} : vector<256x16xf32>, vector<16x48xf32>, vector<256x48xf32> -> vector<256x48xf32>
    %25 = arith.addf %19, %24 : vector<256x48xf32>
    %c0_30 = arith.constant 0 : index
    %c2 = arith.constant 2 : index
    %c0_31 = arith.constant 0 : index
    %26 = vector.load %arg16[%c0_30, %c2, %c0_31] : memref<18x18x16xf32, #tpu.memory_space<vmem>>, vector<16x16x16xf32>
    %27 = vector.shape_cast %26 : vector<16x16x16xf32> to vector<256x16xf32>
    %c0_32 = arith.constant 0 : index
    %c2_33 = arith.constant 2 : index
    %c0_34 = arith.constant 0 : index
    %c0_35 = arith.constant 0 : index
    %28 = vector.load %arg5[%c0_32, %c2_33, %c0_34, %c0_35] : memref<3x3x16x48xf32, #tpu.memory_space<vmem>>, vector<1x1x16x48xf32>
    %29 = vector.shape_cast %28 : vector<1x1x16x48xf32> to vector<16x48xf32>
    %cst_36 = arith.constant dense<0.000000e+00> : vector<256x48xf32>
    %30 = tpu.matmul %27, %29, %cst_36 {dimension_numbers = #tpu.dot_dimension_numbers<[1], [0], [0], [1], [0, 0, 1, 1], [], []>} : vector<256x16xf32>, vector<16x48xf32>, vector<256x48xf32> -> vector<256x48xf32>
    %31 = arith.addf %25, %30 : vector<256x48xf32>
    %c1_37 = arith.constant 1 : index
    %c0_38 = arith.constant 0 : index
    %c0_39 = arith.constant 0 : index
    %32 = vector.load %arg16[%c1_37, %c0_38, %c0_39] : memref<18x18x16xf32, #tpu.memory_space<vmem>>, vector<16x16x16xf32>
    %33 = vector.shape_cast %32 : vector<16x16x16xf32> to vector<256x16xf32>
    %c1_40 = arith.constant 1 : index
    %c0_41 = arith.constant 0 : index
    %c0_42 = arith.constant 0 : index
    %c0_43 = arith.constant 0 : index
    %34 = vector.load %arg5[%c1_40, %c0_41, %c0_42, %c0_43] : memref<3x3x16x48xf32, #tpu.memory_space<vmem>>, vector<1x1x16x48xf32>
    %35 = vector.shape_cast %34 : vector<1x1x16x48xf32> to vector<16x48xf32>
    %cst_44 = arith.constant dense<0.000000e+00> : vector<256x48xf32>
    %36 = tpu.matmul %33, %35, %cst_44 {dimension_numbers = #tpu.dot_dimension_numbers<[1], [0], [0], [1], [0, 0, 1, 1], [], []>} : vector<256x16xf32>, vector<16x48xf32>, vector<256x48xf32> -> vector<256x48xf32>
    %37 = arith.addf %31, %36 : vector<256x48xf32>
    %c1_45 = arith.constant 1 : index
    %c1_46 = arith.constant 1 : index
    %c0_47 = arith.constant 0 : index
    %38 = vector.load %arg16[%c1_45, %c1_46, %c0_47] : memref<18x18x16xf32, #tpu.memory_space<vmem>>, vector<16x16x16xf32>
    %39 = vector.shape_cast %38 : vector<16x16x16xf32> to vector<256x16xf32>
    %c1_48 = arith.constant 1 : index
    %c1_49 = arith.constant 1 : index
    %c0_50 = arith.constant 0 : index
    %c0_51 = arith.constant 0 : index
    %40 = vector.load %arg5[%c1_48, %c1_49, %c0_50, %c0_51] : memref<3x3x16x48xf32, #tpu.memory_space<vmem>>, vector<1x1x16x48xf32>
    %41 = vector.shape_cast %40 : vector<1x1x16x48xf32> to vector<16x48xf32>
    %cst_52 = arith.constant dense<0.000000e+00> : vector<256x48xf32>
    %42 = tpu.matmul %39, %41, %cst_52 {dimension_numbers = #tpu.dot_dimension_numbers<[1], [0], [0], [1], [0, 0, 1, 1], [], []>} : vector<256x16xf32>, vector<16x48xf32>, vector<256x48xf32> -> vector<256x48xf32>
    %43 = arith.addf %37, %42 : vector<256x48xf32>
    %c1_53 = arith.constant 1 : index
    %c2_54 = arith.constant 2 : index
    %c0_55 = arith.constant 0 : index
    %44 = vector.load %arg16[%c1_53, %c2_54, %c0_55] : memref<18x18x16xf32, #tpu.memory_space<vmem>>, vector<16x16x16xf32>
    %45 = vector.shape_cast %44 : vector<16x16x16xf32> to vector<256x16xf32>
    %c1_56 = arith.constant 1 : index
    %c2_57 = arith.constant 2 : index
    %c0_58 = arith.constant 0 : index
    %c0_59 = arith.constant 0 : index
    %46 = vector.load %arg5[%c1_56, %c2_57, %c0_58, %c0_59] : memref<3x3x16x48xf32, #tpu.memory_space<vmem>>, vector<1x1x16x48xf32>
    %47 = vector.shape_cast %46 : vector<1x1x16x48xf32> to vector<16x48xf32>
    %cst_60 = arith.constant dense<0.000000e+00> : vector<256x48xf32>
    %48 = tpu.matmul %45, %47, %cst_60 {dimension_numbers = #tpu.dot_dimension_numbers<[1], [0], [0], [1], [0, 0, 1, 1], [], []>} : vector<256x16xf32>, vector<16x48xf32>, vector<256x48xf32> -> vector<256x48xf32>
    %49 = arith.addf %43, %48 : vector<256x48xf32>
    %c2_61 = arith.constant 2 : index
    %c0_62 = arith.constant 0 : index
    %c0_63 = arith.constant 0 : index
    %50 = vector.load %arg16[%c2_61, %c0_62, %c0_63] : memref<18x18x16xf32, #tpu.memory_space<vmem>>, vector<16x16x16xf32>
    %51 = vector.shape_cast %50 : vector<16x16x16xf32> to vector<256x16xf32>
    %c2_64 = arith.constant 2 : index
    %c0_65 = arith.constant 0 : index
    %c0_66 = arith.constant 0 : index
    %c0_67 = arith.constant 0 : index
    %52 = vector.load %arg5[%c2_64, %c0_65, %c0_66, %c0_67] : memref<3x3x16x48xf32, #tpu.memory_space<vmem>>, vector<1x1x16x48xf32>
    %53 = vector.shape_cast %52 : vector<1x1x16x48xf32> to vector<16x48xf32>
    %cst_68 = arith.constant dense<0.000000e+00> : vector<256x48xf32>
    %54 = tpu.matmul %51, %53, %cst_68 {dimension_numbers = #tpu.dot_dimension_numbers<[1], [0], [0], [1], [0, 0, 1, 1], [], []>} : vector<256x16xf32>, vector<16x48xf32>, vector<256x48xf32> -> vector<256x48xf32>
    %55 = arith.addf %49, %54 : vector<256x48xf32>
    %c2_69 = arith.constant 2 : index
    %c1_70 = arith.constant 1 : index
    %c0_71 = arith.constant 0 : index
    %56 = vector.load %arg16[%c2_69, %c1_70, %c0_71] : memref<18x18x16xf32, #tpu.memory_space<vmem>>, vector<16x16x16xf32>
    %57 = vector.shape_cast %56 : vector<16x16x16xf32> to vector<256x16xf32>
    %c2_72 = arith.constant 2 : index
    %c1_73 = arith.constant 1 : index
    %c0_74 = arith.constant 0 : index
    %c0_75 = arith.constant 0 : index
    %58 = vector.load %arg5[%c2_72, %c1_73, %c0_74, %c0_75] : memref<3x3x16x48xf32, #tpu.memory_space<vmem>>, vector<1x1x16x48xf32>
    %59 = vector.shape_cast %58 : vector<1x1x16x48xf32> to vector<16x48xf32>
    %cst_76 = arith.constant dense<0.000000e+00> : vector<256x48xf32>
    %60 = tpu.matmul %57, %59, %cst_76 {dimension_numbers = #tpu.dot_dimension_numbers<[1], [0], [0], [1], [0, 0, 1, 1], [], []>} : vector<256x16xf32>, vector<16x48xf32>, vector<256x48xf32> -> vector<256x48xf32>
    %61 = arith.addf %55, %60 : vector<256x48xf32>
    %c2_77 = arith.constant 2 : index
    %c2_78 = arith.constant 2 : index
    %c0_79 = arith.constant 0 : index
    %62 = vector.load %arg16[%c2_77, %c2_78, %c0_79] : memref<18x18x16xf32, #tpu.memory_space<vmem>>, vector<16x16x16xf32>
    %63 = vector.shape_cast %62 : vector<16x16x16xf32> to vector<256x16xf32>
    %c2_80 = arith.constant 2 : index
    %c2_81 = arith.constant 2 : index
    %c0_82 = arith.constant 0 : index
    %c0_83 = arith.constant 0 : index
    %64 = vector.load %arg5[%c2_80, %c2_81, %c0_82, %c0_83] : memref<3x3x16x48xf32, #tpu.memory_space<vmem>>, vector<1x1x16x48xf32>
    %65 = vector.shape_cast %64 : vector<1x1x16x48xf32> to vector<16x48xf32>
    %cst_84 = arith.constant dense<0.000000e+00> : vector<256x48xf32>
    %66 = tpu.matmul %63, %65, %cst_84 {dimension_numbers = #tpu.dot_dimension_numbers<[1], [0], [0], [1], [0, 0, 1, 1], [], []>} : vector<256x16xf32>, vector<16x48xf32>, vector<256x48xf32> -> vector<256x48xf32>
    %67 = arith.addf %61, %66 : vector<256x48xf32>
    %c0_85 = arith.constant 0 : index
    %c0_86 = arith.constant 0 : index
    %68 = vector.load %arg6[%c0_85, %c0_86] : memref<1x48xf32, #tpu.memory_space<vmem>>, vector<1x48xf32>
    %69 = vector.broadcast %68 : vector<1x48xf32> to vector<256x48xf32>
    %70 = arith.addf %67, %69 : vector<256x48xf32>
    %cst_87 = arith.constant 0.000000e+00 : f32
    %71 = vector.broadcast %cst_87 : f32 to vector<256x48xf32>
    %72 = arith.maximumf %70, %71 : vector<256x48xf32>
    %cst_88 = arith.constant 0.000000e+00 : f32
    %73 = vector.broadcast %cst_88 : f32 to vector<18x18xf32>
    %cst_89 = arith.constant 0.000000e+00 : f32
    %74 = vector.broadcast %cst_89 : f32 to vector<18x18xf32>
    %c0_90 = arith.constant 0 : index
    %c0_91 = arith.constant 0 : index
    %c0_92 = arith.constant 0 : index
    %75 = vector.load %arg2[%c0_90, %c0_91, %c0_92] : memref<1x20x20xf32, #tpu.memory_space<vmem>>, vector<1x18x18xf32>
    %76 = vector.shape_cast %75 : vector<1x18x18xf32> to vector<18x18xf32>
    %cst_93 = arith.constant 2.000000e+00 : f32
    %77 = vector.broadcast %cst_93 : f32 to vector<18x18xf32>
    %78 = arith.mulf %77, %76 : vector<18x18xf32>
    %79 = arith.addf %73, %78 : vector<18x18xf32>
    %cst_94 = arith.constant 2.000000e+00 : f32
    %80 = vector.broadcast %cst_94 : f32 to vector<18x18xf32>
    %81 = arith.mulf %80, %76 : vector<18x18xf32>
    %82 = arith.addf %74, %81 : vector<18x18xf32>
    %c0_95 = arith.constant 0 : index
    %c0_96 = arith.constant 0 : index
    %c1_97 = arith.constant 1 : index
    %83 = vector.load %arg2[%c0_95, %c0_96, %c1_97] : memref<1x20x20xf32, #tpu.memory_space<vmem>>, vector<1x18x18xf32>
    %84 = vector.shape_cast %83 : vector<1x18x18xf32> to vector<18x18xf32>
    %cst_98 = arith.constant 4.000000e+00 : f32
    %85 = vector.broadcast %cst_98 : f32 to vector<18x18xf32>
    %86 = arith.mulf %85, %84 : vector<18x18xf32>
    %87 = arith.addf %82, %86 : vector<18x18xf32>
    %c0_99 = arith.constant 0 : index
    %c0_100 = arith.constant 0 : index
    %c2_101 = arith.constant 2 : index
    %88 = vector.load %arg2[%c0_99, %c0_100, %c2_101] : memref<1x20x20xf32, #tpu.memory_space<vmem>>, vector<1x18x18xf32>
    %89 = vector.shape_cast %88 : vector<1x18x18xf32> to vector<18x18xf32>
    %cst_102 = arith.constant -2.000000e+00 : f32
    %90 = vector.broadcast %cst_102 : f32 to vector<18x18xf32>
    %91 = arith.mulf %90, %89 : vector<18x18xf32>
    %92 = arith.addf %79, %91 : vector<18x18xf32>
    %cst_103 = arith.constant 2.000000e+00 : f32
    %93 = vector.broadcast %cst_103 : f32 to vector<18x18xf32>
    %94 = arith.mulf %93, %89 : vector<18x18xf32>
    %95 = arith.addf %87, %94 : vector<18x18xf32>
    %c0_104 = arith.constant 0 : index
    %c1_105 = arith.constant 1 : index
    %c0_106 = arith.constant 0 : index
    %96 = vector.load %arg2[%c0_104, %c1_105, %c0_106] : memref<1x20x20xf32, #tpu.memory_space<vmem>>, vector<1x18x18xf32>
    %97 = vector.shape_cast %96 : vector<1x18x18xf32> to vector<18x18xf32>
    %cst_107 = arith.constant 4.000000e+00 : f32
    %98 = vector.broadcast %cst_107 : f32 to vector<18x18xf32>
    %99 = arith.mulf %98, %97 : vector<18x18xf32>
    %100 = arith.addf %92, %99 : vector<18x18xf32>
    %c0_108 = arith.constant 0 : index
    %c1_109 = arith.constant 1 : index
    %c2_110 = arith.constant 2 : index
    %101 = vector.load %arg2[%c0_108, %c1_109, %c2_110] : memref<1x20x20xf32, #tpu.memory_space<vmem>>, vector<1x18x18xf32>
    %102 = vector.shape_cast %101 : vector<1x18x18xf32> to vector<18x18xf32>
    %cst_111 = arith.constant -4.000000e+00 : f32
    %103 = vector.broadcast %cst_111 : f32 to vector<18x18xf32>
    %104 = arith.mulf %103, %102 : vector<18x18xf32>
    %105 = arith.addf %100, %104 : vector<18x18xf32>
    %c0_112 = arith.constant 0 : index
    %c2_113 = arith.constant 2 : index
    %c0_114 = arith.constant 0 : index
    %106 = vector.load %arg2[%c0_112, %c2_113, %c0_114] : memref<1x20x20xf32, #tpu.memory_space<vmem>>, vector<1x18x18xf32>
    %107 = vector.shape_cast %106 : vector<1x18x18xf32> to vector<18x18xf32>
    %cst_115 = arith.constant 2.000000e+00 : f32
    %108 = vector.broadcast %cst_115 : f32 to vector<18x18xf32>
    %109 = arith.mulf %108, %107 : vector<18x18xf32>
    %110 = arith.addf %105, %109 : vector<18x18xf32>
    %cst_116 = arith.constant -2.000000e+00 : f32
    %111 = vector.broadcast %cst_116 : f32 to vector<18x18xf32>
    %112 = arith.mulf %111, %107 : vector<18x18xf32>
    %113 = arith.addf %95, %112 : vector<18x18xf32>
    %c0_117 = arith.constant 0 : index
    %c2_118 = arith.constant 2 : index
    %c1_119 = arith.constant 1 : index
    %114 = vector.load %arg2[%c0_117, %c2_118, %c1_119] : memref<1x20x20xf32, #tpu.memory_space<vmem>>, vector<1x18x18xf32>
    %115 = vector.shape_cast %114 : vector<1x18x18xf32> to vector<18x18xf32>
    %cst_120 = arith.constant -4.000000e+00 : f32
    %116 = vector.broadcast %cst_120 : f32 to vector<18x18xf32>
    %117 = arith.mulf %116, %115 : vector<18x18xf32>
    %118 = arith.addf %113, %117 : vector<18x18xf32>
    %c0_121 = arith.constant 0 : index
    %c2_122 = arith.constant 2 : index
    %c2_123 = arith.constant 2 : index
    %119 = vector.load %arg2[%c0_121, %c2_122, %c2_123] : memref<1x20x20xf32, #tpu.memory_space<vmem>>, vector<1x18x18xf32>
    %120 = vector.shape_cast %119 : vector<1x18x18xf32> to vector<18x18xf32>
    %cst_124 = arith.constant -2.000000e+00 : f32
    %121 = vector.broadcast %cst_124 : f32 to vector<18x18xf32>
    %122 = arith.mulf %121, %120 : vector<18x18xf32>
    %123 = arith.addf %110, %122 : vector<18x18xf32>
    %cst_125 = arith.constant -2.000000e+00 : f32
    %124 = vector.broadcast %cst_125 : f32 to vector<18x18xf32>
    %125 = arith.mulf %124, %120 : vector<18x18xf32>
    %126 = arith.addf %118, %125 : vector<18x18xf32>
    %127 = arith.mulf %123, %123 : vector<18x18xf32>
    %128 = arith.mulf %126, %126 : vector<18x18xf32>
    %129 = arith.addf %127, %128 : vector<18x18xf32>
    %130 = math.sqrt %129 : vector<18x18xf32>
    %c0_126 = arith.constant 0 : index
    %c0_127 = arith.constant 0 : index
    %131 = vector.load %arg7[%c0_126, %c0_127] : memref<16x18xf32, #tpu.memory_space<vmem>>, vector<16x18xf32>
    %cst_128 = arith.constant dense<0.000000e+00> : vector<16x18xf32>
    %132 = tpu.matmul %131, %130, %cst_128 {dimension_numbers = #tpu.dot_dimension_numbers<[1], [0], [0], [1], [0, 0, 1, 1], [], []>} : vector<16x18xf32>, vector<18x18xf32>, vector<16x18xf32> -> vector<16x18xf32>
    %c0_129 = arith.constant 0 : index
    %c0_130 = arith.constant 0 : index
    %133 = vector.load %arg8[%c0_129, %c0_130] : memref<18x16xf32, #tpu.memory_space<vmem>>, vector<18x16xf32>
    %cst_131 = arith.constant dense<0.000000e+00> : vector<16x16xf32>
    %134 = tpu.matmul %132, %133, %cst_131 {dimension_numbers = #tpu.dot_dimension_numbers<[1], [0], [0], [1], [0, 0, 1, 1], [], []>} : vector<16x18xf32>, vector<18x16xf32>, vector<16x16xf32> -> vector<16x16xf32>
    %cst_132 = arith.constant 0.000000e+00 : f32
    %135 = vector.broadcast %cst_132 : f32 to vector<14x14x48xf32>
    %136 = vector.extract_strided_slice %134 {offsets = [0, 0], sizes = [14, 14], strides = [1, 1]} : vector<16x16xf32> to vector<14x14xf32>
    %137 = vector.shape_cast %136 : vector<14x14xf32> to vector<14x14x1xf32>
    %c0_133 = arith.constant 0 : index
    %c0_134 = arith.constant 0 : index
    %138 = vector.load %arg9[%c0_133, %c0_134] : memref<9x48xf32, #tpu.memory_space<vmem>>, vector<1x48xf32>
    %139 = vector.shape_cast %138 : vector<1x48xf32> to vector<48xf32>
    %140 = vector.shape_cast %139 : vector<48xf32> to vector<1x1x48xf32>
    %141 = vector.broadcast %137 : vector<14x14x1xf32> to vector<14x14x48xf32>
    %142 = vector.broadcast %140 : vector<1x1x48xf32> to vector<14x14x48xf32>
    %143 = arith.mulf %141, %142 : vector<14x14x48xf32>
    %144 = arith.addf %135, %143 : vector<14x14x48xf32>
    %145 = vector.extract_strided_slice %134 {offsets = [0, 1], sizes = [14, 14], strides = [1, 1]} : vector<16x16xf32> to vector<14x14xf32>
    %146 = vector.shape_cast %145 : vector<14x14xf32> to vector<14x14x1xf32>
    %c1_135 = arith.constant 1 : index
    %c0_136 = arith.constant 0 : index
    %147 = vector.load %arg9[%c1_135, %c0_136] : memref<9x48xf32, #tpu.memory_space<vmem>>, vector<1x48xf32>
    %148 = vector.shape_cast %147 : vector<1x48xf32> to vector<48xf32>
    %149 = vector.shape_cast %148 : vector<48xf32> to vector<1x1x48xf32>
    %150 = vector.broadcast %146 : vector<14x14x1xf32> to vector<14x14x48xf32>
    %151 = vector.broadcast %149 : vector<1x1x48xf32> to vector<14x14x48xf32>
    %152 = arith.mulf %150, %151 : vector<14x14x48xf32>
    %153 = arith.addf %144, %152 : vector<14x14x48xf32>
    %154 = vector.extract_strided_slice %134 {offsets = [0, 2], sizes = [14, 14], strides = [1, 1]} : vector<16x16xf32> to vector<14x14xf32>
    %155 = vector.shape_cast %154 : vector<14x14xf32> to vector<14x14x1xf32>
    %c2_137 = arith.constant 2 : index
    %c0_138 = arith.constant 0 : index
    %156 = vector.load %arg9[%c2_137, %c0_138] : memref<9x48xf32, #tpu.memory_space<vmem>>, vector<1x48xf32>
    %157 = vector.shape_cast %156 : vector<1x48xf32> to vector<48xf32>
    %158 = vector.shape_cast %157 : vector<48xf32> to vector<1x1x48xf32>
    %159 = vector.broadcast %155 : vector<14x14x1xf32> to vector<14x14x48xf32>
    %160 = vector.broadcast %158 : vector<1x1x48xf32> to vector<14x14x48xf32>
    %161 = arith.mulf %159, %160 : vector<14x14x48xf32>
    %162 = arith.addf %153, %161 : vector<14x14x48xf32>
    %163 = vector.extract_strided_slice %134 {offsets = [1, 0], sizes = [14, 14], strides = [1, 1]} : vector<16x16xf32> to vector<14x14xf32>
    %164 = vector.shape_cast %163 : vector<14x14xf32> to vector<14x14x1xf32>
    %c3 = arith.constant 3 : index
    %c0_139 = arith.constant 0 : index
    %165 = vector.load %arg9[%c3, %c0_139] : memref<9x48xf32, #tpu.memory_space<vmem>>, vector<1x48xf32>
    %166 = vector.shape_cast %165 : vector<1x48xf32> to vector<48xf32>
    %167 = vector.shape_cast %166 : vector<48xf32> to vector<1x1x48xf32>
    %168 = vector.broadcast %164 : vector<14x14x1xf32> to vector<14x14x48xf32>
    %169 = vector.broadcast %167 : vector<1x1x48xf32> to vector<14x14x48xf32>
    %170 = arith.mulf %168, %169 : vector<14x14x48xf32>
    %171 = arith.addf %162, %170 : vector<14x14x48xf32>
    %172 = vector.extract_strided_slice %134 {offsets = [1, 1], sizes = [14, 14], strides = [1, 1]} : vector<16x16xf32> to vector<14x14xf32>
    %173 = vector.shape_cast %172 : vector<14x14xf32> to vector<14x14x1xf32>
    %c4 = arith.constant 4 : index
    %c0_140 = arith.constant 0 : index
    %174 = vector.load %arg9[%c4, %c0_140] : memref<9x48xf32, #tpu.memory_space<vmem>>, vector<1x48xf32>
    %175 = vector.shape_cast %174 : vector<1x48xf32> to vector<48xf32>
    %176 = vector.shape_cast %175 : vector<48xf32> to vector<1x1x48xf32>
    %177 = vector.broadcast %173 : vector<14x14x1xf32> to vector<14x14x48xf32>
    %178 = vector.broadcast %176 : vector<1x1x48xf32> to vector<14x14x48xf32>
    %179 = arith.mulf %177, %178 : vector<14x14x48xf32>
    %180 = arith.addf %171, %179 : vector<14x14x48xf32>
    %181 = vector.extract_strided_slice %134 {offsets = [1, 2], sizes = [14, 14], strides = [1, 1]} : vector<16x16xf32> to vector<14x14xf32>
    %182 = vector.shape_cast %181 : vector<14x14xf32> to vector<14x14x1xf32>
    %c5 = arith.constant 5 : index
    %c0_141 = arith.constant 0 : index
    %183 = vector.load %arg9[%c5, %c0_141] : memref<9x48xf32, #tpu.memory_space<vmem>>, vector<1x48xf32>
    %184 = vector.shape_cast %183 : vector<1x48xf32> to vector<48xf32>
    %185 = vector.shape_cast %184 : vector<48xf32> to vector<1x1x48xf32>
    %186 = vector.broadcast %182 : vector<14x14x1xf32> to vector<14x14x48xf32>
    %187 = vector.broadcast %185 : vector<1x1x48xf32> to vector<14x14x48xf32>
    %188 = arith.mulf %186, %187 : vector<14x14x48xf32>
    %189 = arith.addf %180, %188 : vector<14x14x48xf32>
    %190 = vector.extract_strided_slice %134 {offsets = [2, 0], sizes = [14, 14], strides = [1, 1]} : vector<16x16xf32> to vector<14x14xf32>
    %191 = vector.shape_cast %190 : vector<14x14xf32> to vector<14x14x1xf32>
    %c6 = arith.constant 6 : index
    %c0_142 = arith.constant 0 : index
    %192 = vector.load %arg9[%c6, %c0_142] : memref<9x48xf32, #tpu.memory_space<vmem>>, vector<1x48xf32>
    %193 = vector.shape_cast %192 : vector<1x48xf32> to vector<48xf32>
    %194 = vector.shape_cast %193 : vector<48xf32> to vector<1x1x48xf32>
    %195 = vector.broadcast %191 : vector<14x14x1xf32> to vector<14x14x48xf32>
    %196 = vector.broadcast %194 : vector<1x1x48xf32> to vector<14x14x48xf32>
    %197 = arith.mulf %195, %196 : vector<14x14x48xf32>
    %198 = arith.addf %189, %197 : vector<14x14x48xf32>
    %199 = vector.extract_strided_slice %134 {offsets = [2, 1], sizes = [14, 14], strides = [1, 1]} : vector<16x16xf32> to vector<14x14xf32>
    %200 = vector.shape_cast %199 : vector<14x14xf32> to vector<14x14x1xf32>
    %c7 = arith.constant 7 : index
    %c0_143 = arith.constant 0 : index
    %201 = vector.load %arg9[%c7, %c0_143] : memref<9x48xf32, #tpu.memory_space<vmem>>, vector<1x48xf32>
    %202 = vector.shape_cast %201 : vector<1x48xf32> to vector<48xf32>
    %203 = vector.shape_cast %202 : vector<48xf32> to vector<1x1x48xf32>
    %204 = vector.broadcast %200 : vector<14x14x1xf32> to vector<14x14x48xf32>
    %205 = vector.broadcast %203 : vector<1x1x48xf32> to vector<14x14x48xf32>
    %206 = arith.mulf %204, %205 : vector<14x14x48xf32>
    %207 = arith.addf %198, %206 : vector<14x14x48xf32>
    %208 = vector.extract_strided_slice %134 {offsets = [2, 2], sizes = [14, 14], strides = [1, 1]} : vector<16x16xf32> to vector<14x14xf32>
    %209 = vector.shape_cast %208 : vector<14x14xf32> to vector<14x14x1xf32>
    %c8 = arith.constant 8 : index
    %c0_144 = arith.constant 0 : index
    %210 = vector.load %arg9[%c8, %c0_144] : memref<9x48xf32, #tpu.memory_space<vmem>>, vector<1x48xf32>
    %211 = vector.shape_cast %210 : vector<1x48xf32> to vector<48xf32>
    %212 = vector.shape_cast %211 : vector<48xf32> to vector<1x1x48xf32>
    %213 = vector.broadcast %209 : vector<14x14x1xf32> to vector<14x14x48xf32>
    %214 = vector.broadcast %212 : vector<1x1x48xf32> to vector<14x14x48xf32>
    %215 = arith.mulf %213, %214 : vector<14x14x48xf32>
    %216 = arith.addf %207, %215 : vector<14x14x48xf32>
    %c0_145 = arith.constant 0 : index
    %c0_146 = arith.constant 0 : index
    %217 = vector.load %arg10[%c0_145, %c0_146] : memref<1x48xf32, #tpu.memory_space<vmem>>, vector<1x48xf32>
    %218 = vector.shape_cast %217 : vector<1x48xf32> to vector<1x1x48xf32>
    %219 = vector.broadcast %218 : vector<1x1x48xf32> to vector<14x14x48xf32>
    %220 = arith.addf %216, %219 : vector<14x14x48xf32>
    %cst_147 = arith.constant 0.000000e+00 : f32
    %221 = vector.broadcast %cst_147 : f32 to vector<14x14x48xf32>
    %222 = arith.maximumf %220, %221 : vector<14x14x48xf32>
    %cst_148 = arith.constant dense<0.000000e+00> : vector<48xf32>
    %223 = vector.multi_reduction <add>, %222, %cst_148 [0, 1] : vector<14x14x48xf32> to vector<48xf32>
    %cst_149 = arith.constant 1.960000e+02 : f32
    %224 = vector.broadcast %cst_149 : f32 to vector<48xf32>
    %225 = arith.divf %223, %224 : vector<48xf32>
    %226 = vector.shape_cast %225 : vector<48xf32> to vector<1x48xf32>
    %c0_150 = arith.constant 0 : index
    %c0_151 = arith.constant 0 : index
    %227 = vector.load %arg11[%c0_150, %c0_151] : memref<48x3xf32, #tpu.memory_space<vmem>>, vector<48x3xf32>
    %cst_152 = arith.constant dense<0.000000e+00> : vector<1x3xf32>
    %228 = tpu.matmul %226, %227, %cst_152 {dimension_numbers = #tpu.dot_dimension_numbers<[1], [0], [0], [1], [0, 0, 1, 1], [], []>} : vector<1x48xf32>, vector<48x3xf32>, vector<1x3xf32> -> vector<1x3xf32>
    %c0_153 = arith.constant 0 : index
    %c0_154 = arith.constant 0 : index
    %229 = vector.load %arg12[%c0_153, %c0_154] : memref<1x3xf32, #tpu.memory_space<vmem>>, vector<1x3xf32>
    %230 = arith.addf %228, %229 : vector<1x3xf32>
    %cst_155 = arith.constant 0.000000e+00 : f32
    %231 = vector.broadcast %cst_155 : f32 to vector<1x3xf32>
    %232 = arith.maximumf %230, %231 : vector<1x3xf32>
    %c0_156 = arith.constant 0 : index
    %c0_157 = arith.constant 0 : index
    %233 = vector.load %arg13[%c0_156, %c0_157] : memref<3x48xf32, #tpu.memory_space<vmem>>, vector<3x48xf32>
    %cst_158 = arith.constant dense<0.000000e+00> : vector<1x48xf32>
    %234 = tpu.matmul %232, %233, %cst_158 {dimension_numbers = #tpu.dot_dimension_numbers<[1], [0], [0], [1], [0, 0, 1, 1], [], []>} : vector<1x3xf32>, vector<3x48xf32>, vector<1x48xf32> -> vector<1x48xf32>
    %c0_159 = arith.constant 0 : index
    %c0_160 = arith.constant 0 : index
    %235 = vector.load %arg14[%c0_159, %c0_160] : memref<1x48xf32, #tpu.memory_space<vmem>>, vector<1x48xf32>
    %236 = arith.addf %234, %235 : vector<1x48xf32>
    %cst_161 = arith.constant 0.000000e+00 : f32
    %237 = vector.broadcast %cst_161 : f32 to vector<1x48xf32>
    %238 = arith.subf %237, %236 : vector<1x48xf32>
    %239 = math.exp %238 : vector<1x48xf32>
    %cst_162 = arith.constant 1.000000e+00 : f32
    %240 = vector.broadcast %cst_162 : f32 to vector<1x48xf32>
    %241 = arith.addf %240, %239 : vector<1x48xf32>
    %cst_163 = arith.constant 1.000000e+00 : f32
    %242 = vector.broadcast %cst_163 : f32 to vector<1x48xf32>
    %243 = arith.divf %242, %241 : vector<1x48xf32>
    %244 = vector.broadcast %243 : vector<1x48xf32> to vector<256x48xf32>
    %245 = arith.mulf %72, %244 : vector<256x48xf32>
    %246 = arith.addf %1, %245 : vector<256x48xf32>
    %247 = vector.shape_cast %246 : vector<256x48xf32> to vector<1x256x48xf32>
    %c0_164 = arith.constant 0 : index
    %c0_165 = arith.constant 0 : index
    %c0_166 = arith.constant 0 : index
    %248 = vector.load %arg15[%c0_164, %c0_165, %c0_166] : memref<1x256x48xf32, #tpu.memory_space<vmem>>, vector<1x256x48xf32>
    tpu.vector_store %arg15[%c0_164, %c0_165, %c0_166], %247 {strides = array<i32>} : memref<1x256x48xf32, #tpu.memory_space<vmem>>, vector<1x256x48xf32>,
    return
  }
  func.func @transform_0(%arg0: i32) -> (i32, i32, i32) {
    %c0_i32 = arith.constant 0 : i32
    %c0_i32_0 = arith.constant 0 : i32
    %c0_i32_1 = arith.constant 0 : i32
    return %arg0, %c0_i32, %c0_i32_0 : i32, i32, i32
  }
  func.func @transform_1(%arg0: i32) -> (i32, i32, i32) {
    %c0_i32 = arith.constant 0 : i32
    %c0_i32_0 = arith.constant 0 : i32
    %c0_i32_1 = arith.constant 0 : i32
    return %arg0, %c0_i32, %c0_i32_0 : i32, i32, i32
  }
  func.func @transform_2(%arg0: i32) -> (i32, i32) {
    %c0_i32 = arith.constant 0 : i32
    %c0_i32_0 = arith.constant 0 : i32
    %c0_i32_1 = arith.constant 0 : i32
    return %c0_i32, %c0_i32_0 : i32, i32
  }
  func.func @transform_3(%arg0: i32) -> (i32, i32) {
    %c0_i32 = arith.constant 0 : i32
    %c0_i32_0 = arith.constant 0 : i32
    %c0_i32_1 = arith.constant 0 : i32
    return %c0_i32, %c0_i32_0 : i32, i32
  }
  func.func @transform_4(%arg0: i32) -> (i32, i32, i32, i32) {
    %c0_i32 = arith.constant 0 : i32
    %c0_i32_0 = arith.constant 0 : i32
    %c0_i32_1 = arith.constant 0 : i32
    %c0_i32_2 = arith.constant 0 : i32
    %c0_i32_3 = arith.constant 0 : i32
    return %c0_i32, %c0_i32_0, %c0_i32_1, %c0_i32_2 : i32, i32, i32, i32
  }
  func.func @transform_5(%arg0: i32) -> (i32, i32) {
    %c0_i32 = arith.constant 0 : i32
    %c0_i32_0 = arith.constant 0 : i32
    %c0_i32_1 = arith.constant 0 : i32
    return %c0_i32, %c0_i32_0 : i32, i32
  }
  func.func @transform_6(%arg0: i32) -> (i32, i32) {
    %c0_i32 = arith.constant 0 : i32
    %c0_i32_0 = arith.constant 0 : i32
    %c0_i32_1 = arith.constant 0 : i32
    return %c0_i32, %c0_i32_0 : i32, i32
  }
  func.func @transform_7(%arg0: i32) -> (i32, i32) {
    %c0_i32 = arith.constant 0 : i32
    %c0_i32_0 = arith.constant 0 : i32
    %c0_i32_1 = arith.constant 0 : i32
    return %c0_i32, %c0_i32_0 : i32, i32
  }
  func.func @transform_8(%arg0: i32) -> (i32, i32) {
    %c0_i32 = arith.constant 0 : i32
    %c0_i32_0 = arith.constant 0 : i32
    %c0_i32_1 = arith.constant 0 : i32
    return %c0_i32, %c0_i32_0 : i32, i32
  }
  func.func @transform_9(%arg0: i32) -> (i32, i32) {
    %c0_i32 = arith.constant 0 : i32
    %c0_i32_0 = arith.constant 0 : i32
    %c0_i32_1 = arith.constant 0 : i32
    return %c0_i32, %c0_i32_0 : i32, i32
  }
  func.func @transform_10(%arg0: i32) -> (i32, i32) {
    %c0_i32 = arith.constant 0 : i32
    %c0_i32_0 = arith.constant 0 : i32
    %c0_i32_1 = arith.constant 0 : i32
    return %c0_i32, %c0_i32_0 : i32, i32
  }
  func.func @transform_11(%arg0: i32) -> (i32, i32) {
    %c0_i32 = arith.constant 0 : i32
    %c0_i32_0 = arith.constant 0 : i32
    %c0_i32_1 = arith.constant 0 : i32
    return %c0_i32, %c0_i32_0 : i32, i32
  }
  func.func @transform_12(%arg0: i32) -> (i32, i32) {
    %c0_i32 = arith.constant 0 : i32
    %c0_i32_0 = arith.constant 0 : i32
    %c0_i32_1 = arith.constant 0 : i32
    return %c0_i32, %c0_i32_0 : i32, i32
  }
  func.func @transform_13(%arg0: i32) -> (i32, i32) {
    %c0_i32 = arith.constant 0 : i32
    %c0_i32_0 = arith.constant 0 : i32
    %c0_i32_1 = arith.constant 0 : i32
    return %c0_i32, %c0_i32_0 : i32, i32
  }
  func.func @transform_14(%arg0: i32) -> (i32, i32, i32) {
    %c0_i32 = arith.constant 0 : i32
    %c0_i32_0 = arith.constant 0 : i32
    %c0_i32_1 = arith.constant 0 : i32
    return %arg0, %c0_i32, %c0_i32_0 : i32, i32, i32
  }
}

</mosaic_0001>

<bundles_post_ra>
// kernel: reb_forward.1
= control target key start
LH: loop header
LB: loop body
LE: loop exit
PB: predicated region body
PF: predicated region fallthrough
CT: control target
= control target key end

     0   :  { %s10811_s0 = inlined_call_operand.hbm [shape: f32[2,256,48], index: 0, kind: input, shape index: {}]   ;;  %s10812_s1 = inlined_call_operand.vmem [shape: f32[2,20,20], index: 1, kind: input, shape index: {}]   ;;  %s10813_s2 = inlined_call_operand.vmem [shape: f32[48,16], index: 2, kind: input, shape index: {}]   ;;  %s10814_s3 = inlined_call_operand.vmem [shape: f32[1,16], index: 3, kind: input, shape index: {}]   ;;  %s10815_s4 = inlined_call_operand.vmem [shape: f32[3,3,16,48], index: 4, kind: input, shape index: {}]   ;;  %s10816_s5 = inlined_call_operand.vmem [shape: f32[1,48], index: 5, kind: input, shape index: {}]   ;;  %s10817_s6 = inlined_call_operand.vmem [shape: f32[16,18], index: 6, kind: input, shape index: {}]   ;;  %s10818_s7 = inlined_call_operand.vmem [shape: f32[18,16], index: 7, kind: input, shape index: {}]   ;;  %s10819_s8 = inlined_call_operand.vmem [shape: f32[9,48], index: 8, kind: input, shape index: {}]   ;;  %s10820_s9 = inlined_call_operand.vmem [shape: f32[1,48], index: 9, kind: input, shape index: {}]   ;;  %s10821_s10 = inlined_call_operand.vmem [shape: f32[48,3], index: 10, kind: input, shape index: {}]   ;;  %s10822_s11 = inlined_call_operand.vmem [shape: f32[1,3], index: 11, kind: input, shape index: {}]   ;;  %s10823_s12 = inlined_call_operand.vmem [shape: f32[3,48], index: 12, kind: input, shape index: {}]   ;;  %s10824_s13 = inlined_call_operand.vmem [shape: f32[1,48], index: 13, kind: input, shape index: {}]   ;;  %s10825_s14 = inlined_call_operand.hbm [shape: f32[2,256,48], index: 14, kind: output, shape index: {}]  }
   0x1   :  { %10840 = sst [smem:[#allocation57_spill]] %s10825_s14 }
   0x2   :  { %19 = vsyncpa [#allocation4], 0 }
   0x3   :  { %21 = vsyncpa [#allocation4 + $0x1], 0 }
   0x4   :  { %22 = vsyncpa [#allocation5], 0 }
   0x5   :  { %24 = vsyncpa [#allocation5 + $0x1], 0  ;;  %s7902_s29 = smov 0   ;;  %s7904_s30 = smov 0  }
   0x6   :  { %s7906_s15 = smov 0   ;;  %s7908_s16 = smov 0  }
   0x7 LB: > { %10841 = sst [smem:[#allocation9_spill]] %s7803_s29  ;;  %s7923_s17 = sadd.s32 4294967295, %s7815_s16   ;;  %s7815_s16 = sphi %s7908_s16, %s11020_s16   ;;  %s7811_s15 = sphi %s7906_s15, %s11022_s15   ;;  %s7807_s30 = sphi %s7904_s30, %s11024_s30   ;;  %s7803_s29 = sphi %s7902_s29, %s11023_s29  }
   0x8   : > { %10842 = sst [smem:[#allocation10_spill]] %s7811_s15  ;;  %s6310_s18 = sadd.s32 4294967294, %s7815_s16  }
   0x9   : > { %s7927_s19 = sadd.s32 1, %s7815_s16   ;;  %s37_s20 = sadd.s32 1, %s7811_s15 }
   0xa   : > { %10843 = sst [smem:[#allocation11_spill]] %s7927_s19  ;;  %s34_s21 = ssub.s32 %s7815_s16, %s7927_s19 }
   0xb   : > { %p44_p0 = scmp.ne.s32.totalorder %s7811_s15, %s7807_s30  ;;  %p35_p1 = scmp.eq.s32.totalorder %s34_s21, 0 }
   0xc   : > { %p45_p2 = scmp.eq.s32.totalorder %s7815_s16, 0  ;;  %p50_p3 = scmp.ne.s32.totalorder %s7807_s30, %s7803_s29 }
   0xd   : > { %p51_p4 = scmp.eq.s32.totalorder %s7923_s17, 0  ;;  %p352_p7 = scmp.eq.s32.totalorder %s7923_s17, 1 }
   0xe   : > { %s7939_s22 = scalar_select %p35_p1, %s7811_s15, %s37_s20  }
   0xf   : > { %p7941_p5 = por %p45_p2, %p44_p0  ;;  %p7945_p6 = por %p51_p4, %p50_p3 }
  0x10   : > { %10844 = sst [smem:[#allocation12_spill]] %s7939_s22  ;;  %p358_p8 = scmp.eq.s32.totalorder %s6310_s18, 1 }
  0x11   : > { %s10846_s24 = scalar_select %p7945_p6, 1, 0 }
  0x12   : > { %p7626_p10 = scmp.lt.s32.totalorder %s7815_s16, 2  ;;  %p7952_p11 = por %p352_p7, %p44_p0 }
  0x13   : > { %p7956_p12 = por %p358_p8, %p50_p3  ;;  %s414_s27 = sand.u32 1, %s7811_s15  }
  0x14   : > { %s10847_s25 = scalar_select %p7952_p11, 1, 0 }
  0x15   : > { %s10849_s26 = scalar_select %p7956_p12, 1, 0 }
  0x16   : > { %10848 = sst [smem:[#allocation13_spill]] %s10847_s25  ;;  %s6682_s28 = sshll.u32 %s7815_s16, 12 }
  0x17   : > { %10850 = sst [smem:[#allocation14_spill]] %s10849_s26  ;;  %s6313_s20 = sshll.u32 %s414_s27, 8 }
  0x18   : > { %s7965_s19 = scalar_lea.hbm %s10811_s0, %s6682_s28  ;;  %s418_s18 = scalar_lea.vmem [#allocation3], %s6313_s20 }
  0x19   : > { %s425_s29 = sshll.u32 %s418_s18, 4  ;;  %p7969_p13 = pnand %p7626_p10, %p7941_p5  ;;  %s7973_s29 = int_to_ptr.vmem [resolvable:$true] %s425_s29 }
  0x1a   : > { %s7975_s15 = scalar_lea.sflag [#allocation4], %s414_s27  ;;  %s7723_s26 = scalar_lea.hbm %s7965_s19, 4096 }
  0x1b   : > { %p7724_p0 = scmp.ne.s32.totalorder %s7965_s19, %s7723_s26  ;;  %p7725_p1 = pneg %p7969_p13 }
  0x1c   : > { %s7728_s20 = scalar_lea.hbm %s10811_s0, 8192  ;;  %p7729_p4 = scmp.lt.s32.totalorder %s7965_s19, %s10811_s0 }
  0x1d   : > { %p7726_p2 = pnand %p7725_p1, %p7724_p0  ;;  %p7730_p5 = scmp.lt.s32.totalorder %s7728_s20, %s7723_s26 }
  0x1f   : > { %p7727_p3 = pneg %p7726_p2  ;;  %p7731_p7 = por %p7730_p5, %p7729_p4 }
  0x21   : > { %p7732_p8 = pnand %p7731_p7, %p7727_p3 }
  0x23   : > { %7735 = shalt.err (!%p7732_p8)
}
  0x24   : > { %s7736_s27 = scalar_lea.vmem %s7973_s29, 4096  ;;  %s7817_s18 = smov [#allocation3]  }
  0x25   : > { %p7737_p10 = scmp.ne.s32.totalorder %s7973_s29, %s7736_s27  ;;  %s7741_s14 = sshll.u32 %s7817_s18, 4  ;;  %s7742_s14 = int_to_ptr.vmem [resolvable:$false] %s7741_s14 }
  0x26   : > { %s7743_s22 = scalar_lea.vmem %s7742_s14, 8192  ;;  %p7744_p2 = scmp.lt.s32.totalorder %s7973_s29, %s7742_s14 }
  0x27   : > { %p7739_p9 = pnand %p7737_p10, %p7725_p1  ;;  %p7745_p12 = scmp.lt.s32.totalorder %s7743_s22, %s7736_s27 }
  0x29   : > { %p7740_p0 = pneg %p7739_p9  ;;  %p7746_p11 = por %p7745_p12, %p7744_p2 }
  0x2b   : > { %p7747_p6 = pnand %p7746_p11, %p7740_p0 }
  0x2d   : > { %7750 = shalt.err (!%p7747_p6)
}
  0x2e   : > { %s7818_s26 = smov 128   ;;  %s7819_s28 = smov 8  }
  0x2f   : > { %7621 = dma.hbm_to_vmem [thread:$0]  (!%p7969_p13), %s7965_s19, 4096, %s7973_s29, %s7975_s15, %s7818_s26, %s7818_s26, %s7819_s28  }
  0x30   : > { %p6316_p9 = scmp.ge.s32.totalorder %s7815_s16, 1  ;;  %p441_p1 = scmp.lt.s32.totalorder %s7815_s16, 3 }
  0x32   : > { %p442_p3 = pnand %p6316_p9, %p441_p1 }
  0x34   : > { %445 = sbr.rel (%p442_p3) target bundleno = 1789 (0x6fd), region = 76 }
  0x39   : > { %s7999_s14 = sand.u32 1, %s7807_s30   ;;  %p10852_p6 = scmp.ne.s32.totalorder %s10846_s24, 0 }
  0x3a   : > { %s6317_s20 = sshll.u32 %s7999_s14, 8  ;;  %s448_s23 = scalar_lea.sflag [#allocation4], %s7999_s14 }
  0x3b   : > { %s8005_s21 = scalar_lea.vmem [#allocation3], %s6317_s20 }
  0x3c   : > { %7794 = dma.done.wait (%p10852_p6), %s448_s23, 4096  }
  0x3d   : > { %7796 = vsyncadd (%p10852_p6), %s448_s23, 4294963200  ;;  %v543_v0 = vld [vmem:[%s10813_s2 + $0x28] sm:$0xff]  ;;  %v542_v1 = vld [vmem:[%s10813_s2 + $0x20] sm:$0xff]  ;;  %vm551_vm0 = vcmask 392192   ;;  %vm905_vm1 = vcmask 130048   ;;  %vm908_vm2 = vcmask 123904  }
  0x3e   : > { %7047 = vmatprep.subr.mxu0 %v543_v0  ;;  %v541_v2 = vld [vmem:[%s10813_s2 + $0x18] sm:$0xff]  ;;  %v506_v3 = vld [vmem:[%s8005_s21] sm:$0xff]  ;;  %v539_v5 = vld [vmem:[%s10813_s2 + $0x8] sm:$0xff]  ;;  %v10836_v38 = vmov 0.0   ;;  %p501_p11 = scmp.lt.s32.totalorder %s7923_s17, 1  ;;  %s7821_s28 = smov 127  }
  0x3f   : > { %7048 = vmatpush3.msra.mxu0 %v543_v0  ;;  %7059 = vmatprep.mubr.msk.f32.mxu0 %vm551_vm0, %v506_v3  ;;  %v540_v4 = vld [vmem:[%s10813_s2 + $0x10] sm:$0xff]  ;;  %v538_v6 = vld [vmem:[%s10813_s2] sm:$0xff]  ;;  %v507_v7 = vld [vmem:[%s8005_s21 + $0x8] sm:$0xff]  ;;  %911 = vst.msk [vmem:[#allocation2 + $0x20] sm:$0xff] %vm905_vm1, %v10836_v38  ;;  %vm4670_vm5 = vcmask 1041408   ;;  %vm4663_vm10 = vcmask 146432  }
  0x40   : > { %7049 = vmatprep.subr.mxu0 %v542_v1  ;;  %v508_v8 = vld [vmem:[%s8005_s21 + $0x10] sm:$0xff]  ;;  %v509_v9 = vld [vmem:[%s8005_s21 + $0x18] sm:$0xff]  ;;  %v510_v10 = vld [vmem:[%s8005_s21 + $0x20] sm:$0xff]  ;;  %906 = vst.msk [vmem:[#allocation2] sm:$0xff] %vm905_vm1, %v10836_v38  ;;  %s502_s19 = scalar_select %p501_p11, %s7923_s17, 1  ;;  %vm7823_vm11 = vmmov 0  }
  0x41   : > { %7050 = vmatpush3.msra.mxu0 %v542_v1  ;;  %v511_v11 = vld [vmem:[%s8005_s21 + $0x28] sm:$0xff]  ;;  %v512_v12 = vld [vmem:[%s8005_s21 + $0x30] sm:$0xff]  ;;  %v513_v13 = vld [vmem:[%s8005_s21 + $0x38] sm:$0xff]  ;;  %907 = vst.msk [vmem:[#allocation2 + $0x8] sm:$0xff] %vm905_vm1, %v10836_v38  ;;  %vm5881_vm12 = vcmask 390144   ;;  %vm6031_vm13 = vcmask 1042432  }
  0x42   : > { %7051 = vmatprep.subr.mxu0 %v541_v2  ;;  %v514_v14 = vld [vmem:[%s8005_s21 + $0x40] sm:$0xff]  ;;  %v515_v15 = vld [vmem:[%s8005_s21 + $0x48] sm:$0xff]  ;;  %v516_v16 = vld [vmem:[%s8005_s21 + $0x50] sm:$0xff]  ;;  %910 = vst.msk [vmem:[#allocation2 + $0x18] sm:$0xff] %vm905_vm1, %v10836_v38  ;;  %s7613_s25 = smul.u32 24, %s502_s19  ;;  %vm6027_vm14 = vcmask 23552  }
  0x43   : > { %7052 = vmatpush3.msra.mxu0 %v541_v2  ;;  %v517_v17 = vld [vmem:[%s8005_s21 + $0x58] sm:$0xff]  ;;  %v518_v18 = vld [vmem:[%s8005_s21 + $0x60] sm:$0xff]  ;;  %v519_v19 = vld [vmem:[%s8005_s21 + $0x68] sm:$0xff]  ;;  %913 = vst.msk [vmem:[#allocation2 + $0x30] sm:$0xff] %vm905_vm1, %v10836_v38  ;;  %s10658_s18 = scalar_lea.vmem [#allocation6], %s6317_s20  ;;  %s6683_s20 = sshll.u32 %s7923_s17, 12 }
  0x44   : > { %7053 = vmatprep.subr.mxu0 %v540_v4  ;;  %v520_v20 = vld [vmem:[%s8005_s21 + $0x70] sm:$0xff]  ;;  %v521_v21 = vld [vmem:[%s8005_s21 + $0x78] sm:$0xff]  ;;  %v522_v22 = vld [vmem:[%s8005_s21 + $0x80] sm:$0xff]  ;;  %914 = vst.msk [vmem:[#allocation2 + $0x38] sm:$0xff] %vm905_vm1, %v10836_v38  ;;  %s8228_s24 = scalar_lea.vmem %s10812_s1, %s7613_s25  ;;  %s7822_s25 = smov 126  }
  0x45   : > { %7054 = vmatpush3.msra.mxu0 %v540_v4  ;;  %v523_v23 = vld [vmem:[%s8005_s21 + $0x88] sm:$0xff]  ;;  %v524_v24 = vld [vmem:[%s8005_s21 + $0x90] sm:$0xff]  ;;  %v525_v25 = vld [vmem:[%s8005_s21 + $0x98] sm:$0xff]  ;;  %916 = vst.msk [vmem:[#allocation2 + $0x48] sm:$0xff] %vm905_vm1, %v10836_v38  ;;  %s6225_s22 = sshll.u32 %s10658_s18, 4  ;;  %s11013_s23 = sld [smem:[#allocation57_spill]]  ;;  %s10736_s22 = int_to_ptr.vmem [resolvable:$true] %s6225_s22 }
  0x46   : > { %7055 = vmatprep.subr.mxu0 %v539_v5  ;;  %v526_v26 = vld [vmem:[%s8005_s21 + $0xa0] sm:$0xff]  ;;  %v527_v27 = vld [vmem:[%s8005_s21 + $0xa8] sm:$0xff]  ;;  %v528_v28 = vld [vmem:[%s8005_s21 + $0xb0] sm:$0xff]  ;;  %917 = vst.msk [vmem:[#allocation2 + $0x50] sm:$0xff] %vm905_vm1, %v10836_v38  ;;  %s11014_s17 = sld [smem:[#allocation13_spill]]  ;;  %s7751_s15 = scalar_lea.vmem %s10736_s22, 4096 }
  0x47   : > { %7056 = vmatpush3.msra.mxu0 %v539_v5  ;;  %v529_v29 = vld [vmem:[%s8005_s21 + $0xb8] sm:$0xff]  ;;  %v530_v30 = vld [vmem:[%s8005_s21 + $0xc0] sm:$0xff]  ;;  %v531_v31 = vld [vmem:[%s8005_s21 + $0xc8] sm:$0xff]  ;;  %919 = vst.msk [vmem:[#allocation2 + $0x60] sm:$0xff] %vm905_vm1, %v10836_v38  ;;  %p7752_p12 = scmp.ne.s32.totalorder %s10736_s22, %s7751_s15  ;;  %s7824_s19 = smov [#allocation6]  }
  0x48   : > { %7057 = vmatprep.subr.mxu0 %v538_v6  ;;  %v532_v32 = vld [vmem:[%s8005_s21 + $0xd0] sm:$0xff]  ;;  %v533_v33 = vld [vmem:[%s8005_s21 + $0xd8] sm:$0xff]  ;;  %v534_v34 = vld [vmem:[%s8005_s21 + $0xe0] sm:$0xff]  ;;  %920 = vst.msk [vmem:[#allocation2 + $0x68] sm:$0xff] %vm905_vm1, %v10836_v38 }
  0x49   : > { %7058 = vmatpush3.msra.mxu0 %v538_v6  ;;  %v535_v35 = vld [vmem:[%s8005_s21 + $0xe8] sm:$0xff]  ;;  %v536_v36 = vld [vmem:[%s8005_s21 + $0xf0] sm:$0xff]  ;;  %v537_v37 = vld [vmem:[%s8005_s21 + $0xf8] sm:$0xff]  ;;  %922 = vst.msk [vmem:[#allocation2 + $0x78] sm:$0xff] %vm905_vm1, %v10836_v38 }
  0x4a   : > { %7060 = vmatmul.mubr.msk.f32.vlgmr.msra.gmra.mxu0 %vm551_vm0, %v507_v7  ;;  %923 = vst.msk [vmem:[#allocation2 + $0x80] sm:$0xff] %vm905_vm1, %v10836_v38  ;;  %925 = vst.msk [vmem:[#allocation2 + $0x90] sm:$0xff] %vm905_vm1, %v10836_v38  ;;  %v6354_v39 = vld [vmem:[%s10815_s4 + $0x18] sm:$0xff]  ;;  %v6353_v40 = vld [vmem:[%s10815_s4 + $0x10] sm:$0xff] }
  0x4b   : > { %7062 = vmatprep.mubr.msk.f32.mxu0 %vm551_vm0, %v508_v8  ;;  %926 = vst.msk [vmem:[#allocation2 + $0x98] sm:$0xff] %vm905_vm1, %v10836_v38  ;;  %928 = vst.msk [vmem:[#allocation2 + $0xa8] sm:$0xff] %vm905_vm1, %v10836_v38  ;;  %7107 = vmatprep.subr.mxu1 %v6354_v39  ;;  %v6420_v41 = vld [vmem:[%s10815_s4 + $0x28] sm:$0xff]  ;;  %v6419_v44 = vld [vmem:[%s10815_s4 + $0x20] sm:$0xff]  ;;  %s10732_s29 = scalar_lea.hbm %s11013_s23, %s6683_s20 }
  0x4c   : > { %929 = vst.msk [vmem:[#allocation2 + $0xb0] sm:$0xff] %vm905_vm1, %v10836_v38  ;;  %931 = vst.msk [vmem:[#allocation2 + $0xc0] sm:$0xff] %vm905_vm1, %v10836_v38  ;;  %7108 = vmatpush3.msra.mxu1 %v6354_v39  ;;  %7211 = vmatprep.subr.mxu0 %v6420_v41  ;;  %v1028_v42 = vld [vmem:[#allocation2 + $0x1] sm:$0xff]  ;;  %v4495_v49 = vld [vmem:[%s8228_s24 + $0x10] sm:$0x3]  ;;  %p11015_p13 = scmp.ne.s32.totalorder %s11014_s17, 0 }
  0x4d   : > { %932 = vst.msk [vmem:[#allocation2 + $0xc8] sm:$0xff] %vm905_vm1, %v10836_v38  ;;  %934 = vst.msk [vmem:[#allocation2 + $0xd8] sm:$0xff] %vm905_vm1, %v10836_v38  ;;  %7109 = vmatprep.subr.mxu1 %v6353_v40  ;;  %7111 = vmatprep.mubr.msk.f32.mxu1 %vm905_vm1, %v1028_v42  ;;  %v1705_v45 = vld [vmem:[#allocation2 + $0x2] sm:$0xff]  ;;  %v4504_v51 = vmul.f32 4.0, %v4495_v49  ;;  %v4522_v54 = vmul.f32 -2.0, %v4495_v49  ;;  %v8243_v57 = vld [vmem:[%s10815_s4 + $0x38] sm:$0xff] }
  0x4e   : > { %7063 = vmatmul.mubr.msk.f32.gmra.mxu0 %vm551_vm0, %v509_v9  ;;  %935 = vst.msk [vmem:[#allocation2 + $0xe0] sm:$0xff] %vm905_vm1, %v10836_v38  ;;  %937 = vst.msk [vmem:[#allocation2 + $0xf0] sm:$0xff] %vm905_vm1, %v10836_v38  ;;  %7110 = vmatpush3.msra.mxu1 %v6353_v40  ;;  %v1027_v47 = vld [vmem:[%s10815_s4 + $0x8] sm:$0xff]  ;;  %v1026_v48 = vld [vmem:[%s10815_s4] sm:$0xff]  ;;  %v8247_v58 = vmul.f32 2.0, %v4495_v49  ;;  %p7753_p4 = pnand %p7752_p12, %p11015_p13 }
  0x4f   : > { %7065 = vmatprep.mubr.msk.f32.mxu0 %vm551_vm0, %v510_v10  ;;  %938 = vst.msk [vmem:[#allocation2 + $0xf8] sm:$0xff] %vm905_vm1, %v10836_v38  ;;  %940 = vst.msk [vmem:[#allocation2 + $0x108] sm:$0xff] %vm905_vm1, %v10836_v38  ;;  %7212 = vmatpush3.msra.mxu0 %v6420_v41  ;;  %v4494_v50 = vld [vmem:[%s8228_s24 + $0x8] sm:$0xff]  ;;  %v6487_v56 = vld [vmem:[%s10815_s4 + $0x40] sm:$0xff] }
  0x50   : > { %941 = vst.msk [vmem:[#allocation2 + $0x110] sm:$0xff] %vm905_vm1, %v10836_v38  ;;  %943 = vst.msk [vmem:[#allocation2 + $0x120] sm:$0xff] %vm905_vm1, %v10836_v38  ;;  %7213 = vmatprep.subr.mxu0 %v6419_v44  ;;  %7159 = vmatprep.subr.mxu1 %v1027_v47  ;;  %v4503_v52 = vmul.f32 4.0, %v4494_v50  ;;  %v6488_v53 = vld [vmem:[%s10815_s4 + $0x48] sm:$0xff]  ;;  %v4521_v55 = vmul.f32 -2.0, %v4494_v50  ;;  %v4493_v59 = vld [vmem:[%s8228_s24] sm:$0xff]  ;;  %p7754_p5 = pneg %p7753_p4 }
  0x51   : > { %944 = vst.msk [vmem:[#allocation2 + $0x128] sm:$0xff] %vm905_vm1, %v10836_v38  ;;  %946 = vst.msk [vmem:[#allocation2 + $0x138] sm:$0xff] %vm905_vm1, %v10836_v38  ;;  %7214 = vmatpush3.msra.mxu0 %v6419_v44  ;;  %4512 = vrot.lane.b32.xlu0 %v4504_v51, %s7821_s28  ;;  %v4502_v60 = vmul.f32 4.0, %v4493_v59  ;;  %v4520_v61 = vmul.f32 -2.0, %v4493_v59  ;;  %v8254_v62 = vmul.f32 2.0, %v4494_v50  ;;  %v8263_v1 = vmul.f32 2.0, %v4493_v59 }
  0x52   : > { %7066 = vmatmul.mubr.msk.f32.gmra.mxu0 %vm551_vm0, %v511_v11  ;;  %947 = vst.msk [vmem:[#allocation2 + $0x140] sm:$0xff] %vm905_vm1, %v10836_v38  ;;  %949 = vst.msk [vmem:[#allocation2 + $0x150] sm:$0xff] %vm905_vm1, %v10836_v38  ;;  %7315 = vmatprep.subr.mxu0 %v6488_v53  ;;  %v8257_v63 = vld [vmem:[%s8228_s24 + $0x11] sm:$0x3]  ;;  %v4554_v2 = vld [vmem:[%s8228_s24 + $0x9] sm:$0xff] }
  0x53   : > { %7068 = vmatprep.mubr.msk.f32.mxu0 %vm551_vm0, %v512_v12  ;;  %950 = vst.msk [vmem:[#allocation2 + $0x158] sm:$0xff] %vm905_vm1, %v10836_v38  ;;  %952 = vst.msk [vmem:[#allocation2 + $0x168] sm:$0xff] %vm905_vm1, %v10836_v38  ;;  %4510 = vrot.lane.b32.xlu1 %v4503_v52, %s7821_s28  ;;  %v4564_v0 = vmul.f32 -4.0, %v8257_v63  ;;  %v4563_v3 = vmul.f32 -4.0, %v4554_v2  ;;  %v8270_v4 = vld [vmem:[%s8228_s24 + $0x12] sm:$0x3] }
  0x54   : > { %953 = vst.msk [vmem:[#allocation2 + $0x170] sm:$0xff] %vm905_vm1, %v10836_v38  ;;  %955 = vst.msk [vmem:[#allocation2 + $0x180] sm:$0xff] %vm905_vm1, %v10836_v38  ;;  %v4553_v5 = vld [vmem:[%s8228_s24 + $0x1] sm:$0xff]  ;;  %v4597_v6 = vmul.f32 -4.0, %v8270_v4  ;;  %v4581_v8 = vld [vmem:[%s8228_s24 + $0xa] sm:$0xff]  ;;  %v8279_v10 = vmul.f32 -2.0, %v8270_v4 }
  0x55   : > { %956 = vst.msk [vmem:[#allocation2 + $0x188] sm:$0xff] %vm905_vm1, %v10836_v38  ;;  %958 = vst.msk [vmem:[#allocation2 + $0x198] sm:$0xff] %vm905_vm1, %v10836_v38  ;;  %4530 = vrot.lane.b32.xlu0 %v4522_v54, %s7822_s25  ;;  %v4562_v7 = vmul.f32 -4.0, %v4553_v5  ;;  %v4596_v9 = vmul.f32 -4.0, %v4581_v8  ;;  %v4580_v11 = vld [vmem:[%s8228_s24 + $0x2] sm:$0xff] }
  0x56   : > { %7069 = vmatmul.mubr.msk.f32.gmra.mxu0 %vm551_vm0, %v513_v13  ;;  %959 = vst.msk [vmem:[#allocation2 + $0x1a0] sm:$0xff] %vm905_vm1, %v10836_v38  ;;  %v4595_v12 = vmul.f32 -4.0, %v4580_v11  ;;  %v8285_v13 = vmul.f32 -2.0, %v4581_v8 }
  0x57   : > { %7071 = vmatprep.mubr.msk.f32.mxu0 %vm551_vm0, %v514_v14  ;;  %912 = vst.msk [vmem:[#allocation2 + $0x28] sm:$0x3] %vm908_vm2, %v10836_v38  ;;  %909 = vst.msk [vmem:[#allocation2 + $0x10] sm:$0x3] %vm908_vm2, %v10836_v38  ;;  %4528 = vrot.lane.b32.xlu1 %v4521_v55, %s7822_s25  ;;  %v8288_v14 = vmul.f32 -2.0, %v4580_v11 }
  0x58   : > { %915 = vst.msk [vmem:[#allocation2 + $0x40] sm:$0x3] %vm908_vm2, %v10836_v38  ;;  %918 = vst.msk [vmem:[#allocation2 + $0x58] sm:$0x3] %vm908_vm2, %v10836_v38 }
  0x59   : > { %921 = vst.msk [vmem:[#allocation2 + $0x70] sm:$0x3] %vm908_vm2, %v10836_v38  ;;  %924 = vst.msk [vmem:[#allocation2 + $0x88] sm:$0x3] %vm908_vm2, %v10836_v38  ;;  %4545 = vrot.lane.b32.xlu0 %v8247_v58, %s7822_s25 }
  0x5a   : > { %7072 = vmatmul.mubr.msk.f32.gmra.mxu0 %vm551_vm0, %v515_v15  ;;  %927 = vst.msk [vmem:[#allocation2 + $0xa0] sm:$0x3] %vm908_vm2, %v10836_v38  ;;  %930 = vst.msk [vmem:[#allocation2 + $0xb8] sm:$0x3] %vm908_vm2, %v10836_v38  ;;  %v8297_v15 = vld [vmem:[%s10814_s3] ss:$0 sm:$0xff] }
  0x5b   : > { %7074 = vmatprep.mubr.msk.f32.mxu0 %vm551_vm0, %v516_v16  ;;  %933 = vst.msk [vmem:[#allocation2 + $0xd0] sm:$0x3] %vm908_vm2, %v10836_v38  ;;  %936 = vst.msk [vmem:[#allocation2 + $0xe8] sm:$0x3] %vm908_vm2, %v10836_v38  ;;  %4508 = vrot.lane.b32.xlu1 %v4502_v60, %s7821_s28 }
  0x5c   : > { %939 = vst.msk [vmem:[#allocation2 + $0x100] sm:$0x3] %vm908_vm2, %v10836_v38  ;;  %942 = vst.msk [vmem:[#allocation2 + $0x118] sm:$0x3] %vm908_vm2, %v10836_v38 }
  0x5d   : > { %945 = vst.msk [vmem:[#allocation2 + $0x130] sm:$0x3] %vm908_vm2, %v10836_v38  ;;  %948 = vst.msk [vmem:[#allocation2 + $0x148] sm:$0x3] %vm908_vm2, %v10836_v38  ;;  %4526 = vrot.lane.b32.xlu0 %v4520_v61, %s7822_s25 }
  0x5e   : > { %7075 = vmatmul.mubr.msk.f32.gmra.mxu0 %vm551_vm0, %v517_v17  ;;  %951 = vst.msk [vmem:[#allocation2 + $0x160] sm:$0x3] %vm908_vm2, %v10836_v38  ;;  %954 = vst.msk [vmem:[#allocation2 + $0x178] sm:$0x3] %vm908_vm2, %v10836_v38  ;;  %v1029_v43 = vld [vmem:[#allocation2 + $0x9] sm:$0xff] }
  0x5f   : > { %7077 = vmatprep.mubr.msk.f32.mxu0 %vm551_vm0, %v518_v18  ;;  %957 = vst.msk [vmem:[#allocation2 + $0x190] sm:$0x3] %vm908_vm2, %v10836_v38  ;;  %960 = vst.msk [vmem:[#allocation2 + $0x1a8] sm:$0x3] %vm908_vm2, %v10836_v38  ;;  %7112 = vmatmul.mubr.msk.f32.vlgmr.msra.gmra.mxu1 %vm905_vm1, %v1029_v43  ;;  %v1706_v46 = vld [vmem:[#allocation2 + $0xa] sm:$0xff] }
  0x60   : > { %7160 = vmatpush3.msra.mxu1 %v1027_v47  ;;  %4543 = vrot.lane.b32.xlu1 %v8254_v62, %s7822_s25 }
  0x61   : > { %7161 = vmatprep.subr.mxu1 %v1026_v48  ;;  %4572 = vrot.lane.b32.xlu0 %v4564_v0, %s7822_s25 }
  0x62   : > { %7078 = vmatmul.mubr.msk.f32.gmra.mxu0 %vm551_vm0, %v519_v19  ;;  %7162 = vmatpush3.msra.mxu1 %v1026_v48 }
  0x63   : > { %7080 = vmatprep.mubr.msk.f32.mxu0 %vm551_vm0, %v520_v20  ;;  %7263 = vmatprep.subr.mxu1 %v8243_v57 }
  0x64   : > { %4541 = vrot.lane.b32.xlu1 %v8263_v1, %s7822_s25 }
  0x65   : > { %4570 = vrot.lane.b32.xlu0 %v4563_v3, %s7822_s25 }
  0x66   : > { %7081 = vmatmul.mubr.msk.f32.gmra.mxu0 %vm551_vm0, %v521_v21 }
  0x67   : > { %7083 = vmatprep.mubr.msk.f32.mxu0 %vm551_vm0, %v522_v22 }
  0x68   : > { %4605 = vrot.lane.b32.xlu1 %v4597_v6, %s7821_s28 }
  0x69   : > { %4568 = vrot.lane.b32.xlu0 %v4562_v7, %s7822_s25 }
  0x6a   : > { %7084 = vmatmul.mubr.msk.f32.gmra.mxu0 %vm551_vm0, %v523_v23 }
  0x6b   : > { %7086 = vmatprep.mubr.msk.f32.mxu0 %vm551_vm0, %v524_v24 }
  0x6c   : > { %4603 = vrot.lane.b32.xlu1 %v4596_v9, %s7821_s28 }
  0x6d   : > { %4620 = vrot.lane.b32.xlu0 %v8279_v10, %s7822_s25 }
  0x6e   : > { %7087 = vmatmul.mubr.msk.f32.gmra.mxu0 %vm551_vm0, %v525_v25 }
  0x6f   : > { %7089 = vmatprep.mubr.msk.f32.mxu0 %vm551_vm0, %v526_v26 }
  0x70   : > { %4601 = vrot.lane.b32.xlu1 %v4595_v12, %s7821_s28 }
  0x71   : > { %4618 = vrot.lane.b32.xlu0 %v8285_v13, %s7822_s25 }
  0x72   : > { %7090 = vmatmul.mubr.msk.f32.gmra.mxu0 %vm551_vm0, %v527_v27 }
  0x73   : > { %7092 = vmatprep.mubr.msk.f32.mxu0 %vm551_vm0, %v528_v28  ;;  %v8308_v28 = vld [vmem:[%s10815_s4 + $0x68] sm:$0xff] }
  0x74   : > { %4616 = vrot.lane.b32.xlu1 %v8288_v14, %s7822_s25  ;;  %s7755_s25 = sshll.u32 %s7824_s19, 4  ;;  %s7756_s25 = int_to_ptr.vmem [resolvable:$false] %s7755_s25 }
  0x75   : > { %p7758_p7 = scmp.lt.s32.totalorder %s10736_s22, %s7756_s25 }
  0x76   : > { %7093 = vmatmul.mubr.msk.f32.gmra.mxu0 %vm551_vm0, %v529_v29 }
  0x77   : > { %7095 = vmatprep.mubr.msk.f32.mxu0 %vm551_vm0, %v530_v30 }
  0x7a   : > { %7096 = vmatmul.mubr.msk.f32.gmra.mxu0 %vm551_vm0, %v531_v31 }
  0x7b   : > { %7098 = vmatprep.mubr.msk.f32.mxu0 %vm551_vm0, %v532_v32 }
  0x7e   : > { %7099 = vmatmul.mubr.msk.f32.gmra.mxu0 %vm551_vm0, %v533_v33 }
  0x7f   : > { %7101 = vmatprep.mubr.msk.f32.mxu0 %vm551_vm0, %v534_v34 }
  0x82   : > { %7102 = vmatmul.mubr.msk.f32.gmra.mxu0 %vm551_vm0, %v535_v35 }
  0x83   : > { %7104 = vmatprep.mubr.msk.f32.mxu0 %vm551_vm0, %v536_v36 }
  0x86   : > { %7105 = vmatmul.mubr.msk.f32.gmra.mxu0 %vm551_vm0, %v537_v37 }
  0x87   : > { %7215 = vmatprep.mubr.msk.f32.mxu0 %vm905_vm1, %v1705_v45 }
  0x8a   : > { %7216 = vmatmul.mubr.msk.f32.vlgmr.msra.gmra.mxu0 %vm905_vm1, %v1706_v46 }
  0x8b   : > { %7316 = vmatpush3.msra.mxu0 %v6488_v53 }
  0x8c   : > { %7317 = vmatprep.subr.mxu0 %v6487_v56 }
  0x8d   : > { %7318 = vmatpush3.msra.mxu0 %v6487_v56 }
  0x8e   : > { %7419 = vmatprep.subr.mxu0 %v8308_v28 }
 0x10a   : > { %v7061_v16 = vpop.f32.mrf.mxu0 }
 0x10b   : > { %v720_v17 = vadd.f32 %v7061_v16, %v8297_v15 }
 0x10c   : > { %v714_v18 = vpop.f32.mrf.mxu0 }
 0x10d   : > { %v874_v19 = vmax.f32 %v720_v17, 0.0  ;;  %v715_v20 = vadd.f32 %v8297_v15, %v714_v18 }
 0x10e   : > { %v7064_v21 = vpop.f32.mrf.mxu0 }
 0x10f   : > { %963 = vst.msk [vmem:[#allocation2 + $0x21] sm:$0xff] %vm905_vm1, %v874_v19  ;;  %v873_v22 = vmax.f32 %v715_v20, 0.0  ;;  %v730_v23 = vadd.f32 %v7064_v21, %v8297_v15 }
 0x110   : > { %v724_v24 = vpop.f32.mrf.mxu0 }
 0x111   : > { %962 = vst.msk [vmem:[#allocation2 + $0x19] sm:$0xff] %vm905_vm1, %v873_v22  ;;  %v876_v25 = vmax.f32 %v730_v23, 0.0  ;;  %v725_v26 = vadd.f32 %v8297_v15, %v724_v24 }
 0x112   : > { %v7067_v27 = vpop.f32.mrf.mxu0 }
 0x113   : > { %965 = vst.msk [vmem:[#allocation2 + $0x39] sm:$0xff] %vm905_vm1, %v876_v25  ;;  %v875_v29 = vmax.f32 %v725_v26, 0.0  ;;  %v740_v30 = vadd.f32 %v7067_v27, %v8297_v15 }
 0x114   : > { %v734_v31 = vpop.f32.mrf.mxu0 }
 0x115   : > { %964 = vst.msk [vmem:[#allocation2 + $0x31] sm:$0xff] %vm905_vm1, %v875_v29  ;;  %v878_v32 = vmax.f32 %v740_v30, 0.0  ;;  %v735_v33 = vadd.f32 %v8297_v15, %v734_v31 }
 0x116   : > { %v7070_v34 = vpop.f32.mrf.mxu0  ;;  %v8324_v43 = vld [vmem:[#allocation2 + $0x21] sm:$0xff] }
 0x117   : > { %967 = vst.msk [vmem:[#allocation2 + $0x51] sm:$0xff] %vm905_vm1, %v878_v32  ;;  %v877_v35 = vmax.f32 %v735_v33, 0.0  ;;  %v750_v36 = vadd.f32 %v7070_v34, %v8297_v15  ;;  %v1708_v44 = vld [vmem:[#allocation2 + $0x22] sm:$0xff] }
 0x118   : > { %v744_v37 = vpop.f32.mrf.mxu0  ;;  %v8317_v39 = vld [vmem:[#allocation2 + $0x19] sm:$0xff] }
 0x119   : > { %v1707_v40 = vld [vmem:[#allocation2 + $0x1a] sm:$0xff]  ;;  %966 = vst.msk [vmem:[#allocation2 + $0x49] sm:$0xff] %vm905_vm1, %v877_v35  ;;  %v880_v41 = vmax.f32 %v750_v36, 0.0  ;;  %v745_v42 = vadd.f32 %v8297_v15, %v744_v37  ;;  %7114 = vmatprep.mubr.msk.f32.mxu1 %vm905_vm1, %v8317_v39 }
 0x11a   : > { %7218 = vmatprep.mubr.msk.f32.mxu0 %vm905_vm1, %v1707_v40  ;;  %v7073_v45 = vpop.f32.mrf.mxu0  ;;  %7115 = vmatmul.mubr.msk.f32.gmra.mxu1 %vm905_vm1, %v8324_v43  ;;  %v8338_v53 = vld [vmem:[#allocation2 + $0x39] sm:$0xff] }
 0x11b   : > { %7219 = vmatmul.mubr.msk.f32.gmra.mxu0 %vm905_vm1, %v1708_v44  ;;  %969 = vst.msk [vmem:[#allocation2 + $0x69] sm:$0xff] %vm905_vm1, %v880_v41  ;;  %v879_v46 = vmax.f32 %v745_v42, 0.0  ;;  %v760_v47 = vadd.f32 %v7073_v45, %v8297_v15  ;;  %v1710_v54 = vld [vmem:[#allocation2 + $0x3a] sm:$0xff] }
 0x11c   : > { %v754_v48 = vpop.f32.mrf.mxu0  ;;  %v8331_v49 = vld [vmem:[#allocation2 + $0x31] sm:$0xff] }
 0x11d   : > { %v1709_v50 = vld [vmem:[#allocation2 + $0x32] sm:$0xff]  ;;  %968 = vst.msk [vmem:[#allocation2 + $0x61] sm:$0xff] %vm905_vm1, %v879_v46  ;;  %v882_v51 = vmax.f32 %v760_v47, 0.0  ;;  %v755_v52 = vadd.f32 %v8297_v15, %v754_v48  ;;  %7117 = vmatprep.mubr.msk.f32.mxu1 %vm905_vm1, %v8331_v49 }
 0x11e   : > { %7221 = vmatprep.mubr.msk.f32.mxu0 %vm905_vm1, %v1709_v50  ;;  %v7076_v55 = vpop.f32.mrf.mxu0  ;;  %7118 = vmatmul.mubr.msk.f32.gmra.mxu1 %vm905_vm1, %v8338_v53  ;;  %v8352_v5 = vld [vmem:[#allocation2 + $0x51] sm:$0xff] }
 0x11f   : > { %7222 = vmatmul.mubr.msk.f32.gmra.mxu0 %vm905_vm1, %v1710_v54  ;;  %971 = vst.msk [vmem:[#allocation2 + $0x81] sm:$0xff] %vm905_vm1, %v882_v51  ;;  %v881_v56 = vmax.f32 %v755_v52, 0.0  ;;  %v770_v59 = vadd.f32 %v7076_v55, %v8297_v15  ;;  %v1712_v6 = vld [vmem:[#allocation2 + $0x52] sm:$0xff] }
 0x120   : > { %v764_v60 = vpop.f32.mrf.mxu0  ;;  %v8345_v61 = vld [vmem:[#allocation2 + $0x49] sm:$0xff] }
 0x121   : > { %v1711_v0 = vld [vmem:[#allocation2 + $0x4a] sm:$0xff]  ;;  %970 = vst.msk [vmem:[#allocation2 + $0x79] sm:$0xff] %vm905_vm1, %v881_v56  ;;  %v884_v2 = vmax.f32 %v770_v59, 0.0  ;;  %v765_v3 = vadd.f32 %v8297_v15, %v764_v60  ;;  %7120 = vmatprep.mubr.msk.f32.mxu1 %vm905_vm1, %v8345_v61 }
 0x122   : > { %7224 = vmatprep.mubr.msk.f32.mxu0 %vm905_vm1, %v1711_v0  ;;  %v7079_v7 = vpop.f32.mrf.mxu0  ;;  %7121 = vmatmul.mubr.msk.f32.gmra.mxu1 %vm905_vm1, %v8352_v5  ;;  %v8366_v19 = vld [vmem:[#allocation2 + $0x69] sm:$0xff] }
 0x123   : > { %7225 = vmatmul.mubr.msk.f32.gmra.mxu0 %vm905_vm1, %v1712_v6  ;;  %973 = vst.msk [vmem:[#allocation2 + $0x99] sm:$0xff] %vm905_vm1, %v884_v2  ;;  %v883_v8 = vmax.f32 %v765_v3, 0.0  ;;  %v780_v9 = vadd.f32 %v7079_v7, %v8297_v15  ;;  %v1714_v20 = vld [vmem:[#allocation2 + $0x6a] sm:$0xff] }
 0x124   : > { %v774_v11 = vpop.f32.mrf.mxu0  ;;  %v8359_v12 = vld [vmem:[#allocation2 + $0x61] sm:$0xff] }
 0x125   : > { %v1713_v16 = vld [vmem:[#allocation2 + $0x62] sm:$0xff]  ;;  %972 = vst.msk [vmem:[#allocation2 + $0x91] sm:$0xff] %vm905_vm1, %v883_v8  ;;  %v886_v17 = vmax.f32 %v780_v9, 0.0  ;;  %v775_v18 = vadd.f32 %v8297_v15, %v774_v11  ;;  %7123 = vmatprep.mubr.msk.f32.mxu1 %vm905_vm1, %v8359_v12 }
 0x126   : > { %7227 = vmatprep.mubr.msk.f32.mxu0 %vm905_vm1, %v1713_v16  ;;  %v7082_v21 = vpop.f32.mrf.mxu0  ;;  %7124 = vmatmul.mubr.msk.f32.gmra.mxu1 %vm905_vm1, %v8366_v19  ;;  %v8380_v30 = vld [vmem:[#allocation2 + $0x81] sm:$0xff] }
 0x127   : > { %7228 = vmatmul.mubr.msk.f32.gmra.mxu0 %vm905_vm1, %v1714_v20  ;;  %975 = vst.msk [vmem:[#allocation2 + $0xb1] sm:$0xff] %vm905_vm1, %v886_v17  ;;  %v885_v22 = vmax.f32 %v775_v18, 0.0  ;;  %v790_v23 = vadd.f32 %v7082_v21, %v8297_v15  ;;  %v1716_v31 = vld [vmem:[#allocation2 + $0x82] sm:$0xff] }
 0x128   : > { %v784_v24 = vpop.f32.mrf.mxu0  ;;  %v8373_v25 = vld [vmem:[#allocation2 + $0x79] sm:$0xff] }
 0x129   : > { %v1715_v26 = vld [vmem:[#allocation2 + $0x7a] sm:$0xff]  ;;  %974 = vst.msk [vmem:[#allocation2 + $0xa9] sm:$0xff] %vm905_vm1, %v885_v22  ;;  %v888_v27 = vmax.f32 %v790_v23, 0.0  ;;  %v785_v29 = vadd.f32 %v8297_v15, %v784_v24  ;;  %7126 = vmatprep.mubr.msk.f32.mxu1 %vm905_vm1, %v8373_v25 }
 0x12a   : > { %7230 = vmatprep.mubr.msk.f32.mxu0 %vm905_vm1, %v1715_v26  ;;  %v7085_v32 = vpop.f32.mrf.mxu0  ;;  %7127 = vmatmul.mubr.msk.f32.gmra.mxu1 %vm905_vm1, %v8380_v30  ;;  %v8394_v42 = vld [vmem:[#allocation2 + $0x99] sm:$0xff] }
 0x12b   : > { %7231 = vmatmul.mubr.msk.f32.gmra.mxu0 %vm905_vm1, %v1716_v31  ;;  %977 = vst.msk [vmem:[#allocation2 + $0xc9] sm:$0xff] %vm905_vm1, %v888_v27  ;;  %v887_v33 = vmax.f32 %v785_v29, 0.0  ;;  %v800_v34 = vadd.f32 %v7085_v32, %v8297_v15  ;;  %v1718_v44 = vld [vmem:[#allocation2 + $0x9a] sm:$0xff] }
 0x12c   : > { %v794_v35 = vpop.f32.mrf.mxu0  ;;  %v8387_v36 = vld [vmem:[#allocation2 + $0x91] sm:$0xff] }
 0x12d   : > { %v1717_v37 = vld [vmem:[#allocation2 + $0x92] sm:$0xff]  ;;  %976 = vst.msk [vmem:[#allocation2 + $0xc1] sm:$0xff] %vm905_vm1, %v887_v33  ;;  %v890_v40 = vmax.f32 %v800_v34, 0.0  ;;  %v795_v41 = vadd.f32 %v8297_v15, %v794_v35  ;;  %7129 = vmatprep.mubr.msk.f32.mxu1 %vm905_vm1, %v8387_v36 }
 0x12e   : > { %7233 = vmatprep.mubr.msk.f32.mxu0 %vm905_vm1, %v1717_v37  ;;  %v7088_v45 = vpop.f32.mrf.mxu0  ;;  %7130 = vmatmul.mubr.msk.f32.gmra.mxu1 %vm905_vm1, %v8394_v42  ;;  %v8408_v55 = vld [vmem:[#allocation2 + $0xb1] sm:$0xff] }
 0x12f   : > { %7234 = vmatmul.mubr.msk.f32.gmra.mxu0 %vm905_vm1, %v1718_v44  ;;  %979 = vst.msk [vmem:[#allocation2 + $0xe1] sm:$0xff] %vm905_vm1, %v890_v40  ;;  %v889_v46 = vmax.f32 %v795_v41, 0.0  ;;  %v810_v47 = vadd.f32 %v7088_v45, %v8297_v15  ;;  %v1720_v56 = vld [vmem:[#allocation2 + $0xb2] sm:$0xff] }
 0x130   : > { %v804_v48 = vpop.f32.mrf.mxu0  ;;  %v8401_v50 = vld [vmem:[#allocation2 + $0xa9] sm:$0xff] }
 0x131   : > { %v1719_v51 = vld [vmem:[#allocation2 + $0xaa] sm:$0xff]  ;;  %978 = vst.msk [vmem:[#allocation2 + $0xd9] sm:$0xff] %vm905_vm1, %v889_v46  ;;  %v892_v52 = vmax.f32 %v810_v47, 0.0  ;;  %v805_v54 = vadd.f32 %v8297_v15, %v804_v48  ;;  %7132 = vmatprep.mubr.msk.f32.mxu1 %vm905_vm1, %v8401_v50 }
 0x132   : > { %7236 = vmatprep.mubr.msk.f32.mxu0 %vm905_vm1, %v1719_v51  ;;  %v7091_v59 = vpop.f32.mrf.mxu0  ;;  %7133 = vmatmul.mubr.msk.f32.gmra.mxu1 %vm905_vm1, %v8408_v55  ;;  %v8422_v9 = vld [vmem:[#allocation2 + $0xc9] sm:$0xff] }
 0x133   : > { %7237 = vmatmul.mubr.msk.f32.gmra.mxu0 %vm905_vm1, %v1720_v56  ;;  %981 = vst.msk [vmem:[#allocation2 + $0xf9] sm:$0xff] %vm905_vm1, %v892_v52  ;;  %v891_v60 = vmax.f32 %v805_v54, 0.0  ;;  %v820_v0 = vadd.f32 %v7091_v59, %v8297_v15  ;;  %v1722_v11 = vld [vmem:[#allocation2 + $0xca] sm:$0xff] }
 0x134   : > { %v814_v2 = vpop.f32.mrf.mxu0  ;;  %v8415_v3 = vld [vmem:[#allocation2 + $0xc1] sm:$0xff] }
 0x135   : > { %v1721_v6 = vld [vmem:[#allocation2 + $0xc2] sm:$0xff]  ;;  %980 = vst.msk [vmem:[#allocation2 + $0xf1] sm:$0xff] %vm905_vm1, %v891_v60  ;;  %v894_v7 = vmax.f32 %v820_v0, 0.0  ;;  %v815_v8 = vadd.f32 %v8297_v15, %v814_v2  ;;  %7135 = vmatprep.mubr.msk.f32.mxu1 %vm905_vm1, %v8415_v3 }
 0x136   : > { %7239 = vmatprep.mubr.msk.f32.mxu0 %vm905_vm1, %v1721_v6  ;;  %v7094_v16 = vpop.f32.mrf.mxu0  ;;  %7136 = vmatmul.mubr.msk.f32.gmra.mxu1 %vm905_vm1, %v8422_v9  ;;  %v8436_v26 = vld [vmem:[#allocation2 + $0xe1] sm:$0xff] }
 0x137   : > { %7240 = vmatmul.mubr.msk.f32.gmra.mxu0 %vm905_vm1, %v1722_v11  ;;  %983 = vst.msk [vmem:[#allocation2 + $0x111] sm:$0xff] %vm905_vm1, %v894_v7  ;;  %v893_v17 = vmax.f32 %v815_v8, 0.0  ;;  %v830_v18 = vadd.f32 %v7094_v16, %v8297_v15  ;;  %v1724_v27 = vld [vmem:[#allocation2 + $0xe2] sm:$0xff] }
 0x138   : > { %v824_v20 = vpop.f32.mrf.mxu0  ;;  %v8429_v21 = vld [vmem:[#allocation2 + $0xd9] sm:$0xff] }
 0x139   : > { %v1723_v22 = vld [vmem:[#allocation2 + $0xda] sm:$0xff]  ;;  %982 = vst.msk [vmem:[#allocation2 + $0x109] sm:$0xff] %vm905_vm1, %v893_v17  ;;  %v896_v23 = vmax.f32 %v830_v18, 0.0  ;;  %v825_v24 = vadd.f32 %v8297_v15, %v824_v20  ;;  %7138 = vmatprep.mubr.msk.f32.mxu1 %vm905_vm1, %v8429_v21 }
 0x13a   : > { %7242 = vmatprep.mubr.msk.f32.mxu0 %vm905_vm1, %v1723_v22  ;;  %v7097_v29 = vpop.f32.mrf.mxu0  ;;  %7139 = vmatmul.mubr.msk.f32.gmra.mxu1 %vm905_vm1, %v8436_v26  ;;  %v8450_v41 = vld [vmem:[#allocation2 + $0xf9] sm:$0xff] }
 0x13b   : > { %7243 = vmatmul.mubr.msk.f32.gmra.mxu0 %vm905_vm1, %v1724_v27  ;;  %985 = vst.msk [vmem:[#allocation2 + $0x129] sm:$0xff] %vm905_vm1, %v896_v23  ;;  %v895_v31 = vmax.f32 %v825_v24, 0.0  ;;  %v840_v32 = vadd.f32 %v7097_v29, %v8297_v15  ;;  %v1726_v44 = vld [vmem:[#allocation2 + $0xfa] sm:$0xff] }
 0x13c   : > { %v834_v33 = vpop.f32.mrf.mxu0  ;;  %v8443_v34 = vld [vmem:[#allocation2 + $0xf1] sm:$0xff] }
 0x13d   : > { %v1725_v35 = vld [vmem:[#allocation2 + $0xf2] sm:$0xff]  ;;  %984 = vst.msk [vmem:[#allocation2 + $0x121] sm:$0xff] %vm905_vm1, %v895_v31  ;;  %v898_v37 = vmax.f32 %v840_v32, 0.0  ;;  %v835_v40 = vadd.f32 %v8297_v15, %v834_v33  ;;  %7141 = vmatprep.mubr.msk.f32.mxu1 %vm905_vm1, %v8443_v34 }
 0x13e   : > { %7245 = vmatprep.mubr.msk.f32.mxu0 %vm905_vm1, %v1725_v35  ;;  %v7100_v45 = vpop.f32.mrf.mxu0  ;;  %7142 = vmatmul.mubr.msk.f32.gmra.mxu1 %vm905_vm1, %v8450_v41  ;;  %v8464_v59 = vld [vmem:[#allocation2 + $0x111] sm:$0xff] }
 0x13f   : > { %7246 = vmatmul.mubr.msk.f32.gmra.mxu0 %vm905_vm1, %v1726_v44  ;;  %987 = vst.msk [vmem:[#allocation2 + $0x141] sm:$0xff] %vm905_vm1, %v898_v37  ;;  %v897_v46 = vmax.f32 %v835_v40, 0.0  ;;  %v850_v47 = vadd.f32 %v7100_v45, %v8297_v15  ;;  %v1728_v60 = vld [vmem:[#allocation2 + $0x112] sm:$0xff] }
 0x140   : > { %v844_v48 = vpop.f32.mrf.mxu0  ;;  %v8457_v51 = vld [vmem:[#allocation2 + $0x109] sm:$0xff] }
 0x141   : > { %v1727_v52 = vld [vmem:[#allocation2 + $0x10a] sm:$0xff]  ;;  %986 = vst.msk [vmem:[#allocation2 + $0x139] sm:$0xff] %vm905_vm1, %v897_v46  ;;  %v900_v54 = vmax.f32 %v850_v47, 0.0  ;;  %v845_v56 = vadd.f32 %v8297_v15, %v844_v48  ;;  %7144 = vmatprep.mubr.msk.f32.mxu1 %vm905_vm1, %v8457_v51 }
 0x142   : > { %7248 = vmatprep.mubr.msk.f32.mxu0 %vm905_vm1, %v1727_v52  ;;  %v7103_v0 = vpop.f32.mrf.mxu0  ;;  %7145 = vmatmul.mubr.msk.f32.gmra.mxu1 %vm905_vm1, %v8464_v59  ;;  %v8478_v18 = vld [vmem:[#allocation2 + $0x129] sm:$0xff]  ;;  %v994_v52 = vld [vmem:[#allocation2] sm:$0xff] }
 0x143   : > { %7249 = vmatmul.mubr.msk.f32.gmra.mxu0 %vm905_vm1, %v1728_v60  ;;  %989 = vst.msk [vmem:[#allocation2 + $0x159] sm:$0xff] %vm905_vm1, %v900_v54  ;;  %v899_v2 = vmax.f32 %v845_v56, 0.0  ;;  %v860_v6 = vadd.f32 %v7103_v0, %v8297_v15  ;;  %v1730_v20 = vld [vmem:[#allocation2 + $0x12a] sm:$0xff] }
 0x144   : > { %v854_v7 = vpop.f32.mrf.mxu0  ;;  %v8471_v8 = vld [vmem:[#allocation2 + $0x121] sm:$0xff]  ;;  %v6453_v0 = vld [vmem:[%s10815_s4 + $0x30] sm:$0xff] }
 0x145   : > { %v1729_v11 = vld [vmem:[#allocation2 + $0x122] sm:$0xff]  ;;  %988 = vst.msk [vmem:[#allocation2 + $0x151] sm:$0xff] %vm905_vm1, %v899_v2  ;;  %v902_v16 = vmax.f32 %v860_v6, 0.0  ;;  %v855_v17 = vadd.f32 %v8297_v15, %v854_v7  ;;  %7147 = vmatprep.mubr.msk.f32.mxu1 %vm905_vm1, %v8471_v8  ;;  %v8528_v2 = vld [vmem:[#allocation2 + $0x18] sm:$0xff] }
 0x146   : > { %7251 = vmatprep.mubr.msk.f32.mxu0 %vm905_vm1, %v1729_v11  ;;  %7148 = vmatmul.mubr.msk.f32.gmra.mxu1 %vm905_vm1, %v8478_v18  ;;  %v7106_v22 = vpop.f32.mrf.mxu0  ;;  %v8491_v32 = vld [vmem:[#allocation2 + $0x141] sm:$0xff] }
 0x147   : > { %7252 = vmatmul.mubr.msk.f32.gmra.mxu0 %vm905_vm1, %v1730_v20  ;;  %991 = vst.msk [vmem:[#allocation2 + $0x171] sm:$0xff] %vm905_vm1, %v902_v16  ;;  %v901_v23 = vmax.f32 %v855_v17, 0.0  ;;  %v870_v24 = vadd.f32 %v7106_v22, %v8297_v15  ;;  %v1732_v33 = vld [vmem:[#allocation2 + $0x142] sm:$0xff]  ;;  %v4513_v17 = vpop.permute.xlu0 %4512 }
 0x148   : > { %v8485_v27 = vld [vmem:[#allocation2 + $0x139] sm:$0xff]  ;;  %v864_v31 = vpop.f32.mrf.mxu0  ;;  %v995_v60 = vld [vmem:[#allocation2 + $0x8] sm:$0xff] }
 0x149   : > { %v1731_v29 = vld [vmem:[#allocation2 + $0x13a] sm:$0xff]  ;;  %990 = vst.msk [vmem:[#allocation2 + $0x169] sm:$0xff] %vm905_vm1, %v901_v23  ;;  %7150 = vmatprep.mubr.msk.f32.mxu1 %vm905_vm1, %v8485_v27  ;;  %v904_v35 = vmax.f32 %v870_v24, 0.0  ;;  %v865_v37 = vadd.f32 %v8297_v15, %v864_v31  ;;  %v8562_v6 = vld [vmem:[%s10815_s4 + $0x88] sm:$0xff]  ;;  %v6521_v31 = vld [vmem:[%s10815_s4 + $0x50] sm:$0xff] }
 0x14a   : > { %7254 = vmatprep.mubr.msk.f32.mxu0 %vm905_vm1, %v1731_v29  ;;  %7151 = vmatmul.mubr.msk.f32.gmra.mxu1 %vm905_vm1, %v8491_v32  ;;  %v8503_v46 = vld [vmem:[#allocation2 + $0x159] sm:$0xff]  ;;  %v8727_v29 = vpop.permute.xlu1 %4510 }
 0x14b   : > { %7255 = vmatmul.mubr.msk.f32.gmra.mxu0 %vm905_vm1, %v1732_v33  ;;  %993 = vst.msk [vmem:[#allocation2 + $0x189] sm:$0xff] %vm905_vm1, %v904_v35  ;;  %v903_v40 = vmax.f32 %v865_v37, 0.0  ;;  %v1734_v47 = vld [vmem:[#allocation2 + $0x15a] sm:$0xff] }
 0x14c   : > { %v8498_v44 = vld [vmem:[#allocation2 + $0x151] sm:$0xff]  ;;  %v8581_v7 = vld [vmem:[#allocation2 + $0x60] sm:$0xff] }
 0x14d   : > { %v1733_v45 = vld [vmem:[#allocation2 + $0x152] sm:$0xff]  ;;  %7153 = vmatprep.mubr.msk.f32.mxu1 %vm905_vm1, %v8498_v44  ;;  %992 = vst.msk [vmem:[#allocation2 + $0x181] sm:$0xff] %vm905_vm1, %v903_v40  ;;  %v8695_v11 = vld [vmem:[#allocation2 + $0x140] sm:$0xff] }
 0x14e   : > { %7257 = vmatprep.mubr.msk.f32.mxu0 %vm905_vm1, %v1733_v45  ;;  %7154 = vmatmul.mubr.msk.f32.gmra.mxu1 %vm905_vm1, %v8503_v46  ;;  %v8514_v54 = vld [vmem:[#allocation2 + $0x171] sm:$0xff]  ;;  %v8741_v33 = vpop.permute.xlu1 %4528  ;;  %v6623_v35 = vld [vmem:[%s10815_s4 + $0x80] sm:$0xff] }
 0x14f   : > { %7258 = vmatmul.mubr.msk.f32.gmra.mxu0 %vm905_vm1, %v1734_v47  ;;  %v1736_v56 = vld [vmem:[#allocation2 + $0x172] sm:$0xff]  ;;  %v4519_v47 = vadd.f32 %v4513_v17, %v8247_v58  ;;  %v4038_v17 = vld [vmem:[#allocation2 + $0x62] sm:$0xff] }
 0x150   : > { %v8509_v15 = vld [vmem:[#allocation2 + $0x169] sm:$0xff]  ;;  %v8707_v20 = vld [vmem:[#allocation2 + $0x158] sm:$0xff] }
 0x151   : > { %v1735_v48 = vld [vmem:[#allocation2 + $0x16a] sm:$0xff]  ;;  %7156 = vmatprep.mubr.msk.f32.mxu1 %vm905_vm1, %v8509_v15  ;;  %v8750_v37 = vld [vmem:[%s10815_s4 + $0x78] sm:$0xff] }
 0x152   : > { %7260 = vmatprep.mubr.msk.f32.mxu0 %vm905_vm1, %v1735_v48  ;;  %7157 = vmatmul.mubr.msk.f32.gmra.mxu1 %vm905_vm1, %v8514_v54  ;;  %v8701_v16 = vld [vmem:[#allocation2 + $0x150] sm:$0xff]  ;;  %v8713_v22 = vld [vmem:[#allocation2 + $0x168] sm:$0xff]  ;;  %v4558_v48 = vmul.f32 4.0, %v8257_v63  ;;  %v4585_v63 = vmul.f32 2.0, %v8270_v4 }
 0x153   : > { %7261 = vmatmul.mubr.msk.f32.gmra.mxu0 %vm905_vm1, %v1736_v56  ;;  %7163 = vmatprep.mubr.msk.f32.mxu1 %vm905_vm1, %v994_v52  ;;  %v2512_v23 = vld [vmem:[#allocation2 + $0x189] sm:$0xff] }
 0x154   : > { %7319 = vmatprep.mubr.msk.f32.mxu0 %vm905_vm1, %v8317_v39  ;;  %v8535_v39 = vld [vmem:[#allocation2 + $0x20] sm:$0xff]  ;;  %v8718_v24 = vld [vmem:[#allocation2 + $0x170] sm:$0xff] }
 0x156   : > { %7164 = vmatmul.mubr.msk.f32.vlgmr.msra.gmra.mxu1 %vm905_vm1, %v995_v60 }
 0x157   : > { %7320 = vmatmul.mubr.msk.f32.vlgmr.msra.gmra.mxu0 %vm905_vm1, %v8324_v43  ;;  %7264 = vmatpush3.msra.mxu1 %v8243_v57  ;;  %v6555_v43 = vld [vmem:[%s10815_s4 + $0x60] sm:$0xff]  ;;  %v8544_v57 = vld [vmem:[%s10815_s4 + $0x58] sm:$0xff] }
 0x158   : > { %7166 = vmatprep.mubr.msk.f32.mxu1 %vm905_vm1, %v8528_v2  ;;  %7322 = vmatprep.mubr.msk.f32.mxu0 %vm905_vm1, %v8331_v49  ;;  %v8550_v49 = vld [vmem:[#allocation2 + $0x30] sm:$0xff] }
 0x159   : > { %7265 = vmatprep.subr.mxu1 %v6453_v0  ;;  %7420 = vmatpush3.msra.mxu0 %v8308_v28  ;;  %v8557_v28 = vld [vmem:[#allocation2 + $0x38] sm:$0xff] }
 0x15a   : > { %7266 = vmatpush3.msra.mxu1 %v6453_v0  ;;  %7421 = vmatprep.subr.mxu0 %v6555_v43 }
 0x15b   : > { %7167 = vmatmul.mubr.msk.f32.gmra.mxu1 %vm905_vm1, %v8535_v39  ;;  %7323 = vmatmul.mubr.msk.f32.gmra.mxu0 %vm905_vm1, %v8338_v53  ;;  %v8568_v53 = vld [vmem:[#allocation2 + $0x48] sm:$0xff] }
 0x15c   : > { %7169 = vmatprep.mubr.msk.f32.mxu1 %vm905_vm1, %v8550_v49  ;;  %7325 = vmatprep.mubr.msk.f32.mxu0 %vm905_vm1, %v8345_v61  ;;  %v8575_v61 = vld [vmem:[#allocation2 + $0x50] sm:$0xff] }
 0x15d   : > { %7367 = vmatprep.subr.mxu1 %v8544_v57  ;;  %7422 = vmatpush3.msra.mxu0 %v6555_v43 }
 0x15e   : > { %7523 = vmatprep.subr.mxu0 %v8562_v6 }
 0x15f   : > { %7170 = vmatmul.mubr.msk.f32.gmra.mxu1 %vm905_vm1, %v8557_v28  ;;  %7326 = vmatmul.mubr.msk.f32.gmra.mxu0 %vm905_vm1, %v8352_v5  ;;  %v8587_v5 = vld [vmem:[#allocation2 + $0x68] sm:$0xff] }
 0x160   : > { %7172 = vmatprep.mubr.msk.f32.mxu1 %vm905_vm1, %v8568_v53  ;;  %7328 = vmatprep.mubr.msk.f32.mxu0 %vm905_vm1, %v8359_v12  ;;  %v8593_v12 = vld [vmem:[#allocation2 + $0x78] sm:$0xff] }
 0x163   : > { %7173 = vmatmul.mubr.msk.f32.gmra.mxu1 %vm905_vm1, %v8575_v61  ;;  %7329 = vmatmul.mubr.msk.f32.gmra.mxu0 %vm905_vm1, %v8366_v19  ;;  %v8599_v19 = vld [vmem:[#allocation2 + $0x80] sm:$0xff] }
 0x164   : > { %7175 = vmatprep.mubr.msk.f32.mxu1 %vm905_vm1, %v8581_v7  ;;  %7331 = vmatprep.mubr.msk.f32.mxu0 %vm905_vm1, %v8373_v25  ;;  %v8605_v25 = vld [vmem:[#allocation2 + $0x90] sm:$0xff] }
 0x167   : > { %7176 = vmatmul.mubr.msk.f32.gmra.mxu1 %vm905_vm1, %v8587_v5  ;;  %7332 = vmatmul.mubr.msk.f32.gmra.mxu0 %vm905_vm1, %v8380_v30  ;;  %v8611_v30 = vld [vmem:[#allocation2 + $0x98] sm:$0xff] }
 0x168   : > { %7178 = vmatprep.mubr.msk.f32.mxu1 %vm905_vm1, %v8593_v12  ;;  %7334 = vmatprep.mubr.msk.f32.mxu0 %vm905_vm1, %v8387_v36  ;;  %v8617_v36 = vld [vmem:[#allocation2 + $0xa8] sm:$0xff] }
 0x16b   : > { %7179 = vmatmul.mubr.msk.f32.gmra.mxu1 %vm905_vm1, %v8599_v19  ;;  %7335 = vmatmul.mubr.msk.f32.gmra.mxu0 %vm905_vm1, %v8394_v42  ;;  %v8623_v42 = vld [vmem:[#allocation2 + $0xb0] sm:$0xff] }
 0x16c   : > { %7181 = vmatprep.mubr.msk.f32.mxu1 %vm905_vm1, %v8605_v25  ;;  %7337 = vmatprep.mubr.msk.f32.mxu0 %vm905_vm1, %v8401_v50  ;;  %v8629_v50 = vld [vmem:[#allocation2 + $0xc0] sm:$0xff] }
 0x16f   : > { %7182 = vmatmul.mubr.msk.f32.gmra.mxu1 %vm905_vm1, %v8611_v30  ;;  %7338 = vmatmul.mubr.msk.f32.gmra.mxu0 %vm905_vm1, %v8408_v55  ;;  %v8635_v55 = vld [vmem:[#allocation2 + $0xc8] sm:$0xff] }
 0x170   : > { %7184 = vmatprep.mubr.msk.f32.mxu1 %vm905_vm1, %v8617_v36  ;;  %7340 = vmatprep.mubr.msk.f32.mxu0 %vm905_vm1, %v8415_v3  ;;  %v8641_v3 = vld [vmem:[#allocation2 + $0xd8] sm:$0xff] }
 0x173   : > { %7185 = vmatmul.mubr.msk.f32.gmra.mxu1 %vm905_vm1, %v8623_v42  ;;  %7341 = vmatmul.mubr.msk.f32.gmra.mxu0 %vm905_vm1, %v8422_v9  ;;  %v8647_v9 = vld [vmem:[#allocation2 + $0xe0] sm:$0xff] }
 0x174   : > { %7187 = vmatprep.mubr.msk.f32.mxu1 %vm905_vm1, %v8629_v50  ;;  %7343 = vmatprep.mubr.msk.f32.mxu0 %vm905_vm1, %v8429_v21  ;;  %v8653_v21 = vld [vmem:[#allocation2 + $0xf0] sm:$0xff] }
 0x177   : > { %7188 = vmatmul.mubr.msk.f32.gmra.mxu1 %vm905_vm1, %v8635_v55  ;;  %7344 = vmatmul.mubr.msk.f32.gmra.mxu0 %vm905_vm1, %v8436_v26  ;;  %v8659_v26 = vld [vmem:[#allocation2 + $0xf8] sm:$0xff] }
 0x178   : > { %7190 = vmatprep.mubr.msk.f32.mxu1 %vm905_vm1, %v8641_v3  ;;  %7346 = vmatprep.mubr.msk.f32.mxu0 %vm905_vm1, %v8443_v34  ;;  %v8665_v34 = vld [vmem:[#allocation2 + $0x108] sm:$0xff] }
 0x17b   : > { %7191 = vmatmul.mubr.msk.f32.gmra.mxu1 %vm905_vm1, %v8647_v9  ;;  %7347 = vmatmul.mubr.msk.f32.gmra.mxu0 %vm905_vm1, %v8450_v41  ;;  %v8671_v41 = vld [vmem:[#allocation2 + $0x110] sm:$0xff] }
 0x17c   : > { %7193 = vmatprep.mubr.msk.f32.mxu1 %vm905_vm1, %v8653_v21  ;;  %7349 = vmatprep.mubr.msk.f32.mxu0 %vm905_vm1, %v8457_v51  ;;  %v8677_v51 = vld [vmem:[#allocation2 + $0x120] sm:$0xff] }
 0x17f   : > { %7194 = vmatmul.mubr.msk.f32.gmra.mxu1 %vm905_vm1, %v8659_v26  ;;  %7350 = vmatmul.mubr.msk.f32.gmra.mxu0 %vm905_vm1, %v8464_v59  ;;  %v8683_v59 = vld [vmem:[#allocation2 + $0x128] sm:$0xff] }
 0x180   : > { %7196 = vmatprep.mubr.msk.f32.mxu1 %vm905_vm1, %v8665_v34  ;;  %7352 = vmatprep.mubr.msk.f32.mxu0 %vm905_vm1, %v8471_v8  ;;  %v8689_v8 = vld [vmem:[#allocation2 + $0x138] sm:$0xff] }
 0x183   : > { %7197 = vmatmul.mubr.msk.f32.gmra.mxu1 %vm905_vm1, %v8671_v41  ;;  %7353 = vmatmul.mubr.msk.f32.gmra.mxu0 %vm905_vm1, %v8478_v18  ;;  %v2511_v18 = vld [vmem:[#allocation2 + $0x181] sm:$0xff] }
 0x184   : > { %7199 = vmatprep.mubr.msk.f32.mxu1 %vm905_vm1, %v8677_v51  ;;  %7355 = vmatprep.mubr.msk.f32.mxu0 %vm905_vm1, %v8485_v27  ;;  %v4531_v27 = vpop.permute.xlu0 %4530 }
 0x187   : > { %7200 = vmatmul.mubr.msk.f32.gmra.mxu1 %vm905_vm1, %v8683_v59  ;;  %7356 = vmatmul.mubr.msk.f32.gmra.mxu0 %vm905_vm1, %v8491_v32 }
 0x188   : > { %7202 = vmatprep.mubr.msk.f32.mxu1 %vm905_vm1, %v8689_v8  ;;  %7358 = vmatprep.mubr.msk.f32.mxu0 %vm905_vm1, %v8498_v44  ;;  %v4546_v32 = vpop.permute.xlu0 %4545  ;;  %v8771_v44 = vpop.permute.xlu1 %4508 }
 0x18b   : > { %7203 = vmatmul.mubr.msk.f32.gmra.mxu1 %vm905_vm1, %v8695_v11  ;;  %7359 = vmatmul.mubr.msk.f32.gmra.mxu0 %vm905_vm1, %v8503_v46 }
 0x18c   : > { %7205 = vmatprep.mubr.msk.f32.mxu1 %vm905_vm1, %v8701_v16  ;;  %7361 = vmatprep.mubr.msk.f32.mxu0 %vm905_vm1, %v8509_v15  ;;  %v8761_v40 = vpop.permute.xlu0 %4526  ;;  %v8782_v46 = vpop.permute.xlu1 %4543  ;;  %v4537_v15 = vadd.f32 %v4531_v27, %v8247_v58  ;;  %v4040_v27 = vld [vmem:[#allocation2 + $0x7a] sm:$0xff] }
 0x18e   : > { %v4561_v56 = vadd.f32 %v4558_v48, %v4537_v15 }
 0x18f   : > { %7206 = vmatmul.mubr.msk.f32.gmra.mxu1 %vm905_vm1, %v8707_v20  ;;  %7362 = vmatmul.mubr.msk.f32.gmra.mxu0 %vm905_vm1, %v8514_v54  ;;  %v4552_v54 = vadd.f32 %v4546_v32, %v4519_v47  ;;  %v7678_v47 = vld [vmem:[%s8228_s24 + $0x9] sm:$0xff] }
 0x190   : > { %7208 = vmatprep.mubr.msk.f32.mxu1 %vm905_vm1, %v8713_v22  ;;  %7364 = vmatprep.mubr.msk.f32.mxu0 %vm905_vm1, %v2511_v18  ;;  %v4573_v45 = vpop.permute.xlu0 %4572  ;;  %v8805_v58 = vpop.permute.xlu1 %4541  ;;  %v4557_v15 = vmul.f32 4.0, %v7678_v47 }
 0x191   : > { %v4579_v60 = vadd.f32 %v4573_v45, %v4561_v56  ;;  %v4594_v0 = vadd.f32 %v8279_v10, %v4552_v54  ;;  %v4536_v45 = vadd.f32 %v8741_v33, %v8254_v62  ;;  %v4042_v56 = vld [vmem:[#allocation2 + $0x92] sm:$0xff]  ;;  %v7679_v33 = vld [vmem:[%s8228_s24 + $0x1] sm:$0xff] }
 0x193   : > { %7209 = vmatmul.mubr.msk.f32.gmra.mxu1 %vm905_vm1, %v8718_v24  ;;  %7365 = vmatmul.mubr.msk.f32.gmra.mxu0 %vm905_vm1, %v2512_v23  ;;  %v4588_v43 = vadd.f32 %v4585_v63, %v4579_v60  ;;  %v4556_v63 = vmul.f32 4.0, %v7679_v33 }
 0x194   : > { %7267 = vmatprep.mubr.msk.f32.mxu1 %vm905_vm1, %v8528_v2  ;;  %7423 = vmatprep.mubr.msk.f32.mxu0 %vm905_vm1, %v8550_v49  ;;  %v8795_v52 = vpop.permute.xlu0 %4570 }
 0x197   : > { %7268 = vmatmul.mubr.msk.f32.vlgmr.msra.gmra.mxu1 %vm905_vm1, %v8535_v39  ;;  %7424 = vmatmul.mubr.msk.f32.vlgmr.msra.gmra.mxu0 %vm905_vm1, %v8557_v28  ;;  %v4606_v39 = vpop.permute.xlu1 %4605 }
 0x198   : > { %7368 = vmatpush3.msra.mxu1 %v8544_v57  ;;  %7270 = vmatprep.mubr.msk.f32.mxu1 %vm905_vm1, %v8550_v49  ;;  %v8817_v2 = vpop.permute.xlu0 %4568  ;;  %v4612_v4 = vadd.f32 %v4606_v39, %v4594_v0  ;;  %v4043_v39 = vld [vmem:[#allocation2 + $0x9a] sm:$0xff] }
 0x199   : > { %7426 = vmatprep.mubr.msk.f32.mxu0 %vm905_vm1, %v8568_v53  ;;  %7369 = vmatprep.subr.mxu1 %v6521_v31 }
 0x19a   : > { %7370 = vmatpush3.msra.mxu1 %v6521_v31  ;;  %7524 = vmatpush3.msra.mxu0 %v8562_v6 }
 0x19b   : > { %7271 = vmatmul.mubr.msk.f32.gmra.mxu1 %vm905_vm1, %v8557_v28  ;;  %7427 = vmatmul.mubr.msk.f32.gmra.mxu0 %vm905_vm1, %v8575_v61 }
 0x19c   : > { %7273 = vmatprep.mubr.msk.f32.mxu1 %vm905_vm1, %v8568_v53  ;;  %7429 = vmatprep.mubr.msk.f32.mxu0 %vm905_vm1, %v8581_v7  ;;  %v4621_v10 = vpop.permute.xlu0 %4620 }
 0x19d   : > { %7525 = vmatprep.subr.mxu0 %v6623_v35  ;;  %7471 = vmatprep.subr.mxu1 %v8750_v37  ;;  %v4627_v57 = vadd.f32 %v4621_v10, %v4588_v43  ;;  %v4630_v49 = vadd.f32 %v4621_v10, %v4612_v4  ;;  %v4560_v4 = vadd.f32 %v4557_v15, %v4536_v45  ;;  %v4049_v45 = vld [vmem:[#allocation2 + $0xe2] sm:$0xff] }
 0x19e   : > { %7526 = vmatpush3.msra.mxu0 %v6623_v35  ;;  %v4041_v35 = vld [vmem:[#allocation2 + $0x82] sm:$0xff] }
 0x19f   : > { %7274 = vmatmul.mubr.msk.f32.gmra.mxu1 %vm905_vm1, %v8575_v61  ;;  %7430 = vmatmul.mubr.msk.f32.gmra.mxu0 %vm905_vm1, %v8587_v5  ;;  %v4633_v28 = vmul.f32 %v4627_v57, %v4627_v57  ;;  %v4636_v6 = vmul.f32 %v4630_v49, %v4630_v49  ;;  %v3286_v61 = vld [vmem:[#allocation2 + $0x180] sm:$0xff] }
 0x1a0   : > { %7276 = vmatprep.mubr.msk.f32.mxu1 %vm905_vm1, %v8581_v7  ;;  %7432 = vmatprep.mubr.msk.f32.mxu0 %vm905_vm1, %v8593_v12  ;;  %v3287_v7 = vld [vmem:[#allocation2 + $0x188] sm:$0xff] }
 0x1a1   : > { %7593 = vmatprep.subr.mxu0 %v10836_v38  ;;  %v4639_v53 = vadd.f32 %v4636_v6, %v4633_v28  ;;  %v4045_v6 = vld [vmem:[#allocation2 + $0xb2] sm:$0xff] }
 0x1a3   : > { %7277 = vmatmul.mubr.msk.f32.gmra.mxu1 %vm905_vm1, %v8587_v5  ;;  %7433 = vmatmul.mubr.msk.f32.gmra.mxu0 %vm905_vm1, %v8599_v19  ;;  %7668 = vrsqrt.f32 %v4639_v53  ;;  %v3288_v5 = vld [vmem:[#allocation2 + $0x198] sm:$0xff]  ;;  %vm4656_vm3 = vcmp.eq.f32.partialorder %v4639_v53, inf  ;;  %vm4658_vm4 = vcmp.eq.f32.partialorder %v4639_v53, 0.0 }
 0x1a4   : > { %7279 = vmatprep.mubr.msk.f32.mxu1 %vm905_vm1, %v8593_v12  ;;  %7435 = vmatprep.mubr.msk.f32.mxu0 %vm905_vm1, %v8605_v25 }
 0x1a7   : > { %7280 = vmatmul.mubr.msk.f32.gmra.mxu1 %vm905_vm1, %v8599_v19  ;;  %7436 = vmatmul.mubr.msk.f32.gmra.mxu0 %vm905_vm1, %v8611_v30  ;;  %v3289_v19 = vld [vmem:[#allocation2 + $0x1a0] sm:$0xff] }
 0x1a8   : > { %7282 = vmatprep.mubr.msk.f32.mxu1 %vm905_vm1, %v8605_v25  ;;  %7438 = vmatprep.mubr.msk.f32.mxu0 %vm905_vm1, %v8617_v36  ;;  %v2869_v25 = vld [vmem:[#allocation2 + $0x1a] sm:$0xff] }
 0x1ab   : > { %7283 = vmatmul.mubr.msk.f32.gmra.mxu1 %vm905_vm1, %v8611_v30  ;;  %7439 = vmatmul.mubr.msk.f32.gmra.mxu0 %vm905_vm1, %v8623_v42  ;;  %v4034_v30 = vld [vmem:[#allocation2 + $0x32] sm:$0xff] }
 0x1ac   : > { %7285 = vmatprep.mubr.msk.f32.mxu1 %vm905_vm1, %v8617_v36  ;;  %7441 = vmatprep.mubr.msk.f32.mxu0 %vm905_vm1, %v8629_v50  ;;  %v8881_v36 = vpop.f32.mrf.mxu0 }
 0x1af   : > { %7286 = vmatmul.mubr.msk.f32.gmra.mxu1 %vm905_vm1, %v8623_v42  ;;  %7442 = vmatmul.mubr.msk.f32.gmra.mxu0 %vm905_vm1, %v8635_v55 }
 0x1b0   : > { %7288 = vmatprep.mubr.msk.f32.mxu1 %vm905_vm1, %v8629_v50  ;;  %7444 = vmatprep.mubr.msk.f32.mxu0 %vm905_vm1, %v8641_v3  ;;  %v7669_v12 = vpop.eup %7668  ;;  %v8885_v50 = vpop.f32.mrf.mxu1 }
 0x1b1   : > { %v4655_v42 = vmul.f32 %v7669_v12, %v4639_v53 }
 0x1b3   : > { %7289 = vmatmul.mubr.msk.f32.gmra.mxu1 %vm905_vm1, %v8635_v55  ;;  %7445 = vmatmul.mubr.msk.f32.gmra.mxu0 %vm905_vm1, %v8647_v9  ;;  %v2870_v55 = vld [vmem:[#allocation2 + $0x22] sm:$0xff] }
 0x1b4   : > { %7291 = vmatprep.mubr.msk.f32.mxu1 %vm905_vm1, %v8641_v3  ;;  %7447 = vmatprep.mubr.msk.f32.mxu0 %vm905_vm1, %v8653_v21  ;;  %v4035_v3 = vld [vmem:[#allocation2 + $0x3a] sm:$0xff] }
 0x1b7   : > { %7292 = vmatmul.mubr.msk.f32.gmra.mxu1 %vm905_vm1, %v8647_v9  ;;  %7448 = vmatmul.mubr.msk.f32.gmra.mxu0 %vm905_vm1, %v8659_v26  ;;  %v6589_v9 = vld [vmem:[%s10815_s4 + $0x70] sm:$0xff] }
 0x1b8   : > { %7294 = vmatprep.mubr.msk.f32.mxu1 %vm905_vm1, %v8653_v21  ;;  %7450 = vmatprep.mubr.msk.f32.mxu0 %vm905_vm1, %v8665_v34  ;;  %v4659_v21 = vand.u32 2147483648, %v4639_v53 }
 0x1bb   : > { %7295 = vmatmul.mubr.msk.f32.gmra.mxu1 %vm905_vm1, %v8659_v26  ;;  %7451 = vmatmul.mubr.msk.f32.gmra.mxu0 %vm905_vm1, %v8671_v41  ;;  %v8892_v26 = vpop.f32.mrf.mxu0 }
 0x1bc   : > { %7297 = vmatprep.mubr.msk.f32.mxu1 %vm905_vm1, %v8665_v34  ;;  %7453 = vmatprep.mubr.msk.f32.mxu0 %vm905_vm1, %v8677_v51  ;;  %v4657_v34 = vsel %vm4656_vm3, %v4639_v53, %v4655_v42  ;;  %v4578_v53 = vadd.f32 %v8795_v52, %v4560_v4  ;;  %v4051_v4 = vld [vmem:[#allocation2 + $0xfa] sm:$0xff] }
 0x1bf   : > { %7298 = vmatmul.mubr.msk.f32.gmra.mxu1 %vm905_vm1, %v8671_v41  ;;  %7454 = vmatmul.mubr.msk.f32.gmra.mxu0 %vm905_vm1, %v8683_v59  ;;  %v4036_v41 = vld [vmem:[#allocation2 + $0x4a] sm:$0xff] }
 0x1c0   : > { %7300 = vmatprep.mubr.msk.f32.mxu1 %vm905_vm1, %v8677_v51  ;;  %7456 = vmatprep.mubr.msk.f32.mxu0 %vm905_vm1, %v8689_v8  ;;  %v8896_v51 = vpop.f32.mrf.mxu1 }
 0x1c3   : > { %7301 = vmatmul.mubr.msk.f32.gmra.mxu1 %vm905_vm1, %v8683_v59  ;;  %7457 = vmatmul.mubr.msk.f32.gmra.mxu0 %vm905_vm1, %v8695_v11  ;;  %v4037_v59 = vld [vmem:[#allocation2 + $0x52] sm:$0xff] }
 0x1c4   : > { %7303 = vmatprep.mubr.msk.f32.mxu1 %vm905_vm1, %v8689_v8  ;;  %7459 = vmatprep.mubr.msk.f32.mxu0 %vm905_vm1, %v8701_v16  ;;  %v8899_v8 = vsel %vm4658_vm4, %v4659_v21, %v4657_v34 }
 0x1c7   : > { %7304 = vmatmul.mubr.msk.f32.gmra.mxu1 %vm905_vm1, %v8695_v11  ;;  %7460 = vmatmul.mubr.msk.f32.gmra.mxu0 %vm905_vm1, %v8707_v20 }
 0x1c8   : > { %7306 = vmatprep.mubr.msk.f32.mxu1 %vm905_vm1, %v8701_v16  ;;  %7462 = vmatprep.mubr.msk.f32.mxu0 %vm905_vm1, %v8713_v22 }
 0x1cb   : > { %7307 = vmatmul.mubr.msk.f32.gmra.mxu1 %vm905_vm1, %v8707_v20  ;;  %7463 = vmatmul.mubr.msk.f32.gmra.mxu0 %vm905_vm1, %v8718_v24 }
 0x1cc   : > { %7309 = vmatprep.mubr.msk.f32.mxu1 %vm905_vm1, %v8713_v22  ;;  %7465 = vmatprep.mubr.msk.f32.mxu0 %vm905_vm1, %v3286_v61  ;;  %v4039_v22 = vld [vmem:[#allocation2 + $0x6a] sm:$0xff] }
 0x1cf   : > { %7310 = vmatmul.mubr.msk.f32.gmra.mxu1 %vm905_vm1, %v8718_v24  ;;  %7466 = vmatmul.mubr.msk.f32.gmra.mxu0 %vm905_vm1, %v3287_v7 }
 0x1d0   : > { %7312 = vmatprep.mubr.msk.f32.mxu1 %vm905_vm1, %v3286_v61  ;;  %7468 = vmatprep.mubr.msk.f32.mxu0 %vm905_vm1, %v3288_v5 }
 0x1d3   : > { %7313 = vmatmul.mubr.msk.f32.gmra.mxu1 %vm905_vm1, %v3287_v7  ;;  %7469 = vmatmul.mubr.msk.f32.gmra.mxu0 %vm905_vm1, %v3289_v19  ;;  %v7680_v7 = vld [vmem:[%s8228_s24 + $0xa] sm:$0xff] }
 0x1d4   : > { %7371 = vmatprep.mubr.msk.f32.mxu1 %vm905_vm1, %v2869_v25  ;;  %7527 = vmatprep.mubr.msk.f32.mxu0 %vm905_vm1, %v4034_v30  ;;  %v4584_v5 = vmul.f32 2.0, %v7680_v7 }
 0x1d6   : > { %v4587_v34 = vadd.f32 %v4584_v5, %v4578_v53 }
 0x1d7   : > { %7372 = vmatmul.mubr.msk.f32.vlgmr.msra.gmra.mxu1 %vm905_vm1, %v2870_v55  ;;  %7528 = vmatmul.mubr.msk.f32.vlgmr.msra.gmra.mxu0 %vm905_vm1, %v4035_v3 }
 0x1d8   : > { %7472 = vmatpush3.msra.mxu1 %v8750_v37  ;;  %7374 = vmatprep.mubr.msk.f32.mxu1 %vm905_vm1, %v4034_v30  ;;  %v4518_v37 = vadd.f32 %v8727_v29, %v8254_v62  ;;  %v4535_v29 = vadd.f32 %v8761_v40, %v8263_v1  ;;  %v4517_v62 = vadd.f32 %v8771_v44, %v8263_v1  ;;  %v4044_v1 = vld [vmem:[#allocation2 + $0xaa] sm:$0xff]  ;;  %v4604_v40 = vpop.permute.xlu1 %4603  ;;  %v7681_v30 = vld [vmem:[%s8228_s24 + $0x2] sm:$0xff]  ;;  %s7757_s24 = scalar_lea.vmem %s7756_s25, 8192 }
 0x1d9   : > { %7530 = vmatprep.mubr.msk.f32.mxu0 %vm905_vm1, %v4036_v41  ;;  %7473 = vmatprep.subr.mxu1 %v6589_v9  ;;  %v4583_v42 = vmul.f32 2.0, %v7681_v30  ;;  %v4054_v30 = vld [vmem:[#allocation2 + $0x122] sm:$0xff]  ;;  %p7759_p8 = scmp.lt.s32.totalorder %s7757_s24, %s7751_s15 }
 0x1da   : > { %7474 = vmatpush3.msra.mxu1 %v6589_v9  ;;  %v8901_v11 = vpop.f32.mrf.mxu1  ;;  %v4551_v43 = vadd.f32 %v8782_v46, %v4518_v37  ;;  %v4550_v44 = vadd.f32 %v8805_v58, %v4517_v62  ;;  %v4559_v49 = vadd.f32 %v4556_v63, %v4535_v29  ;;  %v4046_v58 = vld [vmem:[#allocation2 + $0xc2] sm:$0xff]  ;;  %v4047_v9 = vld [vmem:[#allocation2 + $0xca] sm:$0xff]  ;;  %v4050_v62 = vld [vmem:[#allocation2 + $0xf2] sm:$0xff] }
 0x1db   : > { %v8903_v16 = vpop.f32.mrf.mxu0  ;;  %7375 = vmatmul.mubr.msk.f32.gmra.mxu1 %vm905_vm1, %v4035_v3  ;;  %7531 = vmatmul.mubr.msk.f32.gmra.mxu0 %vm905_vm1, %v4037_v59  ;;  %p7760_p10 = por %p7759_p8, %p7758_p7 }
 0x1dc   : > { %7377 = vmatprep.mubr.msk.f32.mxu1 %vm905_vm1, %v4036_v41  ;;  %7533 = vmatprep.mubr.msk.f32.mxu0 %vm905_vm1, %v4038_v17  ;;  %v8909_v18 = vpop.f32.mrf.mxu1  ;;  %v4593_v61 = vadd.f32 %v8285_v13, %v4551_v43  ;;  %v4602_v25 = vpop.permute.xlu1 %4601  ;;  %v4577_v52 = vadd.f32 %v8817_v2, %v4559_v49  ;;  %v4592_v13 = vadd.f32 %v8288_v14, %v4550_v44  ;;  %v4048_v2 = vld [vmem:[#allocation2 + $0xda] sm:$0xff] }
 0x1dd   : > { %v8911_v20 = vpop.f32.mrf.mxu0  ;;  %7575 = vmatprep.subr.msk.mxu1 %vm4670_vm5, %v8899_v8  ;;  %p7761_p0 = pnand %p7760_p10, %p7754_p5 }
 0x1de   : > { %v8915_v23 = vpop.f32.mrf.mxu1  ;;  %v4611_v21 = vadd.f32 %v4604_v40, %v4593_v61  ;;  %v4610_v14 = vadd.f32 %v4602_v25, %v4592_v13 }
 0x1df   : > { %v8917_v24 = vpop.f32.mrf.mxu0  ;;  %7378 = vmatmul.mubr.msk.f32.gmra.mxu1 %vm905_vm1, %v4037_v59  ;;  %7534 = vmatmul.mubr.msk.f32.gmra.mxu0 %vm905_vm1, %v4039_v22 }
 0x1e0   : > { %7380 = vmatprep.mubr.msk.f32.mxu1 %vm905_vm1, %v4038_v17  ;;  %7536 = vmatprep.mubr.msk.f32.mxu0 %vm905_vm1, %v4040_v27  ;;  %v8923_v31 = vpop.f32.mrf.mxu1  ;;  %v4619_v17 = vpop.permute.xlu0 %4618 }
 0x1e1   : > { %v8925_v32 = vpop.f32.mrf.mxu0  ;;  %v4617_v37 = vpop.permute.xlu1 %4616  ;;  %v4626_v47 = vadd.f32 %v4619_v17, %v4587_v34  ;;  %v4629_v15 = vadd.f32 %v4619_v17, %v4611_v21  ;;  %v4055_v34 = vld [vmem:[#allocation2 + $0x12a] sm:$0xff] }
 0x1e2   : > { %v8932_v48 = vpop.f32.mrf.mxu1  ;;  %v4628_v63 = vadd.f32 %v4617_v37, %v4610_v14  ;;  %v4056_v14 = vld [vmem:[#allocation2 + $0x13a] sm:$0xff] }
 0x1e3   : > { %v8934_v54 = vpop.f32.mrf.mxu0  ;;  %7381 = vmatmul.mubr.msk.f32.gmra.mxu1 %vm905_vm1, %v4039_v22  ;;  %7537 = vmatmul.mubr.msk.f32.gmra.mxu0 %vm905_vm1, %v4041_v35  ;;  %v4586_v22 = vadd.f32 %v4583_v42, %v4577_v52  ;;  %v4635_v40 = vmul.f32 %v4629_v15, %v4629_v15 }
 0x1e4   : > { %7383 = vmatprep.mubr.msk.f32.mxu1 %vm905_vm1, %v4040_v27  ;;  %7539 = vmatprep.mubr.msk.f32.mxu0 %vm905_vm1, %v4042_v56  ;;  %v8945_v60 = vpop.f32.mrf.mxu1  ;;  %v4634_v61 = vmul.f32 %v4628_v63, %v4628_v63 }
 0x1e5   : > { %v8947_v0 = vpop.f32.mrf.mxu0  ;;  %v4625_v33 = vadd.f32 %v4617_v37, %v4586_v22 }
 0x1e6   : > { %v8950_v10 = vpop.f32.mrf.mxu1 }
 0x1e7   : > { %v8952_v57 = vpop.f32.mrf.mxu0  ;;  %7384 = vmatmul.mubr.msk.f32.gmra.mxu1 %vm905_vm1, %v4041_v35  ;;  %7540 = vmatmul.mubr.msk.f32.gmra.mxu0 %vm905_vm1, %v4043_v39  ;;  %v4631_v53 = vmul.f32 %v4625_v33, %v4625_v33 }
 0x1e8   : > { %7386 = vmatprep.mubr.msk.f32.mxu1 %vm905_vm1, %v4042_v56  ;;  %7542 = vmatprep.mubr.msk.f32.mxu0 %vm905_vm1, %v4044_v1  ;;  %v8959_v46 = vpop.f32.mrf.mxu1 }
 0x1e9   : > { %v8961_v28 = vpop.f32.mrf.mxu0  ;;  %v9027_v42 = vadd.f32 %v4634_v61, %v4631_v53 }
 0x1ea   : > { %v8966_v12 = vpop.f32.mrf.mxu1 }
 0x1eb   : > { %v8968_v19 = vpop.f32.mrf.mxu0  ;;  %7387 = vmatmul.mubr.msk.f32.gmra.mxu1 %vm905_vm1, %v4043_v39  ;;  %7543 = vmatmul.mubr.msk.f32.gmra.mxu0 %vm905_vm1, %v4045_v6  ;;  %vm4642_vm7 = vcmp.eq.f32.partialorder %v9027_v42, inf  ;;  %vm4644_vm9 = vcmp.eq.f32.partialorder %v9027_v42, 0.0 }
 0x1ec   : > { %7389 = vmatprep.mubr.msk.f32.mxu1 %vm905_vm1, %v4044_v1  ;;  %7545 = vmatprep.mubr.msk.f32.mxu0 %vm905_vm1, %v4046_v58  ;;  %v8977_v55 = vpop.f32.mrf.mxu1  ;;  %v4632_v1 = vmul.f32 %v4626_v47, %v4626_v47 }
 0x1ed   : > { %v8979_v3 = vpop.f32.mrf.mxu0 }
 0x1ee   : > { %v8981_v41 = vpop.f32.mrf.mxu1  ;;  %v9017_v25 = vadd.f32 %v4635_v40, %v4632_v1 }
 0x1ef   : > { %v8983_v59 = vpop.f32.mrf.mxu0  ;;  %7390 = vmatmul.mubr.msk.f32.gmra.mxu1 %vm905_vm1, %v4045_v6  ;;  %7546 = vmatmul.mubr.msk.f32.gmra.mxu0 %vm905_vm1, %v4047_v9  ;;  %v4052_v6 = vld [vmem:[#allocation2 + $0x10a] sm:$0xff] }
 0x1f0   : > { %7392 = vmatprep.mubr.msk.f32.mxu1 %vm905_vm1, %v4046_v58  ;;  %7548 = vmatprep.mubr.msk.f32.mxu0 %vm905_vm1, %v4048_v2  ;;  %v8989_v27 = vpop.f32.mrf.mxu1  ;;  %v4053_v58 = vld [vmem:[#allocation2 + $0x112] sm:$0xff]  ;;  %7670 = vrsqrt.f32 %v9017_v25  ;;  %vm4649_vm6 = vcmp.eq.f32.partialorder %v9017_v25, inf  ;;  %vm4651_vm8 = vcmp.eq.f32.partialorder %v9017_v25, 0.0 }
 0x1f1   : > { %v8991_v35 = vpop.f32.mrf.mxu0  ;;  %7672 = vrsqrt.f32 %v9027_v42 }
 0x1f2   : > { %v8993_v56 = vpop.f32.mrf.mxu1 }
 0x1f3   : > { %v8995_v29 = vpop.f32.mrf.mxu0  ;;  %7393 = vmatmul.mubr.msk.f32.gmra.mxu1 %vm905_vm1, %v4047_v9  ;;  %7549 = vmatmul.mubr.msk.f32.gmra.mxu0 %vm905_vm1, %v4049_v45 }
 0x1f4   : > { %7395 = vmatprep.mubr.msk.f32.mxu1 %vm905_vm1, %v4048_v2  ;;  %7551 = vmatprep.mubr.msk.f32.mxu0 %vm905_vm1, %v4050_v62  ;;  %v9001_v39 = vpop.f32.mrf.mxu1 }
 0x1f5   : > { %v9003_v43 = vpop.f32.mrf.mxu0 }
 0x1f6   : > { %v9005_v44 = vpop.f32.mrf.mxu1 }
 0x1f7   : > { %v9007_v49 = vpop.f32.mrf.mxu0  ;;  %7396 = vmatmul.mubr.msk.f32.gmra.mxu1 %vm905_vm1, %v4049_v45  ;;  %7552 = vmatmul.mubr.msk.f32.gmra.mxu0 %vm905_vm1, %v4051_v4  ;;  %v4057_v45 = vld [vmem:[#allocation2 + $0x142] sm:$0xff] }
 0x1f8   : > { %7398 = vmatprep.mubr.msk.f32.mxu1 %vm905_vm1, %v4050_v62  ;;  %7554 = vmatprep.mubr.msk.f32.mxu0 %vm905_vm1, %v4052_v6  ;;  %v9013_v7 = vpop.f32.mrf.mxu1  ;;  %v4058_v62 = vld [vmem:[#allocation2 + $0x152] sm:$0xff] }
 0x1f9   : > { %v9015_v5 = vpop.f32.mrf.mxu0 }
 0x1fa   : > { %v9019_v52 = vpop.f32.mrf.mxu1 }
 0x1fb   : > { %v9021_v13 = vpop.f32.mrf.mxu0  ;;  %7399 = vmatmul.mubr.msk.f32.gmra.mxu1 %vm905_vm1, %v4051_v4  ;;  %7555 = vmatmul.mubr.msk.f32.gmra.mxu0 %vm905_vm1, %v4053_v58  ;;  %v4059_v4 = vld [vmem:[#allocation2 + $0x15a] sm:$0xff] }
 0x1fc   : > { %10853 = vst [vmem:[#allocation15_spill] sm:$0xff] %v9021_v13  ;;  %7401 = vmatprep.mubr.msk.f32.mxu1 %vm905_vm1, %v4052_v6  ;;  %7557 = vmatprep.mubr.msk.f32.mxu0 %vm905_vm1, %v4054_v30  ;;  %v9029_v9 = vpop.f32.mrf.mxu1  ;;  %v4060_v6 = vld [vmem:[#allocation2 + $0x16a] sm:$0xff] }
 0x1fd   : > { %v9031_v21 = vpop.f32.mrf.mxu0 }
 0x1fe   : > { %10854 = vst [vmem:[#allocation16_spill] sm:$0xff] %v9031_v21  ;;  %v9034_v2 = vpop.f32.mrf.mxu1 }
 0x1ff   : > { %v9036_v17 = vpop.f32.mrf.mxu0  ;;  %7402 = vmatmul.mubr.msk.f32.gmra.mxu1 %vm905_vm1, %v4053_v58  ;;  %7558 = vmatmul.mubr.msk.f32.gmra.mxu0 %vm905_vm1, %v4055_v34  ;;  %v4061_v58 = vld [vmem:[#allocation2 + $0x172] sm:$0xff] }
 0x200   : > { %10855 = vst [vmem:[#allocation17_spill] sm:$0xff] %v9036_v17  ;;  %7404 = vmatprep.mubr.msk.f32.mxu1 %vm905_vm1, %v4054_v30  ;;  %7560 = vmatprep.mubr.msk.f32.mxu0 %vm905_vm1, %v4056_v14  ;;  %v9043_v22 = vpop.f32.mrf.mxu1 }
 0x201   : > { %10856 = vst [vmem:[#allocation18_spill] sm:$0xff] %v9043_v22  ;;  %v9045_v37 = vpop.f32.mrf.mxu0 }
 0x202   : > { %10857 = vst [vmem:[#allocation19_spill] sm:$0xff] %v9045_v37  ;;  %v9047_v47 = vpop.f32.mrf.mxu1 }
 0x203   : > { %v9049_v15 = vpop.f32.mrf.mxu0  ;;  %7405 = vmatmul.mubr.msk.f32.gmra.mxu1 %vm905_vm1, %v4055_v34  ;;  %7561 = vmatmul.mubr.msk.f32.gmra.mxu0 %vm905_vm1, %v4057_v45 }
 0x204   : > { %10858 = vst [vmem:[#allocation20_spill] sm:$0xff] %v9049_v15  ;;  %7407 = vmatprep.mubr.msk.f32.mxu1 %vm905_vm1, %v4056_v14  ;;  %7563 = vmatprep.mubr.msk.f32.mxu0 %vm905_vm1, %v4058_v62  ;;  %v9055_v33 = vpop.f32.mrf.mxu1  ;;  %v4062_v14 = vld [vmem:[#allocation2 + $0x182] sm:$0xff] }
 0x205   : > { %v9057_v63 = vpop.f32.mrf.mxu0 }
 0x206   : > { %10859 = vst [vmem:[#allocation21_spill] sm:$0xff] %v9057_v63  ;;  %v9059_v1 = vpop.f32.mrf.mxu1  ;;  %v4063_v63 = vld [vmem:[#allocation2 + $0x18a] sm:$0xff] }
 0x207   : > { %v9061_v40 = vpop.f32.mrf.mxu0  ;;  %7408 = vmatmul.mubr.msk.f32.gmra.mxu1 %vm905_vm1, %v4057_v45  ;;  %7564 = vmatmul.mubr.msk.f32.gmra.mxu0 %vm905_vm1, %v4059_v4  ;;  %v7671_v45 = vpop.eup %7670 }
 0x208   : > { %10860 = vst [vmem:[#allocation22_spill] sm:$0xff] %v9061_v40  ;;  %7410 = vmatprep.mubr.msk.f32.mxu1 %vm905_vm1, %v4058_v62  ;;  %7566 = vmatprep.mubr.msk.f32.mxu0 %vm905_vm1, %v4060_v6  ;;  %v9067_v53 = vpop.f32.mrf.mxu1  ;;  %v7673_v40 = vpop.eup %7672 }
 0x209   : > { %v9069_v61 = vpop.f32.mrf.mxu0  ;;  %v4641_v17 = vmul.f32 %v7673_v40, %v9027_v42  ;;  %v4645_v40 = vand.u32 2147483648, %v9027_v42 }
 0x20a   : > { %10861 = vst [vmem:[#allocation23_spill] sm:$0xff] %v9069_v61  ;;  %v9071_v30 = vpop.f32.mrf.mxu1  ;;  %v4064_v61 = vld [vmem:[#allocation2 + $0x19a] sm:$0xff] }
 0x20b   : > { %v9073_v34 = vpop.f32.mrf.mxu0  ;;  %7411 = vmatmul.mubr.msk.f32.gmra.mxu1 %vm905_vm1, %v4059_v4  ;;  %7567 = vmatmul.mubr.msk.f32.gmra.mxu0 %vm905_vm1, %v4061_v58  ;;  %v4648_v4 = vmul.f32 %v7671_v45, %v9017_v25  ;;  %v4643_v22 = vsel %vm4642_vm7, %v9027_v42, %v4641_v17  ;;  %v3649_v42 = vld [vmem:[#allocation2 + $0x51] sm:$0xff] }
 0x20c   : > { %10862 = vst [vmem:[#allocation24_spill] sm:$0xff] %v9073_v34  ;;  %7413 = vmatprep.mubr.msk.f32.mxu1 %vm905_vm1, %v4060_v6  ;;  %7569 = vmatprep.mubr.msk.f32.mxu0 %vm905_vm1, %v4062_v14  ;;  %v9079_v62 = vpop.f32.mrf.mxu1  ;;  %v4065_v6 = vld [vmem:[#allocation2 + $0x1a2] sm:$0xff] }
 0x20d   : > { %v9081_v38 = vpop.f32.mrf.mxu0 }
 0x20e   : > { %10863 = vst [vmem:[#allocation25_spill] sm:$0xff] %v9081_v38  ;;  %v9083_v15 = vpop.f32.mrf.mxu1 }
 0x20f   : > { %v9085_v34 = vpop.f32.mrf.mxu0  ;;  %7414 = vmatmul.mubr.msk.f32.gmra.mxu1 %vm905_vm1, %v4061_v58  ;;  %7570 = vmatmul.mubr.msk.f32.gmra.mxu0 %vm905_vm1, %v4063_v63 }
 0x210   : > { %10864 = vst [vmem:[#allocation26_spill] sm:$0xff] %v9085_v34  ;;  %7416 = vmatprep.mubr.msk.f32.mxu1 %vm905_vm1, %v4062_v14  ;;  %7572 = vmatprep.mubr.msk.f32.mxu0 %vm905_vm1, %v4064_v61  ;;  %v9093_v38 = vpop.f32.mrf.mxu1  ;;  %v4652_v34 = vand.u32 2147483648, %v9017_v25  ;;  %v3646_v14 = vld [vmem:[#allocation2 + $0x31] sm:$0xff]  ;;  %v4650_v61 = vsel %vm4649_vm6, %v9017_v25, %v4648_v4  ;;  %v3648_v25 = vld [vmem:[#allocation2 + $0x49] sm:$0xff] }
 0x211   : > { %v9095_v37 = vpop.f32.mrf.mxu0 }
 0x212   : > { %10865 = vst [vmem:[#allocation27_spill] sm:$0xff] %v9095_v37  ;;  %v9100_v58 = vpop.f32.mrf.mxu1 }
 0x213   : > { %v9102_v45 = vpop.f32.mrf.mxu0  ;;  %7417 = vmatmul.mubr.msk.f32.gmra.mxu1 %vm905_vm1, %v4063_v63  ;;  %7573 = vmatmul.mubr.msk.f32.gmra.mxu0 %vm905_vm1, %v4065_v6  ;;  %v3647_v63 = vld [vmem:[#allocation2 + $0x39] sm:$0xff]  ;;  %v4646_v6 = vsel %vm4644_vm9, %v4645_v40, %v4643_v22 }
 0x214   : > { %10866 = vst [vmem:[#allocation28_spill] sm:$0xff] %v9102_v45  ;;  %7475 = vmatprep.mubr.msk.f32.mxu1 %vm905_vm1, %v3646_v14  ;;  %v9110_v37 = vpop.f32.mrf.mxu1  ;;  %v4653_v45 = vsel %vm4651_vm8, %v4652_v34, %v4650_v61 }
 0x215   : > { %v9112_v21 = vpop.f32.mrf.mxu0 }
 0x216   : > { %v9116_v13 = vpop.f32.mrf.mxu1 }
 0x217   : > { %v9118_v4 = vpop.f32.mrf.mxu0  ;;  %7476 = vmatmul.mubr.msk.f32.vlgmr.msra.gmra.mxu1 %vm905_vm1, %v3647_v63  ;;  %v3650_v63 = vld [vmem:[#allocation2 + $0x61] sm:$0xff] }
 0x218   : > { %10867 = vst [vmem:[#allocation29_spill] sm:$0xff] %v9118_v4  ;;  %7576 = vmatpush3.msk.msra.mxu1 %vm4670_vm5, %v8899_v8  ;;  %7478 = vmatprep.mubr.msk.f32.mxu1 %vm905_vm1, %v3648_v25  ;;  %v1546_v14 = vpop.f32.mrf.mxu1  ;;  %v3652_v25 = vld [vmem:[#allocation2 + $0x79] sm:$0xff] }
 0x219   : > { %7577 = vmatprep.subr.mxu1 %v4653_v45  ;;  %v9125_v17 = vadd.f32 %v1546_v14, %v8896_v51  ;;  %v9127_v34 = vpop.f32.mrf.mxu0  ;;  %v3651_v51 = vld [vmem:[#allocation2 + $0x69] sm:$0xff] }
 0x21a   : > { %7578 = vmatpush3.msra.mxu1 %v4653_v45  ;;  %10868 = vst [vmem:[#allocation30_spill] sm:$0xff] %v9127_v34 }
 0x21b   : > { %7579 = vmatprep.subr.mxu1 %v4646_v6  ;;  %v7168_v61 = vpop.f32.mrf.mxu1  ;;  %7479 = vmatmul.mubr.msk.f32.gmra.mxu1 %vm905_vm1, %v3649_v42  ;;  %v9137_v45 = vpop.f32.mrf.mxu0  ;;  %v3653_v42 = vld [vmem:[#allocation2 + $0x81] sm:$0xff] }
 0x21c   : > { %v9131_v4 = vadd.f32 %v7168_v61, %v8901_v11  ;;  %7580 = vmatpush3.msra.mxu1 %v4646_v6  ;;  %7481 = vmatprep.mubr.msk.f32.mxu1 %vm905_vm1, %v3650_v63  ;;  %10869 = vst [vmem:[#allocation31_spill] sm:$0xff] %v9137_v45  ;;  %v3654_v63 = vld [vmem:[#allocation2 + $0x91] sm:$0xff] }
 0x21d   : > { %v1556_v8 = vpop.f32.mrf.mxu1  ;;  %v9147_v61 = vpop.f32.mrf.mxu0 }
 0x21e   : > { %v9135_v22 = vadd.f32 %v1556_v8, %v8909_v18  ;;  %10870 = vst [vmem:[#allocation32_spill] sm:$0xff] %v9147_v61 }
 0x21f   : > { %v7171_v40 = vpop.f32.mrf.mxu1  ;;  %7482 = vmatmul.mubr.msk.f32.gmra.mxu1 %vm905_vm1, %v3651_v51 }
 0x220   : > { %v9141_v14 = vadd.f32 %v7171_v40, %v8915_v23  ;;  %7484 = vmatprep.mubr.msk.f32.mxu1 %vm905_vm1, %v3652_v25  ;;  %v3655_v40 = vld [vmem:[#allocation2 + $0x99] sm:$0xff]  ;;  %v9157_v25 = vpop.f32.mrf.mxu0 }
 0x221   : > { %v1566_v11 = vpop.f32.mrf.mxu1  ;;  %10871 = vst [vmem:[#allocation33_spill] sm:$0xff] %v9157_v25 }
 0x222   : > { %v9145_v6 = vadd.f32 %v1566_v11, %v8923_v31  ;;  %v3656_v11 = vld [vmem:[#allocation2 + $0xa9] sm:$0xff] }
 0x223   : > { %v7174_v18 = vpop.f32.mrf.mxu1  ;;  %7485 = vmatmul.mubr.msk.f32.gmra.mxu1 %vm905_vm1, %v3653_v42 }
 0x224   : > { %v9151_v8 = vadd.f32 %v7174_v18, %v8932_v48  ;;  %7487 = vmatprep.mubr.msk.f32.mxu1 %vm905_vm1, %v3654_v63  ;;  %v3657_v18 = vld [vmem:[#allocation2 + $0xb1] sm:$0xff]  ;;  %v9167_v63 = vpop.f32.mrf.mxu0 }
 0x225   : > { %v1576_v23 = vpop.f32.mrf.mxu1  ;;  %10872 = vst [vmem:[#allocation34_spill] sm:$0xff] %v9167_v63 }
 0x226   : > { %v9155_v51 = vadd.f32 %v1576_v23, %v8945_v60  ;;  %v3658_v23 = vld [vmem:[#allocation2 + $0xc1] sm:$0xff] }
 0x227   : > { %v7177_v31 = vpop.f32.mrf.mxu1  ;;  %7488 = vmatmul.mubr.msk.f32.gmra.mxu1 %vm905_vm1, %v3655_v40 }
 0x228   : > { %v9161_v61 = vadd.f32 %v7177_v31, %v8950_v10  ;;  %7490 = vmatprep.mubr.msk.f32.mxu1 %vm905_vm1, %v3656_v11  ;;  %v3659_v31 = vld [vmem:[#allocation2 + $0xc9] sm:$0xff]  ;;  %v9177_v11 = vpop.f32.mrf.mxu0 }
 0x229   : > { %v1586_v48 = vpop.f32.mrf.mxu1  ;;  %10873 = vst [vmem:[#allocation35_spill] sm:$0xff] %v9177_v11 }
 0x22a   : > { %v9165_v42 = vadd.f32 %v1586_v48, %v8959_v46  ;;  %v3660_v48 = vld [vmem:[#allocation2 + $0xd9] sm:$0xff] }
 0x22b   : > { %v7180_v60 = vpop.f32.mrf.mxu1  ;;  %7491 = vmatmul.mubr.msk.f32.gmra.mxu1 %vm905_vm1, %v3657_v18 }
 0x22c   : > { %v9171_v25 = vadd.f32 %v7180_v60, %v8966_v12  ;;  %7493 = vmatprep.mubr.msk.f32.mxu1 %vm905_vm1, %v3658_v23  ;;  %v3661_v60 = vld [vmem:[#allocation2 + $0xe1] sm:$0xff]  ;;  %v9187_v23 = vpop.f32.mrf.mxu0 }
 0x22d   : > { %v1596_v10 = vpop.f32.mrf.mxu1  ;;  %10874 = vst [vmem:[#allocation36_spill] sm:$0xff] %v9187_v23 }
 0x22e   : > { %v9175_v40 = vadd.f32 %v1596_v10, %v8977_v55  ;;  %v3662_v10 = vld [vmem:[#allocation2 + $0xf1] sm:$0xff] }
 0x22f   : > { %v7183_v46 = vpop.f32.mrf.mxu1  ;;  %7494 = vmatmul.mubr.msk.f32.gmra.mxu1 %vm905_vm1, %v3659_v31 }
 0x230   : > { %v9181_v63 = vadd.f32 %v7183_v46, %v8981_v41  ;;  %7496 = vmatprep.mubr.msk.f32.mxu1 %vm905_vm1, %v3660_v48  ;;  %v3663_v46 = vld [vmem:[#allocation2 + $0xf9] sm:$0xff]  ;;  %v9197_v48 = vpop.f32.mrf.mxu0 }
 0x231   : > { %v1606_v12 = vpop.f32.mrf.mxu1  ;;  %10875 = vst [vmem:[#allocation37_spill] sm:$0xff] %v9197_v48 }
 0x232   : > { %v9185_v18 = vadd.f32 %v1606_v12, %v8989_v27  ;;  %v3664_v12 = vld [vmem:[#allocation2 + $0x109] sm:$0xff] }
 0x233   : > { %v7186_v55 = vpop.f32.mrf.mxu1  ;;  %7497 = vmatmul.mubr.msk.f32.gmra.mxu1 %vm905_vm1, %v3661_v60 }
 0x234   : > { %v9191_v11 = vadd.f32 %v7186_v55, %v8993_v56  ;;  %7499 = vmatprep.mubr.msk.f32.mxu1 %vm905_vm1, %v3662_v10  ;;  %v3665_v55 = vld [vmem:[#allocation2 + $0x111] sm:$0xff]  ;;  %v9207_v10 = vpop.f32.mrf.mxu0 }
 0x235   : > { %v1616_v41 = vpop.f32.mrf.mxu1  ;;  %10876 = vst [vmem:[#allocation38_spill] sm:$0xff] %v9207_v10  ;;  %v3670_v10 = vld [vmem:[#allocation2 + $0x151] sm:$0xff] }
 0x236   : > { %v9195_v31 = vadd.f32 %v1616_v41, %v9001_v39  ;;  %v3666_v41 = vld [vmem:[#allocation2 + $0x121] sm:$0xff] }
 0x237   : > { %v7189_v27 = vpop.f32.mrf.mxu1  ;;  %7500 = vmatmul.mubr.msk.f32.gmra.mxu1 %vm905_vm1, %v3663_v46  ;;  %v3667_v46 = vld [vmem:[#allocation2 + $0x129] sm:$0xff] }
 0x238   : > { %v9201_v23 = vadd.f32 %v7189_v27, %v9005_v44  ;;  %7502 = vmatprep.mubr.msk.f32.mxu1 %vm905_vm1, %v3664_v12  ;;  %v9216_v27 = vpop.f32.mrf.mxu0 }
 0x239   : > { %v1626_v56 = vpop.f32.mrf.mxu1  ;;  %10877 = vst [vmem:[#allocation39_spill] sm:$0xff] %v9216_v27 }
 0x23a   : > { %v9205_v60 = vadd.f32 %v1626_v56, %v9013_v7  ;;  %v3668_v7 = vld [vmem:[#allocation2 + $0x139] sm:$0xff] }
 0x23b   : > { %v7192_v39 = vpop.f32.mrf.mxu1  ;;  %7503 = vmatmul.mubr.msk.f32.gmra.mxu1 %vm905_vm1, %v3665_v55 }
 0x23c   : > { %v9211_v48 = vadd.f32 %v7192_v39, %v9019_v52  ;;  %7505 = vmatprep.mubr.msk.f32.mxu1 %vm905_vm1, %v3666_v41  ;;  %v3669_v52 = vld [vmem:[#allocation2 + $0x141] sm:$0xff]  ;;  %v9225_v39 = vpop.f32.mrf.mxu0 }
 0x23d   : > { %v9214_v44 = vpop.f32.mrf.mxu1  ;;  %10878 = vst [vmem:[#allocation40_spill] sm:$0xff] %v9225_v39  ;;  %v3672_v39 = vld [vmem:[#allocation2 + $0x169] sm:$0xff] }
 0x23f   : > { %v7195_v12 = vpop.f32.mrf.mxu1  ;;  %7506 = vmatmul.mubr.msk.f32.gmra.mxu1 %vm905_vm1, %v3667_v46 }
 0x240   : > { %v9220_v56 = vadd.f32 %v7195_v12, %v9034_v2  ;;  %7508 = vmatprep.mubr.msk.f32.mxu1 %vm905_vm1, %v3668_v7  ;;  %v3671_v12 = vld [vmem:[#allocation2 + $0x159] sm:$0xff]  ;;  %v9235_v7 = vpop.f32.mrf.mxu0 }
 0x241   : > { %v9223_v55 = vpop.f32.mrf.mxu1  ;;  %10879 = vst [vmem:[#allocation41_spill] sm:$0xff] %v9235_v7 }
 0x243   : > { %v7198_v41 = vpop.f32.mrf.mxu1  ;;  %7509 = vmatmul.mubr.msk.f32.gmra.mxu1 %vm905_vm1, %v3669_v52 }
 0x244   : > { %v9229_v27 = vadd.f32 %v7198_v41, %v9047_v47  ;;  %7511 = vmatprep.mubr.msk.f32.mxu1 %vm905_vm1, %v3670_v10  ;;  %v3673_v10 = vld [vmem:[#allocation2 + $0x171] sm:$0xff]  ;;  %v9245_v41 = vpop.f32.mrf.mxu0 }
 0x245   : > { %v1656_v46 = vpop.f32.mrf.mxu1  ;;  %10880 = vst [vmem:[#allocation42_spill] sm:$0xff] %v9245_v41 }
 0x246   : > { %v9233_v2 = vadd.f32 %v1656_v46, %v9055_v33  ;;  %v3674_v46 = vld [vmem:[#allocation2 + $0x181] sm:$0xff] }
 0x247   : > { %v7201_v45 = vpop.f32.mrf.mxu1  ;;  %7512 = vmatmul.mubr.msk.f32.gmra.mxu1 %vm905_vm1, %v3671_v12  ;;  %v3675_v12 = vld [vmem:[#allocation2 + $0x189] sm:$0xff] }
 0x248   : > { %v9239_v34 = vadd.f32 %v7201_v45, %v9059_v1  ;;  %7514 = vmatprep.mubr.msk.f32.mxu1 %vm905_vm1, %v3672_v39  ;;  %v3676_v45 = vld [vmem:[#allocation2 + $0x199] sm:$0xff] }
 0x249   : > { %v1666_v47 = vpop.f32.mrf.mxu1 }
 0x24a   : > { %v9243_v52 = vadd.f32 %v1666_v47, %v9067_v53  ;;  %v9255_v53 = vpop.f32.mrf.mxu0 }
 0x24b   : > { %v7204_v33 = vpop.f32.mrf.mxu1  ;;  %7515 = vmatmul.mubr.msk.f32.gmra.mxu1 %vm905_vm1, %v3673_v10 }
 0x24c   : > { %v9249_v7 = vadd.f32 %v7204_v33, %v9071_v30  ;;  %7517 = vmatprep.mubr.msk.f32.mxu1 %vm905_vm1, %v3674_v46  ;;  %v3677_v30 = vld [vmem:[#allocation2 + $0x1a1] sm:$0xff] }
 0x24d   : > { %v1676_v1 = vpop.f32.mrf.mxu1  ;;  %v4661_v33 = vld [vmem:[%s10817_s6] sm:$0xff] }
 0x24e   : > { %v9253_v39 = vadd.f32 %v1676_v1, %v9079_v62  ;;  %v1552_v62 = vadd.f32 %v9116_v13, %v8885_v50  ;;  %v9270_v1 = vpop.f32.mrf.mxu0 }
 0x24f   : > { %v7207_v47 = vpop.f32.mrf.mxu1  ;;  %7518 = vmatmul.mubr.msk.f32.gmra.mxu1 %vm905_vm1, %v3675_v12  ;;  %10881 = vst [vmem:[#allocation43_spill] sm:$0xff] %v9270_v1  ;;  %v2064_v1 = vadd.f32 %v8903_v16, %v9131_v4  ;;  %v2065_v16 = vadd.f32 %v8925_v32, %v9145_v6  ;;  %v2070_v32 = vadd.f32 %v8952_v57, %v9161_v61 }
 0x250   : > { %v9259_v41 = vadd.f32 %v7207_v47, %v9083_v15  ;;  %7520 = vmatprep.mubr.msk.f32.mxu1 %vm905_vm1, %v3676_v45  ;;  %v4662_v45 = vld [vmem:[%s10817_s6 + $0x8] sm:$0xff]  ;;  %v9284_v13 = vpop.f32.mrf.mxu0  ;;  %v2071_v57 = vadd.f32 %v8979_v3, %v9175_v40  ;;  %v2076_v3 = vadd.f32 %v8995_v29, %v9191_v11  ;;  %v1637_v29 = vadd.f32 %v9214_v44, %v9029_v9  ;;  %v10884_v9 = vld [vmem:[#allocation16_spill] sm:$0xff] }
 0x251   : > { %v1686_v10 = vpop.f32.mrf.mxu1 }
 0x252   : > { %v9268_v46 = vadd.f32 %v1686_v10, %v9093_v38  ;;  %v2062_v38 = vadd.f32 %v8881_v36, %v1552_v62  ;;  %v2063_v62 = vadd.f32 %v8911_v20, %v9135_v22  ;;  %v2068_v20 = vadd.f32 %v8934_v54, %v9151_v8 }
 0x253   : > { %v7210_v12 = vpop.f32.mrf.mxu1  ;;  %7521 = vmatmul.mubr.msk.f32.gmra.mxu1 %vm905_vm1, %v3677_v30  ;;  %v2069_v54 = vadd.f32 %v8961_v28, %v9165_v42  ;;  %v2074_v28 = vadd.f32 %v8983_v59, %v9181_v63  ;;  %v2075_v59 = vadd.f32 %v9003_v43, %v9195_v31  ;;  %v10882_v43 = vld [vmem:[#allocation15_spill] sm:$0xff]  ;;  %v2079_v44 = vadd.f32 %v10884_v9, %v1637_v29  ;;  %v10889_v9 = vld [vmem:[#allocation22_spill] sm:$0xff] }
 0x254   : > { %v9274_v15 = vadd.f32 %v7210_v12, %v9100_v58  ;;  %7581 = vmatprep.mubr.msk.f32.mxu1 %vm4663_vm10, %v4661_v33  ;;  %v2061_v58 = vadd.f32 %v8892_v26, %v9125_v17  ;;  %v2066_v26 = vadd.f32 %v8917_v24, %v9141_v14  ;;  %v2067_v24 = vadd.f32 %v8947_v0, %v9155_v51 }
 0x255   : > { %v1696_v47 = vpop.f32.mrf.mxu1  ;;  %v2072_v0 = vadd.f32 %v8968_v19, %v9171_v25  ;;  %v2073_v19 = vadd.f32 %v8991_v35, %v9185_v18  ;;  %v2078_v35 = vadd.f32 %v9007_v49, %v9201_v23  ;;  %v2080_v31 = vadd.f32 %v10882_v43, %v9211_v48  ;;  %v10883_v23 = vld [vmem:[#allocation18_spill] sm:$0xff] }
 0x256   : > { %v9281_v50 = vadd.f32 %v1696_v47, %v9110_v37  ;;  %v9295_v37 = vpop.f32.mrf.mxu0 }
 0x257   : > { %v7269_v10 = vpop.f32.mrf.mxu1  ;;  %7582 = vmatmul.mubr.msk.f32.vlgmr.msra.gmra.mxu1 %vm4663_vm10, %v4662_v45 }
 0x258   : > { %v9287_v30 = vadd.f32 %v7269_v10, %v2062_v38  ;;  %v9305_v17 = vpop.f32.mrf.mxu0 }
 0x259   : > { %v2290_v33 = vpop.f32.mrf.mxu1 }
 0x25a   : > { %v9291_v12 = vadd.f32 %v2290_v33, %v2061_v58  ;;  %v9315_v22 = vpop.f32.mrf.mxu0 }
 0x25b   : > { %v7272_v47 = vpop.f32.mrf.mxu1 }
 0x25c   : > { %v9297_v36 = vadd.f32 %v7272_v47, %v2064_v1  ;;  %v9325_v6 = vpop.f32.mrf.mxu0 }
 0x25d   : > { %v2300_v45 = vpop.f32.mrf.mxu1 }
 0x25e   : > { %v9301_v38 = vadd.f32 %v2300_v45, %v2063_v62  ;;  %v9335_v51 = vpop.f32.mrf.mxu0 }
 0x25f   : > { %v7275_v10 = vpop.f32.mrf.mxu1 }
 0x260   : > { %v9307_v58 = vadd.f32 %v7275_v10, %v2066_v26  ;;  %v9345_v42 = vpop.f32.mrf.mxu0 }
 0x261   : > { %v2310_v4 = vpop.f32.mrf.mxu1 }
 0x262   : > { %v9311_v1 = vadd.f32 %v2310_v4, %v2065_v16  ;;  %v9355_v40 = vpop.f32.mrf.mxu0 }
 0x263   : > { %v7278_v33 = vpop.f32.mrf.mxu1 }
 0x264   : > { %v9317_v47 = vadd.f32 %v7278_v33, %v2068_v20  ;;  %v9365_v18 = vpop.f32.mrf.mxu0 }
 0x265   : > { %v2320_v14 = vpop.f32.mrf.mxu1 }
 0x266   : > { %v9321_v62 = vadd.f32 %v2320_v14, %v2067_v24 }
 0x267   : > { %v7281_v45 = vpop.f32.mrf.mxu1 }
 0x268   : > { %v9327_v26 = vadd.f32 %v7281_v45, %v2070_v32 }
 0x269   : > { %v2330_v8 = vpop.f32.mrf.mxu1 }
 0x26a   : > { %v9331_v10 = vadd.f32 %v2330_v8, %v2069_v54 }
 0x26b   : > { %v7284_v16 = vpop.f32.mrf.mxu1 }
 0x26c   : > { %v9337_v4 = vadd.f32 %v7284_v16, %v2072_v0  ;;  %v2077_v0 = vadd.f32 %v9015_v5, %v9205_v60  ;;  %v10885_v5 = vld [vmem:[#allocation17_spill] sm:$0xff] }
 0x26d   : > { %v2340_v61 = vpop.f32.mrf.mxu1  ;;  %v2082_v60 = vadd.f32 %v10885_v5, %v9220_v56  ;;  %v10888_v56 = vld [vmem:[#allocation21_spill] sm:$0xff] }
 0x26e   : > { %v9341_v20 = vadd.f32 %v2340_v61, %v2071_v57  ;;  %v9377_v61 = vpop.f32.mrf.mxu0 }
 0x26f   : > { %v7287_v33 = vpop.f32.mrf.mxu1 }
 0x270   : > { %v9347_v24 = vadd.f32 %v7287_v33, %v2074_v28  ;;  %v1647_v28 = vadd.f32 %v9223_v55, %v10883_v23  ;;  %v10887_v55 = vld [vmem:[#allocation20_spill] sm:$0xff] }
 0x271   : > { %v2350_v25 = vpop.f32.mrf.mxu1 }
 0x272   : > { %v9351_v14 = vadd.f32 %v2350_v25, %v2073_v19 }
 0x273   : > { %v7290_v32 = vpop.f32.mrf.mxu1 }
 0x274   : > { %v9357_v45 = vadd.f32 %v7290_v32, %v2076_v3  ;;  %v9388_v3 = vpop.f32.mrf.mxu0 }
 0x275   : > { %v2360_v63 = vpop.f32.mrf.mxu1 }
 0x276   : > { %v9361_v54 = vadd.f32 %v2360_v63, %v2075_v59  ;;  %v10886_v59 = vld [vmem:[#allocation19_spill] sm:$0xff]  ;;  %v9397_v29 = vpop.f32.mrf.mxu0 }
 0x277   : > { %v7293_v8 = vpop.f32.mrf.mxu1  ;;  %v2081_v63 = vadd.f32 %v10886_v59, %v1647_v28  ;;  %v2086_v28 = vadd.f32 %v10889_v9, %v9239_v34  ;;  %v10892_v34 = vld [vmem:[#allocation25_spill] sm:$0xff] }
 0x278   : > { %v9369_v11 = vadd.f32 %v7293_v8, %v2078_v35 }
 0x279   : > { %v2370_v16 = vpop.f32.mrf.mxu1 }
 0x27a   : > { %v9373_v57 = vadd.f32 %v2370_v16, %v2077_v0  ;;  %v2084_v0 = vadd.f32 %v10887_v55, %v9229_v27  ;;  %v10890_v27 = vld [vmem:[#allocation23_spill] sm:$0xff] }
 0x27b   : > { %v7296_v49 = vpop.f32.mrf.mxu1 }
 0x27c   : > { %v9381_v33 = vadd.f32 %v7296_v49, %v2080_v31  ;;  %v2083_v31 = vadd.f32 %v10888_v56, %v9233_v2 }
 0x27d   : > { %v2380_v19 = vpop.f32.mrf.mxu1 }
 0x27e   : > { %v9384_v25 = vadd.f32 %v2380_v19, %v2079_v44  ;;  %v9407_v44 = vpop.f32.mrf.mxu0 }
 0x27f   : > { %v7299_v32 = vpop.f32.mrf.mxu1 }
 0x280   : > { %v9390_v48 = vadd.f32 %v7299_v32, %v2082_v60  ;;  %v2085_v60 = vadd.f32 %v10890_v27, %v9243_v52 }
 0x281   : > { %v2390_v35 = vpop.f32.mrf.mxu1 }
 0x282   : > { %v9393_v8 = vadd.f32 %v2390_v35, %v2081_v63  ;;  %v10891_v63 = vld [vmem:[#allocation24_spill] sm:$0xff]  ;;  %v9417_v35 = vpop.f32.mrf.mxu0 }
 0x283   : > { %v7302_v16 = vpop.f32.mrf.mxu1  ;;  %v2088_v2 = vadd.f32 %v10891_v63, %v9249_v7  ;;  %v10894_v7 = vld [vmem:[#allocation27_spill] sm:$0xff]  ;;  %v10895_v63 = vld [vmem:[#allocation28_spill] sm:$0xff] }
 0x284   : > { %v9399_v43 = vadd.f32 %v7302_v16, %v2084_v0  ;;  %v2087_v16 = vadd.f32 %v10892_v34, %v9253_v39  ;;  %v9427_v9 = vpop.f32.mrf.mxu0  ;;  %v2089_v27 = vadd.f32 %v10894_v7, %v9268_v46  ;;  %v2092_v39 = vadd.f32 %v10895_v63, %v9274_v15  ;;  %v10897_v7 = vld [vmem:[#allocation30_spill] sm:$0xff] }
 0x285   : > { %v2400_v49 = vpop.f32.mrf.mxu1 }
 0x286   : > { %v9403_v23 = vadd.f32 %v2400_v49, %v2083_v31  ;;  %v10893_v49 = vld [vmem:[#allocation26_spill] sm:$0xff] }
 0x287   : > { %v7305_v19 = vpop.f32.mrf.mxu1  ;;  %v2090_v52 = vadd.f32 %v10893_v49, %v9259_v41  ;;  %v2091_v41 = vadd.f32 %v9112_v21, %v9281_v50  ;;  %v10896_v49 = vld [vmem:[#allocation29_spill] sm:$0xff]  ;;  %v4750_v21 = vld [vmem:[%s10818_s7 + $0x8] sm:$0xff] }
 0x288   : > { %v9409_v5 = vadd.f32 %v7305_v19, %v2086_v28 }
 0x289   : > { %v2410_v32 = vpop.f32.mrf.mxu1 }
 0x28a   : > { %v9413_v59 = vadd.f32 %v2410_v32, %v2085_v60 }
 0x28b   : > { %v7308_v55 = vpop.f32.mrf.mxu1 }
 0x28c   : > { %v9419_v0 = vadd.f32 %v7308_v55, %v2088_v2  ;;  %v9437_v2 = vpop.f32.mrf.mxu0 }
 0x28d   : > { %v2420_v56 = vpop.f32.mrf.mxu1 }
 0x28e   : > { %v9423_v31 = vadd.f32 %v2420_v56, %v2087_v16  ;;  %v4751_v56 = vld [vmem:[%s10818_s7 + $0x10] sm:$0x3]  ;;  %v9451_v15 = vpop.f32.mrf.mxu0 }
 0x28f   : > { %v7311_v28 = vpop.f32.mrf.mxu1  ;;  %7584 = vmatprep.subr.msk.mxu1 %vm4670_vm5, %v4751_v56 }
 0x290   : > { %v9429_v19 = vadd.f32 %v7311_v28, %v2090_v52  ;;  %v2838_v52 = vadd.f32 %v10896_v49, %v9287_v30  ;;  %7585 = vmatpush3.msk.msra.mxu1 %vm4670_vm5, %v4751_v56  ;;  %v4749_v30 = vld [vmem:[%s10818_s7] sm:$0xff] }
 0x291   : > { %v2430_v60 = vpop.f32.mrf.mxu1  ;;  %7586 = vmatprep.subr.mxu1 %v4750_v21 }
 0x292   : > { %v9433_v32 = vadd.f32 %v2430_v60, %v2089_v27  ;;  %v2837_v27 = vadd.f32 %v10897_v7, %v9291_v12  ;;  %7587 = vmatpush3.msra.mxu1 %v4750_v21  ;;  %v10900_v12 = vld [vmem:[#allocation32_spill] sm:$0xff]  ;;  %v10903_v7 = vld [vmem:[#allocation33_spill] sm:$0xff] }
 0x293   : > { %v7314_v55 = vpop.f32.mrf.mxu1  ;;  %7588 = vmatprep.subr.mxu1 %v4749_v30  ;;  %v2839_v49 = vadd.f32 %v10900_v12, %v9301_v38  ;;  %v10906_v38 = vld [vmem:[#allocation35_spill] sm:$0xff] }
 0x294   : > { %v9439_v34 = vadd.f32 %v7314_v55, %v2092_v39  ;;  %v10898_v39 = vld [vmem:[#allocation31_spill] sm:$0xff]  ;;  %7589 = vmatpush3.msra.mxu1 %v4749_v30  ;;  %v10904_v30 = vld [vmem:[#allocation34_spill] sm:$0xff]  ;;  %v2844_v12 = vadd.f32 %v10906_v38, %v9317_v47 }
 0x295   : > { %v2440_v16 = vpop.f32.mrf.mxu1  ;;  %v2840_v55 = vadd.f32 %v10898_v39, %v9297_v36  ;;  %v10910_v47 = vld [vmem:[#allocation38_spill] sm:$0xff] }
 0x296   : > { %v9446_v46 = vadd.f32 %v2440_v16, %v2091_v41  ;;  %v9468_v41 = vpop.f32.mrf.mxu0  ;;  %v2845_v38 = vadd.f32 %v10910_v47, %v9331_v10 }
 0x297   : > { %v7373_v28 = vpop.f32.mrf.mxu1 }
 0x298   : > { %v9457_v50 = vadd.f32 %v7373_v28, %v2838_v52  ;;  %v10901_v52 = vmov 0.0  }
 0x299   : > { %v3066_v60 = vpop.f32.mrf.mxu1  ;;  %7608 = vmatprep.subr.mxu1 %v10901_v52 }
 0x29a   : > { %v9464_v63 = vadd.f32 %v3066_v60, %v2837_v27  ;;  %v2842_v27 = vadd.f32 %v10903_v7, %v9307_v58  ;;  %v9479_v60 = vpop.f32.mrf.mxu0  ;;  %v10907_v58 = vld [vmem:[#allocation36_spill] sm:$0xff] }
 0x29b   : > { %v7376_v16 = vpop.f32.mrf.mxu1  ;;  %v2843_v7 = vadd.f32 %v10907_v58, %v9321_v62 }
 0x29c   : > { %v9470_v56 = vadd.f32 %v7376_v16, %v2840_v55  ;;  %v2841_v55 = vadd.f32 %v10904_v30, %v9311_v1  ;;  %v9489_v52 = vpop.f32.mrf.mxu0 }
 0x29d   : > { %v3076_v28 = vpop.f32.mrf.mxu1 }
 0x29e   : > { %10899 = vst [vmem:[#allocation15_spill] sm:$0xff] %v9470_v56  ;;  %v9475_v21 = vadd.f32 %v3076_v28, %v2839_v49  ;;  %v9499_v30 = vpop.f32.mrf.mxu0 }
 0x29f   : > { %v7379_v36 = vpop.f32.mrf.mxu1 }
 0x2a0   : > { %10902 = vst [vmem:[#allocation18_spill] sm:$0xff] %v9475_v21  ;;  %v9481_v39 = vadd.f32 %v7379_v36, %v2842_v27  ;;  %v10909_v36 = vld [vmem:[#allocation37_spill] sm:$0xff]  ;;  %v9509_v58 = vpop.f32.mrf.mxu0 }
 0x2a1   : > { %v3086_v16 = vpop.f32.mrf.mxu1  ;;  %v2846_v1 = vadd.f32 %v10909_v36, %v9327_v26  ;;  %v10913_v26 = vld [vmem:[#allocation40_spill] sm:$0xff] }
 0x2a2   : > { %v9485_v56 = vadd.f32 %v3086_v16, %v2841_v55  ;;  %v2847_v36 = vadd.f32 %v10913_v26, %v9341_v20  ;;  %v9519_v47 = vpop.f32.mrf.mxu0  ;;  %v2852_v20 = vadd.f32 %v9255_v53, %v9357_v45  ;;  %v2853_v53 = vadd.f32 %v9295_v37, %v9373_v57 }
 0x2a3   : > { %v7382_v49 = vpop.f32.mrf.mxu1  ;;  %v2858_v37 = vadd.f32 %v9325_v6, %v9390_v48  ;;  %v2859_v6 = vadd.f32 %v9355_v40, %v9403_v23  ;;  %v2864_v40 = vadd.f32 %v9388_v3, %v9419_v0  ;;  %v2865_v3 = vadd.f32 %v9417_v35, %v9433_v32 }
 0x2a4   : > { %10905 = vst [vmem:[#allocation16_spill] sm:$0xff] %v9485_v56  ;;  %v9491_v28 = vadd.f32 %v7382_v49, %v2844_v12  ;;  %v10912_v49 = vld [vmem:[#allocation39_spill] sm:$0xff] }
 0x2a5   : > { %v3096_v21 = vpop.f32.mrf.mxu1  ;;  %v2848_v62 = vadd.f32 %v10912_v49, %v9337_v4  ;;  %v10915_v4 = vld [vmem:[#allocation42_spill] sm:$0xff] }
 0x2a6   : > { %v9495_v27 = vadd.f32 %v3096_v21, %v2843_v7  ;;  %v2849_v49 = vadd.f32 %v10915_v4, %v9351_v14  ;;  %v2854_v14 = vadd.f32 %v9284_v13, %v9369_v11  ;;  %v2855_v13 = vadd.f32 %v9315_v22, %v9384_v25 }
 0x2a7   : > { %v7385_v55 = vpop.f32.mrf.mxu1  ;;  %v2860_v22 = vadd.f32 %v9345_v42, %v9399_v43  ;;  %v2861_v42 = vadd.f32 %v9377_v61, %v9413_v59  ;;  %v2866_v61 = vadd.f32 %v9407_v44, %v9429_v19  ;;  %v2867_v44 = vadd.f32 %v9437_v2, %v9446_v46 }
 0x2a8   : > { %10908 = vst [vmem:[#allocation17_spill] sm:$0xff] %v9495_v27  ;;  %v9501_v16 = vadd.f32 %v7385_v55, %v2846_v1  ;;  %v10914_v55 = vld [vmem:[#allocation41_spill] sm:$0xff] }
 0x2a9   : > { %v3106_v56 = vpop.f32.mrf.mxu1  ;;  %v2850_v10 = vadd.f32 %v10914_v55, %v9347_v24  ;;  %v10916_v24 = vld [vmem:[#allocation43_spill] sm:$0xff] }
 0x2aa   : > { %v9505_v12 = vadd.f32 %v3106_v56, %v2845_v38 }
 0x2ab   : > { %v7388_v21 = vpop.f32.mrf.mxu1 }
 0x2ac   : > { %10911 = vst [vmem:[#allocation19_spill] sm:$0xff] %v9505_v12  ;;  %v9511_v7 = vadd.f32 %v7388_v21, %v2848_v62  ;;  %v9529_v21 = vpop.f32.mrf.mxu0 }
 0x2ad   : > { %v3116_v27 = vpop.f32.mrf.mxu1 }
 0x2ae   : > { %v9515_v1 = vadd.f32 %v3116_v27, %v2847_v36  ;;  %v2851_v36 = vadd.f32 %v10916_v24, %v9361_v54  ;;  %v2856_v54 = vadd.f32 %v9305_v17, %v9381_v33  ;;  %v2857_v17 = vadd.f32 %v9335_v51, %v9393_v8 }
 0x2af   : > { %v7391_v56 = vpop.f32.mrf.mxu1  ;;  %v2862_v51 = vadd.f32 %v9365_v18, %v9409_v5  ;;  %v2863_v18 = vadd.f32 %v9397_v29, %v9423_v31 }
 0x2b0   : > { %v9521_v38 = vadd.f32 %v7391_v56, %v2850_v10  ;;  %v9539_v56 = vpop.f32.mrf.mxu0 }
 0x2b1   : > { %v3126_v12 = vpop.f32.mrf.mxu1 }
 0x2b2   : > { %v9525_v62 = vadd.f32 %v3126_v12, %v2849_v49 }
 0x2b3   : > { %v7394_v27 = vpop.f32.mrf.mxu1 }
 0x2b4   : > { %v9531_v26 = vadd.f32 %v7394_v27, %v2852_v20  ;;  %v9549_v20 = vpop.f32.mrf.mxu0 }
 0x2b5   : > { %v3136_v55 = vpop.f32.mrf.mxu1 }
 0x2b6   : > { %v9535_v10 = vadd.f32 %v3136_v55, %v2851_v36  ;;  %v9559_v57 = vpop.f32.mrf.mxu0 }
 0x2b7   : > { %v7397_v12 = vpop.f32.mrf.mxu1 }
 0x2b8   : > { %v9541_v4 = vadd.f32 %v7397_v12, %v2854_v14  ;;  %v9569_v25 = vpop.f32.mrf.mxu0 }
 0x2b9   : > { %v3146_v45 = vpop.f32.mrf.mxu1 }
 0x2ba   : > { %v9545_v49 = vadd.f32 %v3146_v45, %v2853_v53  ;;  %v9579_v8 = vpop.f32.mrf.mxu0 }
 0x2bb   : > { %v7400_v27 = vpop.f32.mrf.mxu1 }
 0x2bc   : > { %v9551_v24 = vadd.f32 %v7400_v27, %v2856_v54  ;;  %v9589_v23 = vpop.f32.mrf.mxu0 }
 0x2bd   : > { %v3156_v11 = vpop.f32.mrf.mxu1 }
 0x2be   : > { %v9555_v36 = vadd.f32 %v3156_v11, %v2855_v13  ;;  %v7446_v59 = vpop.f32.mrf.mxu0 }
 0x2bf   : > { %v7403_v55 = vpop.f32.mrf.mxu1 }
 0x2c0   : > { %v9561_v14 = vadd.f32 %v7403_v55, %v2858_v37  ;;  %v3525_v29 = vpop.f32.mrf.mxu0 }
 0x2c1   : > { %v3166_v33 = vpop.f32.mrf.mxu1 }
 0x2c2   : > { %v9565_v12 = vadd.f32 %v3166_v33, %v2857_v17  ;;  %v7449_v35 = vpop.f32.mrf.mxu0 }
 0x2c3   : > { %v7406_v53 = vpop.f32.mrf.mxu1 }
 0x2c4   : > { %v9571_v45 = vadd.f32 %v7406_v53, %v2860_v22  ;;  %v3535_v2 = vpop.f32.mrf.mxu0 }
 0x2c5   : > { %v3176_v48 = vpop.f32.mrf.mxu1 }
 0x2c6   : > { %v9575_v54 = vadd.f32 %v3176_v48, %v2859_v6  ;;  %v2868_v6 = vadd.f32 %v9427_v9, %v9439_v34  ;;  %v3614_v9 = vadd.f32 %v9468_v41, %v9464_v63  ;;  %v7452_v63 = vpop.f32.mrf.mxu0 }
 0x2c7   : > { %v7409_v27 = vpop.f32.mrf.mxu1 }
 0x2c8   : > { %v9581_v13 = vadd.f32 %v7409_v27, %v2862_v51  ;;  %v3615_v27 = vadd.f32 %v9451_v15, %v9457_v50 }
 0x2c9   : > { %v3186_v43 = vpop.f32.mrf.mxu1 }
 0x2ca   : > { %v9585_v11 = vadd.f32 %v3186_v43, %v2861_v42 }
 0x2cb   : > { %v7412_v37 = vpop.f32.mrf.mxu1 }
 0x2cc   : > { %v9591_v55 = vadd.f32 %v7412_v37, %v2864_v40  ;;  %v10919_v40 = vld [vmem:[#allocation15_spill] sm:$0xff] }
 0x2cd   : > { %v3196_v5 = vpop.f32.mrf.mxu1  ;;  %v3617_v37 = vadd.f32 %v9479_v60, %v10919_v40 }
 0x2ce   : > { %v9595_v17 = vadd.f32 %v3196_v5, %v2863_v18  ;;  %v10921_v5 = vld [vmem:[#allocation18_spill] sm:$0xff] }
 0x2cf   : > { %v7415_v33 = vpop.f32.mrf.mxu1  ;;  %v3616_v15 = vadd.f32 %v9489_v52, %v10921_v5  ;;  %v3545_v52 = vpop.f32.mrf.mxu0 }
 0x2d0   : > { %v9599_v22 = vadd.f32 %v7415_v33, %v2866_v61  ;;  %v3619_v33 = vadd.f32 %v9499_v30, %v9481_v39 }
 0x2d1   : > { %v3206_v0 = vpop.f32.mrf.mxu1 }
 0x2d2   : > { %v9603_v53 = vadd.f32 %v3206_v0, %v2865_v3  ;;  %v10924_v0 = vld [vmem:[#allocation16_spill] sm:$0xff] }
 0x2d3   : > { %v7418_v31 = vpop.f32.mrf.mxu1  ;;  %v3618_v60 = vadd.f32 %v9509_v58, %v10924_v0  ;;  %v7455_v58 = vpop.f32.mrf.mxu0  ;;  %v3627_v0 = vadd.f32 %v9579_v8, %v9521_v38  ;;  %v3631_v8 = vadd.f32 %v7449_v35, %v9541_v4 }
 0x2d4   : > { %v9607_v48 = vadd.f32 %v7418_v31, %v2868_v6  ;;  %v3635_v4 = vadd.f32 %v7455_v58, %v9561_v14 }
 0x2d5   : > { %v3216_v19 = vpop.f32.mrf.mxu1 }
 0x2d6   : > { %v9611_v51 = vadd.f32 %v3216_v19, %v2867_v44  ;;  %v3621_v44 = vadd.f32 %v9519_v47, %v9491_v28 }
 0x2d7   : > { %v7477_v32 = vpop.f32.mrf.mxu1 }
 0x2d8   : > { %v9615_v42 = vadd.f32 %v7477_v32, %v3615_v27  ;;  %v10927_v32 = vld [vmem:[#allocation17_spill] sm:$0xff] }
 0x2d9   : > { %v3843_v34 = vpop.f32.mrf.mxu1  ;;  %v3620_v39 = vadd.f32 %v9529_v21, %v10927_v32  ;;  %v3555_v21 = vpop.f32.mrf.mxu0 }
 0x2da   : > { %10917 = vst [vmem:[#allocation20_spill] sm:$0xff] %v9615_v42  ;;  %v9619_v43 = vadd.f32 %v3843_v34, %v3614_v9  ;;  %v3623_v34 = vadd.f32 %v9539_v56, %v9501_v16  ;;  %v3624_v16 = vadd.f32 %v9569_v25, %v9515_v1 }
 0x2db   : > { %v7480_v46 = vpop.f32.mrf.mxu1 }
 0x2dc   : > { %10918 = vst [vmem:[#allocation21_spill] sm:$0xff] %v9619_v43  ;;  %v9623_v18 = vadd.f32 %v7480_v46, %v3617_v37  ;;  %v10930_v46 = vld [vmem:[#allocation19_spill] sm:$0xff] }
 0x2dd   : > { %v3853_v50 = vpop.f32.mrf.mxu1  ;;  %v3622_v28 = vadd.f32 %v9549_v20, %v10930_v46  ;;  %v7458_v20 = vpop.f32.mrf.mxu0 }
 0x2de   : > { %10920 = vst [vmem:[#allocation22_spill] sm:$0xff] %v9623_v18  ;;  %v9627_v61 = vadd.f32 %v3853_v50, %v3616_v15  ;;  %v3625_v15 = vadd.f32 %v9559_v57, %v9511_v7  ;;  %v3626_v7 = vadd.f32 %v9589_v23, %v9525_v62  ;;  %v3630_v62 = vadd.f32 %v3535_v2, %v9545_v49 }
 0x2df   : > { %v7483_v41 = vpop.f32.mrf.mxu1  ;;  %v3565_v32 = vpop.f32.mrf.mxu0  ;;  %v3634_v49 = vadd.f32 %v3555_v21, %v9565_v12 }
 0x2e0   : > { %10922 = vst [vmem:[#allocation23_spill] sm:$0xff] %v9627_v61  ;;  %v9631_v3 = vadd.f32 %v7483_v41, %v3619_v33 }
 0x2e1   : > { %v3863_v6 = vpop.f32.mrf.mxu1 }
 0x2e2   : > { %10923 = vst [vmem:[#allocation24_spill] sm:$0xff] %v9631_v3  ;;  %v9635_v31 = vadd.f32 %v3863_v6, %v3618_v60 }
 0x2e3   : > { %v7486_v19 = vpop.f32.mrf.mxu1 }
 0x2e4   : > { %10925 = vst [vmem:[#allocation25_spill] sm:$0xff] %v9635_v31  ;;  %v9639_v27 = vadd.f32 %v7486_v19, %v3621_v44  ;;  %v3629_v19 = vadd.f32 %v7446_v59, %v9531_v26  ;;  %v3633_v26 = vadd.f32 %v7452_v63, %v9551_v24  ;;  %v3637_v24 = vadd.f32 %v7458_v20, %v9571_v45 }
 0x2e5   : > { %v3873_v30 = vpop.f32.mrf.mxu1 }
 0x2e6   : > { %10926 = vst [vmem:[#allocation26_spill] sm:$0xff] %v9639_v27  ;;  %v9643_v9 = vadd.f32 %v3873_v30, %v3620_v39  ;;  %v3628_v39 = vadd.f32 %v3525_v29, %v9535_v10  ;;  %v3632_v10 = vadd.f32 %v3545_v52, %v9555_v36  ;;  %v3636_v36 = vadd.f32 %v3565_v32, %v9575_v54 }
 0x2e7   : > { %v7489_v40 = vpop.f32.mrf.mxu1 }
 0x2e8   : > { %10928 = vst [vmem:[#allocation27_spill] sm:$0xff] %v9643_v9  ;;  %v9647_v37 = vadd.f32 %v7489_v40, %v3623_v34  ;;  %v7461_v34 = vpop.f32.mrf.mxu0 }
 0x2e9   : > { %v3883_v47 = vpop.f32.mrf.mxu1  ;;  %v3639_v14 = vadd.f32 %v7461_v34, %v9581_v13 }
 0x2ea   : > { %10929 = vst [vmem:[#allocation28_spill] sm:$0xff] %v9647_v37  ;;  %v9651_v5 = vadd.f32 %v3883_v47, %v3622_v28  ;;  %v3575_v59 = vpop.f32.mrf.mxu0  ;;  %v10041_v37 = vld [vmem:[%s10820_s9] ss:$0 sm:$0xff] }
 0x2eb   : > { %v7492_v50 = vpop.f32.mrf.mxu1  ;;  %v3638_v12 = vadd.f32 %v3575_v59, %v9585_v11 }
 0x2ec   : > { %10931 = vst [vmem:[#allocation29_spill] sm:$0xff] %v9651_v5  ;;  %v9655_v33 = vadd.f32 %v7492_v50, %v3625_v15  ;;  %v7464_v35 = vpop.f32.mrf.mxu0 }
 0x2ed   : > { %v3893_v56 = vpop.f32.mrf.mxu1  ;;  %v3641_v45 = vadd.f32 %v7464_v35, %v9591_v55 }
 0x2ee   : > { %10932 = vst [vmem:[#allocation30_spill] sm:$0xff] %v9655_v33  ;;  %v9659_v41 = vadd.f32 %v3893_v56, %v3624_v16  ;;  %v3585_v63 = vpop.f32.mrf.mxu0 }
 0x2ef   : > { %v7495_v60 = vpop.f32.mrf.mxu1  ;;  %v3640_v54 = vadd.f32 %v3585_v63, %v9595_v17 }
 0x2f0   : > { %10933 = vst [vmem:[#allocation31_spill] sm:$0xff] %v9659_v41  ;;  %v9663_v6 = vadd.f32 %v7495_v60, %v3627_v0  ;;  %v7467_v58 = vpop.f32.mrf.mxu0 }
 0x2f1   : > { %v3903_v57 = vpop.f32.mrf.mxu1  ;;  %v3643_v13 = vadd.f32 %v7467_v58, %v9599_v22 }
 0x2f2   : > { %10934 = vst [vmem:[#allocation32_spill] sm:$0xff] %v9663_v6  ;;  %v9667_v44 = vadd.f32 %v3903_v57, %v3626_v7  ;;  %v3595_v20 = vpop.f32.mrf.mxu0 }
 0x2f3   : > { %v7498_v1 = vpop.f32.mrf.mxu1  ;;  %v3642_v11 = vadd.f32 %v3595_v20, %v9603_v53  ;;  %v4836_v53 = vlaneseq }
 0x2f4   : > { %10935 = vst [vmem:[#allocation33_spill] sm:$0xff] %v9667_v44  ;;  %v9670_v25 = vadd.f32 %v7498_v1, %v3629_v19  ;;  %v7470_v34 = vpop.f32.mrf.mxu0 }
 0x2f5   : > { %v3913_v30 = vpop.f32.mrf.mxu1  ;;  %v3645_v55 = vadd.f32 %v7470_v34, %v9607_v48 }
 0x2f6   : > { %10936 = vst [vmem:[#allocation34_spill] sm:$0xff] %v9670_v25  ;;  %v9673_v38 = vadd.f32 %v3913_v30, %v3628_v39 }
 0x2f7   : > { %v7501_v40 = vpop.f32.mrf.mxu1 }
 0x2f8   : > { %10937 = vst [vmem:[#allocation35_spill] sm:$0xff] %v9673_v38  ;;  %v9676_v46 = vadd.f32 %v7501_v40, %v3631_v8 }
 0x2f9   : > { %v3923_v23 = vpop.f32.mrf.mxu1 }
 0x2fa   : > { %10938 = vst [vmem:[#allocation36_spill] sm:$0xff] %v9676_v46  ;;  %v9679_v28 = vadd.f32 %v3923_v23, %v3630_v62 }
 0x2fb   : > { %v7504_v47 = vpop.f32.mrf.mxu1 }
 0x2fc   : > { %10939 = vst [vmem:[#allocation37_spill] sm:$0xff] %v9679_v28  ;;  %v9682_v15 = vadd.f32 %v7504_v47, %v3633_v26  ;;  %v3605_v47 = vpop.f32.mrf.mxu0 }
 0x2fd   : > { %v3933_v29 = vpop.f32.mrf.mxu1  ;;  %v3644_v17 = vadd.f32 %v3605_v47, %v9611_v51  ;;  %v9772_v47 = vld [vmem:[%s10819_s8] ss:$0 sm:$0xff] }
 0x2fe   : > { %10940 = vst [vmem:[#allocation38_spill] sm:$0xff] %v9682_v15  ;;  %v9685_v50 = vadd.f32 %v3933_v29, %v3632_v10 }
 0x2ff   : > { %v7507_v16 = vpop.f32.mrf.mxu1 }
 0x300   : > { %10941 = vst [vmem:[#allocation39_spill] sm:$0xff] %v9685_v50  ;;  %v9688_v56 = vadd.f32 %v7507_v16, %v3635_v4  ;;  %v10956_v50 = vmov 0.0  }
 0x301   : > { %v3943_v2 = vpop.f32.mrf.mxu1  ;;  %7605 = vmatprep.mubr.msk.f32.mxu0 %vm7823_vm11, %v10956_v50 }
 0x302   : > { %10942 = vst [vmem:[#allocation40_spill] sm:$0xff] %v9688_v56  ;;  %v9691_v0 = vadd.f32 %v3943_v2, %v3634_v49  ;;  %v9725_v49 = vshrl.u32 %v4836_v53, 7 }
 0x303   : > { %v7510_v60 = vpop.f32.mrf.mxu1 }
 0x304   : > { %10943 = vst [vmem:[#allocation41_spill] sm:$0xff] %v9691_v0  ;;  %v9694_v7 = vadd.f32 %v7510_v60, %v3637_v24  ;;  %v9728_v48 = vsub.s32 0, %v9725_v49  ;;  %v4904_v2 = vsub.s32 6, %v9725_v49  ;;  %v10838_v24 = vsub.s32 7, %v9725_v49 }
 0x305   : > { %v3953_v52 = vpop.f32.mrf.mxu1  ;;  %v4860_v58 = vsub.s32 2, %v9725_v49 }
 0x306   : > { %10944 = vst [vmem:[#allocation42_spill] sm:$0xff] %v9694_v7  ;;  %v9697_v57 = vadd.f32 %v3953_v52, %v3636_v36  ;;  %10954 = vst [vmem:[#allocation47_spill] sm:$0xff] %v9728_v48  ;;  %v4849_v52 = vsub.s32 1, %v9725_v49  ;;  %v9874_v7 = vld [vmem:[%s10819_s8 + $0x7] ss:$0 sm:$0xff] }
 0x307   : > { %v7513_v19 = vpop.f32.mrf.mxu1 }
 0x308   : > { %10945 = vst [vmem:[#allocation43_spill] sm:$0xff] %v9697_v57  ;;  %v9700_v1 = vadd.f32 %v7513_v19, %v3639_v14 }
 0x309   : > { %v3963_v21 = vpop.f32.mrf.mxu1 }
 0x30a   : > { %10946 = vst [vmem:[#allocation15_spill] sm:$0xff] %v9700_v1  ;;  %v9703_v39 = vadd.f32 %v3963_v21, %v3638_v12  ;;  %v4871_v12 = vsub.s32 3, %v9725_v49  ;;  %v10955_v1 = vsub.s32 7, %v9725_v49 }
 0x30b   : > { %v7516_v30 = vpop.f32.mrf.mxu1 }
 0x30c   : > { %10947 = vst [vmem:[#allocation18_spill] sm:$0xff] %v9703_v39  ;;  %v9706_v8 = vadd.f32 %v7516_v30, %v3641_v45  ;;  %v4882_v45 = vsub.s32 4, %v9725_v49  ;;  %v4893_v30 = vsub.s32 5, %v9725_v49 }
 0x30d   : > { %v3973_v32 = vpop.f32.mrf.mxu1 }
 0x30e   : > { %10948 = vst [vmem:[#allocation16_spill] sm:$0xff] %v9706_v8  ;;  %v9709_v40 = vadd.f32 %v3973_v32, %v3640_v54 }
 0x30f   : > { %v7519_v62 = vpop.f32.mrf.mxu1 }
 0x310   : > { %10949 = vst [vmem:[#allocation17_spill] sm:$0xff] %v9709_v40  ;;  %v9712_v23 = vadd.f32 %v7519_v62, %v3643_v13 }
 0x311   : > { %v3983_v26 = vpop.f32.mrf.mxu1 }
 0x312   : > { %10950 = vst [vmem:[#allocation19_spill] sm:$0xff] %v9712_v23  ;;  %v9715_v59 = vadd.f32 %v3983_v26, %v3642_v11 }
 0x313   : > { %v7522_v10 = vpop.f32.mrf.mxu1 }
 0x314   : > { %10951 = vst [vmem:[#allocation44_spill] sm:$0xff] %v9715_v59  ;;  %v9718_v29 = vadd.f32 %v7522_v10, %v3645_v55  ;;  %v9767_v55 = vld [vmem:[%s10819_s8 + $0x1] ss:$0 sm:$0xff] }
 0x315   : > { %v3993_v4 = vpop.f32.mrf.mxu1 }
 0x316   : > { %10952 = vst [vmem:[#allocation45_spill] sm:$0xff] %v9718_v29  ;;  %v9721_v35 = vadd.f32 %v3993_v4, %v3644_v17 }
 0x317   : > { %v7583_v22 = vpop.f32.mrf.mxu1 }
 0x318   : > { %10953 = vst [vmem:[#allocation46_spill] sm:$0xff] %v9721_v35 }
 0x319   : > { %v4740_v16 = vpop.f32.mrf.mxu1 }
 0x31a   : > { %7590 = vmatprep.mubr.msk.f32.mxu1 %vm4663_vm10, %v4740_v16 }
 0x31b   : > { %7591 = vmatmul.mubr.msk.f32.vlgmr.msra.gmra.mxu1 %vm4663_vm10, %v7583_v22 }
 0x31c   : > { %7610 = vmatprep.mubr.msk.f32.mxu1 %vm7823_vm11, %v10956_v50 }
 0x3db   : > { %v7592_v51 = vpop.f32.mrf.mxu1 }
 0x3dc   : > { %v4927_v63 = vrot.slane %v7592_v51, %v9728_v48  ;;  %v9735_v60 = vrot.slane %v7592_v51, %v4904_v2  ;;  %v9739_v36 = vrot.slane %v7592_v51, %v10838_v24  ;;  %v4938_v14 = vrot.slane %v7592_v51, %v4849_v52 }
 0x3dd   : > { %v4949_v19 = vrot.slane %v7592_v51, %v4860_v58  ;;  %v4960_v21 = vrot.slane %v7592_v51, %v4871_v12  ;;  %v9745_v20 = vrot.slane %v7592_v51, %v4882_v45  ;;  %v9752_v54 = vrot.slane %v7592_v51, %v4893_v30  ;;  %v9754_v32 = vpop.f32.mrf.mxu1 }
 0x3de   : > { %5117 = vbcast.lane.b32.xlu0 %v4927_v63, 257  ;;  %4929 = vbcast.lane.b32.xlu1 %v4927_v63, 256  ;;  %v4839_v13 = vrot.slane %v9754_v32, %v9728_v48  ;;  %v4850_v34 = vrot.slane %v9754_v32, %v4849_v52  ;;  %v4861_v62 = vrot.slane %v9754_v32, %v4860_v58  ;;  %v9794_v58 = vld [vmem:[%s10819_s8 + $0x2] ss:$0 sm:$0xff] }
 0x3df   : > { %v4872_v11 = vrot.slane %v9754_v32, %v4871_v12  ;;  %v4883_v26 = vrot.slane %v9754_v32, %v4882_v45  ;;  %v4894_v4 = vrot.slane %v9754_v32, %v4893_v30  ;;  %v9805_v30 = vld [vmem:[%s10819_s8 + $0x3] ss:$0 sm:$0xff]  ;;  %v4916_v57 = vrot.slane %v9754_v32, %v10955_v1  ;;  %v5949_v1 = vld [vmem:[%s10821_s10 + $0x28] sm:$0xff] }
 0x3e0   : > { %7594 = vmatpush3.msra.mxu0 %v5949_v1 }
 0x3e1   : > { %7595 = vmatprep.subr.mxu0 %v10956_v50 }
 0x3e2   : > { %4933 = vbcast.lane.b32.xlu0 %v4927_v63, 264  ;;  %5121 = vbcast.lane.b32.xlu1 %v4927_v63, 265 }
 0x3e6   : > { %5290 = vbcast.lane.b32.xlu0 %v4927_v63, 258  ;;  %4940 = vbcast.lane.b32.xlu1 %v4938_v14, 256 }
 0x3ea   : > { %5125 = vbcast.lane.b32.xlu0 %v4938_v14, 257  ;;  %5294 = vbcast.lane.b32.xlu1 %v4927_v63, 266 }
 0x3ee   : > { %4944 = vbcast.lane.b32.xlu0 %v4938_v14, 264  ;;  %5129 = vbcast.lane.b32.xlu1 %v4938_v14, 265 }
 0x3f2   : > { %5298 = vbcast.lane.b32.xlu0 %v4938_v14, 258  ;;  %4951 = vbcast.lane.b32.xlu1 %v4949_v19, 256 }
 0x3f6   : > { %5133 = vbcast.lane.b32.xlu0 %v4949_v19, 257  ;;  %5302 = vbcast.lane.b32.xlu1 %v4938_v14, 266 }
 0x3fa   : > { %4955 = vbcast.lane.b32.xlu0 %v4949_v19, 264  ;;  %5137 = vbcast.lane.b32.xlu1 %v4949_v19, 265 }
 0x3fe   : > { %5306 = vbcast.lane.b32.xlu0 %v4949_v19, 258  ;;  %4962 = vbcast.lane.b32.xlu1 %v4960_v21, 256 }
 0x402   : > { %5141 = vbcast.lane.b32.xlu0 %v4960_v21, 257  ;;  %5310 = vbcast.lane.b32.xlu1 %v4949_v19, 266 }
 0x406   : > { %4966 = vbcast.lane.b32.xlu0 %v4960_v21, 264  ;;  %5145 = vbcast.lane.b32.xlu1 %v4960_v21, 265 }
 0x40a   : > { %5314 = vbcast.lane.b32.xlu0 %v4960_v21, 258  ;;  %4973 = vbcast.lane.b32.xlu1 %v9745_v20, 256 }
 0x40e   : > { %5149 = vbcast.lane.b32.xlu0 %v9745_v20, 257  ;;  %5318 = vbcast.lane.b32.xlu1 %v4960_v21, 266 }
 0x412   : > { %4977 = vbcast.lane.b32.xlu0 %v9745_v20, 264  ;;  %5153 = vbcast.lane.b32.xlu1 %v9745_v20, 265 }
 0x416   : > { %5322 = vbcast.lane.b32.xlu0 %v9745_v20, 258  ;;  %4984 = vbcast.lane.b32.xlu1 %v9752_v54, 256 }
 0x41a   : > { %4845 = vbcast.lane.b32.xlu1 %v4839_v13, 264  ;;  %4841 = vbcast.lane.b32.xlu0 %v4839_v13, 256 }
 0x41e   : > { %5057 = vbcast.lane.b32.xlu1 %v4839_v13, 265  ;;  %5053 = vbcast.lane.b32.xlu0 %v4839_v13, 257 }
 0x422   : > { %5061 = vbcast.lane.b32.xlu1 %v4850_v34, 257  ;;  %4852 = vbcast.lane.b32.xlu0 %v4850_v34, 256 }
 0x426   : > { %5230 = vbcast.lane.b32.xlu1 %v4839_v13, 266  ;;  %5226 = vbcast.lane.b32.xlu0 %v4839_v13, 258 }
 0x42a   : > { %5065 = vbcast.lane.b32.xlu1 %v4850_v34, 265  ;;  %4856 = vbcast.lane.b32.xlu0 %v4850_v34, 264 }
 0x42e   : > { %4863 = vbcast.lane.b32.xlu1 %v4861_v62, 256  ;;  %5234 = vbcast.lane.b32.xlu0 %v4850_v34, 258 }
 0x432   : > { %5238 = vbcast.lane.b32.xlu1 %v4850_v34, 266  ;;  %5069 = vbcast.lane.b32.xlu0 %v4861_v62, 257 }
 0x436   : > { %5073 = vbcast.lane.b32.xlu1 %v4861_v62, 265  ;;  %4867 = vbcast.lane.b32.xlu0 %v4861_v62, 264 }
 0x43a   : > { %4874 = vbcast.lane.b32.xlu1 %v4872_v11, 256  ;;  %5242 = vbcast.lane.b32.xlu0 %v4861_v62, 258 }
 0x43e   : > { %5246 = vbcast.lane.b32.xlu1 %v4861_v62, 266  ;;  %5077 = vbcast.lane.b32.xlu0 %v4872_v11, 257  ;;  %v9812_v62 = vld [vmem:[%s10819_s8 + $0x4] ss:$0 sm:$0xff] }
 0x442   : > { %5081 = vbcast.lane.b32.xlu1 %v4872_v11, 265  ;;  %4878 = vbcast.lane.b32.xlu0 %v4872_v11, 264 }
 0x446   : > { %4885 = vbcast.lane.b32.xlu1 %v4883_v26, 256  ;;  %5250 = vbcast.lane.b32.xlu0 %v4872_v11, 258 }
 0x44a   : > { %5254 = vbcast.lane.b32.xlu1 %v4872_v11, 266  ;;  %5085 = vbcast.lane.b32.xlu0 %v4883_v26, 257 }
 0x44e   : > { %5089 = vbcast.lane.b32.xlu1 %v4883_v26, 265  ;;  %4889 = vbcast.lane.b32.xlu0 %v4883_v26, 264 }
 0x450   : > { %v9774_v10 = vpop.permute.xlu0 %5117  ;;  %v9776_v17 = vpop.permute.xlu1 %4929 }
 0x451   : > { %v5184_v22 = vmul.f32 %v9767_v55, %v9774_v10  ;;  %v5011_v16 = vmul.f32 %v9772_v47, %v9776_v17 }
 0x452   : > { %4896 = vbcast.lane.b32.xlu1 %v4894_v4, 256  ;;  %5258 = vbcast.lane.b32.xlu0 %v4883_v26, 258 }
 0x453   : > { %v5212_v53 = vadd.f32 %v5184_v22, %v5011_v16  ;;  %v9821_v22 = vrot.slane %v9754_v32, %v4904_v2 }
 0x454   : > { %v9783_v51 = vpop.permute.xlu0 %4933  ;;  %v9785_v63 = vpop.permute.xlu1 %5121 }
 0x455   : > { %v5012_v52 = vmul.f32 %v9772_v47, %v9783_v51  ;;  %v5185_v14 = vmul.f32 %v9767_v55, %v9785_v63  ;;  %v10032_v5 = vmul.f32 %v9812_v62, %v9785_v63 }
 0x456   : > { %5262 = vbcast.lane.b32.xlu1 %v4883_v26, 266  ;;  %5093 = vbcast.lane.b32.xlu0 %v4894_v4, 257 }
 0x457   : > { %v5213_v19 = vadd.f32 %v5185_v14, %v5012_v52 }
 0x458   : > { %v9796_v12 = vpop.permute.xlu0 %5290  ;;  %v9798_v21 = vpop.permute.xlu1 %4940 }
 0x459   : > { %v5357_v45 = vmul.f32 %v9794_v58, %v9796_v12  ;;  %v5429_v34 = vmul.f32 %v9805_v30, %v9798_v21  ;;  %v5013_v16 = vmul.f32 %v9772_v47, %v9798_v21 }
 0x45a   : > { %5097 = vbcast.lane.b32.xlu1 %v4894_v4, 265  ;;  %4900 = vbcast.lane.b32.xlu0 %v4894_v4, 264 }
 0x45b   : > { %v5385_v13 = vadd.f32 %v5357_v45, %v5212_v53 }
 0x45c   : > { %v9814_v11 = vpop.permute.xlu0 %5125  ;;  %v9816_v26 = vpop.permute.xlu1 %5294 }
 0x45d   : > { %v5457_v53 = vadd.f32 %v5429_v34, %v5385_v13  ;;  %v5186_v52 = vmul.f32 %v9767_v55, %v9814_v11  ;;  %v5498_v14 = vmul.f32 %v9812_v62, %v9814_v11  ;;  %v5358_v45 = vmul.f32 %v9794_v58, %v9816_v26 }
 0x45e   : > { %4907 = vbcast.lane.b32.xlu1 %v9821_v22, 256  ;;  %5266 = vbcast.lane.b32.xlu0 %v4894_v4, 258 }
 0x45f   : > { %v5214_v24 = vadd.f32 %v5186_v52, %v5013_v16  ;;  %v5526_v48 = vadd.f32 %v5498_v14, %v5457_v53  ;;  %v5386_v2 = vadd.f32 %v5358_v45, %v5213_v19  ;;  %v9848_v53 = vld [vmem:[%s10819_s8 + $0x5] ss:$0 sm:$0xff] }
 0x460   : > { %v9832_v35 = vpop.permute.xlu0 %4944  ;;  %v9834_v29 = vpop.permute.xlu1 %5129 }
 0x461   : > { %v5014_v13 = vmul.f32 %v9772_v47, %v9832_v35  ;;  %v5430_v34 = vmul.f32 %v9805_v30, %v9832_v35  ;;  %v5187_v59 = vmul.f32 %v9767_v55, %v9834_v29  ;;  %v5499_v19 = vmul.f32 %v9812_v62, %v9834_v29 }
 0x462   : > { %5270 = vbcast.lane.b32.xlu1 %v4894_v4, 266  ;;  %5101 = vbcast.lane.b32.xlu0 %v9821_v22, 257 }
 0x463   : > { %v5458_v23 = vadd.f32 %v5430_v34, %v5386_v2  ;;  %v5215_v16 = vadd.f32 %v5187_v59, %v5014_v13  ;;  %v9859_v59 = vld [vmem:[%s10819_s8 + $0x6] ss:$0 sm:$0xff] }
 0x464   : > { %v9850_v52 = vpop.permute.xlu0 %5298  ;;  %v4952_v14 = vpop.permute.xlu1 %4951 }
 0x465   : > { %v5527_v45 = vadd.f32 %v5499_v19, %v5458_v23  ;;  %v5359_v40 = vmul.f32 %v9794_v58, %v9850_v52  ;;  %v5567_v4 = vmul.f32 %v9848_v53, %v9850_v52  ;;  %v5431_v34 = vmul.f32 %v9805_v30, %v4952_v14 }
 0x466   : > { %5105 = vbcast.lane.b32.xlu1 %v9821_v22, 265  ;;  %4911 = vbcast.lane.b32.xlu0 %v9821_v22, 264  ;;  %v5639_v23 = vmul.f32 %v9859_v59, %v4952_v14  ;;  %v5015_v19 = vmul.f32 %v9772_v47, %v4952_v14 }
 0x467   : > { %v5387_v2 = vadd.f32 %v5359_v40, %v5214_v24  ;;  %v5595_v13 = vadd.f32 %v5567_v4, %v5526_v48 }
 0x468   : > { %v5134_v8 = vpop.permute.xlu0 %5133  ;;  %v9866_v39 = vpop.permute.xlu1 %5302 }
 0x469   : > { %v5459_v40 = vadd.f32 %v5431_v34, %v5387_v2  ;;  %v5667_v48 = vadd.f32 %v5639_v23, %v5595_v13  ;;  %v5188_v24 = vmul.f32 %v9767_v55, %v5134_v8  ;;  %v5500_v4 = vmul.f32 %v9812_v62, %v5134_v8 }
 0x46a   : > { %v5708_v14 = vmul.f32 %v9874_v7, %v5134_v8  ;;  %v5360_v0 = vmul.f32 %v9794_v58, %v9866_v39  ;;  %v5568_v49 = vmul.f32 %v9848_v53, %v9866_v39  ;;  %4918 = vbcast.lane.b32.xlu1 %v4916_v57, 256  ;;  %5274 = vbcast.lane.b32.xlu0 %v9821_v22, 258 }
 0x46b   : > { %v5216_v32 = vadd.f32 %v5188_v24, %v5015_v19  ;;  %v5528_v2 = vadd.f32 %v5500_v4, %v5459_v40  ;;  %v9898_v4 = vld [vmem:[%s10819_s8 + $0x8] ss:$0 sm:$0xff] }
 0x46c   : > { %v5736_v13 = vadd.f32 %v5708_v14, %v5667_v48  ;;  %v5388_v34 = vadd.f32 %v5360_v0, %v5215_v16  ;;  %v5596_v23 = vadd.f32 %v5568_v49, %v5527_v45  ;;  %v4956_v8 = vpop.permute.xlu0 %4955  ;;  %v5138_v56 = vpop.permute.xlu1 %5137  ;;  %v10050_v9 = vmul.f32 %v9898_v4, %v9796_v12 }
 0x46d   : > { %v5016_v15 = vmul.f32 %v9772_v47, %v4956_v8  ;;  %v5432_v28 = vmul.f32 %v9805_v30, %v4956_v8  ;;  %v5640_v46 = vmul.f32 %v9859_v59, %v4956_v8  ;;  %v5189_v38 = vmul.f32 %v9767_v55, %v5138_v56 }
 0x46e   : > { %v5501_v19 = vmul.f32 %v9812_v62, %v5138_v56  ;;  %5278 = vbcast.lane.b32.xlu1 %v9821_v22, 266  ;;  %v5709_v16 = vmul.f32 %v9874_v7, %v5138_v56  ;;  %5109 = vbcast.lane.b32.xlu0 %v4916_v57, 257 }
 0x46f   : > { %v5460_v40 = vadd.f32 %v5432_v28, %v5388_v34  ;;  %v5668_v48 = vadd.f32 %v5640_v46, %v5596_v23  ;;  %v5217_v0 = vadd.f32 %v5189_v38, %v5016_v15 }
 0x470   : > { %v5307_v45 = vpop.permute.xlu0 %5306  ;;  %v4963_v24 = vpop.permute.xlu1 %4962 }
 0x471   : > { %v5529_v14 = vadd.f32 %v5501_v19, %v5460_v40  ;;  %v5737_v49 = vadd.f32 %v5709_v16, %v5668_v48  ;;  %v5361_v1 = vmul.f32 %v9794_v58, %v5307_v45  ;;  %v5569_v8 = vmul.f32 %v9848_v53, %v5307_v45 }
 0x472   : > { %v5777_v28 = vmul.f32 %v9898_v4, %v5307_v45  ;;  %5113 = vbcast.lane.b32.xlu1 %v4916_v57, 265  ;;  %v5433_v15 = vmul.f32 %v9805_v30, %v4963_v24  ;;  %v5641_v56 = vmul.f32 %v9859_v59, %v4963_v24  ;;  %4922 = vbcast.lane.b32.xlu0 %v4916_v57, 264 }
 0x473   : > { %v5389_v38 = vadd.f32 %v5361_v1, %v5216_v32  ;;  %v5597_v46 = vadd.f32 %v5569_v8, %v5528_v2  ;;  %v5017_v34 = vmul.f32 %v9772_v47, %v4963_v24 }
 0x474   : > { %v9905_v22 = vadd.f32 %v5777_v28, %v5736_v13  ;;  %v5142_v23 = vpop.permute.xlu0 %5141  ;;  %v5311_v19 = vpop.permute.xlu1 %5310 }
 0x475   : > { %v5461_v40 = vadd.f32 %v5433_v15, %v5389_v38  ;;  %v5669_v48 = vadd.f32 %v5641_v56, %v5597_v46  ;;  %v5190_v16 = vmul.f32 %v9767_v55, %v5142_v23  ;;  %v5502_v45 = vmul.f32 %v9812_v62, %v5142_v23 }
 0x476   : > { %v5710_v32 = vmul.f32 %v9874_v7, %v5142_v23  ;;  %v5362_v2 = vmul.f32 %v9794_v58, %v5311_v19  ;;  %v5570_v1 = vmul.f32 %v9848_v53, %v5311_v19  ;;  %5286 = vbcast.lane.b32.xlu1 %v4916_v57, 266  ;;  %v5778_v28 = vmul.f32 %v9898_v4, %v5311_v19 }
 0x477   : > { %v5218_v8 = vadd.f32 %v5190_v16, %v5017_v34  ;;  %v5530_v13 = vadd.f32 %v5502_v45, %v5461_v40  ;;  %5282 = vbcast.lane.b32.xlu0 %v4916_v57, 258 }
 0x478   : > { %v5738_v24 = vadd.f32 %v5710_v32, %v5669_v48  ;;  %v5390_v25 = vadd.f32 %v5362_v2, %v5217_v0  ;;  %v5598_v38 = vadd.f32 %v5570_v1, %v5529_v14  ;;  %v4967_v46 = vpop.permute.xlu0 %4966  ;;  %v5146_v15 = vpop.permute.xlu1 %5145  ;;  %v9914_v56 = vadd.f32 %v5778_v28, %v5737_v49 }
 0x479   : > { %v5018_v44 = vmul.f32 %v9772_v47, %v4967_v46  ;;  %v5434_v23 = vmul.f32 %v9805_v30, %v4967_v46  ;;  %v5642_v6 = vmul.f32 %v9859_v59, %v4967_v46  ;;  %v5191_v41 = vmul.f32 %v9767_v55, %v5146_v15 }
 0x47a   : > { %5326 = vbcast.lane.b32.xlu1 %v9745_v20, 266  ;;  %v5503_v57 = vmul.f32 %v9812_v62, %v5146_v15  ;;  %v5711_v0 = vmul.f32 %v9874_v7, %v5146_v15 }
 0x47b   : > { %v5462_v34 = vadd.f32 %v5434_v23, %v5390_v25  ;;  %v5670_v19 = vadd.f32 %v5642_v6, %v5598_v38  ;;  %5157 = vbcast.lane.b32.xlu0 %v9752_v54, 257  ;;  %v5219_v14 = vadd.f32 %v5191_v41, %v5018_v44 }
 0x47c   : > { %v5315_v49 = vpop.permute.xlu0 %5314  ;;  %v4974_v40 = vpop.permute.xlu1 %4973 }
 0x47d   : > { %v5531_v48 = vadd.f32 %v5503_v57, %v5462_v34  ;;  %v5739_v16 = vadd.f32 %v5711_v0, %v5670_v19  ;;  %v5363_v45 = vmul.f32 %v9794_v58, %v5315_v49  ;;  %v5571_v32 = vmul.f32 %v9848_v53, %v5315_v49 }
 0x47e   : > { %v5779_v2 = vmul.f32 %v9898_v4, %v5315_v49  ;;  %5161 = vbcast.lane.b32.xlu1 %v9752_v54, 265  ;;  %v5435_v25 = vmul.f32 %v9805_v30, %v4974_v40  ;;  %v5019_v41 = vmul.f32 %v9772_v47, %v4974_v40  ;;  %v5643_v44 = vmul.f32 %v9859_v59, %v4974_v40 }
 0x47f   : > { %v5391_v6 = vadd.f32 %v5363_v45, %v5218_v8  ;;  %4988 = vbcast.lane.b32.xlu0 %v9752_v54, 264  ;;  %v5599_v20 = vadd.f32 %v5571_v32, %v5530_v13 }
 0x480   : > { %v9930_v1 = vadd.f32 %v5779_v2, %v5738_v24  ;;  %v5150_v28 = vpop.permute.xlu0 %5149  ;;  %v5319_v38 = vpop.permute.xlu1 %5318 }
 0x481   : > { %v5463_v46 = vadd.f32 %v5435_v25, %v5391_v6  ;;  %v5192_v15 = vmul.f32 %v9767_v55, %v5150_v28  ;;  %v5504_v23 = vmul.f32 %v9812_v62, %v5150_v28  ;;  %v5712_v8 = vmul.f32 %v9874_v7, %v5150_v28 }
 0x482   : > { %v5671_v34 = vadd.f32 %v5643_v44, %v5599_v20  ;;  %v5364_v19 = vmul.f32 %v9794_v58, %v5319_v38  ;;  %v5572_v13 = vmul.f32 %v9848_v53, %v5319_v38  ;;  %5334 = vbcast.lane.b32.xlu1 %v9752_v54, 266  ;;  %v5780_v0 = vmul.f32 %v9898_v4, %v5319_v38 }
 0x483   : > { %v5220_v24 = vadd.f32 %v5192_v15, %v5019_v41  ;;  %v5532_v57 = vadd.f32 %v5504_v23, %v5463_v46  ;;  %5330 = vbcast.lane.b32.xlu0 %v9752_v54, 258 }
 0x484   : > { %v5740_v49 = vadd.f32 %v5712_v8, %v5671_v34  ;;  %v5392_v40 = vadd.f32 %v5364_v19, %v5219_v14  ;;  %v5600_v45 = vadd.f32 %v5572_v13, %v5531_v48  ;;  %v4978_v32 = vpop.permute.xlu0 %4977  ;;  %v5154_v2 = vpop.permute.xlu1 %5153  ;;  %v9942_v6 = vadd.f32 %v5780_v0, %v5739_v16 }
 0x485   : > { %v5020_v25 = vmul.f32 %v9772_v47, %v4978_v32  ;;  %v5436_v20 = vmul.f32 %v9805_v30, %v4978_v32  ;;  %v5644_v44 = vmul.f32 %v9859_v59, %v4978_v32  ;;  %v5193_v41 = vmul.f32 %v9767_v55, %v5154_v2 }
 0x486   : > { %5406 = vbcast.lane.b32.xlu1 %v9735_v60, 264  ;;  %v5505_v54 = vmul.f32 %v9812_v62, %v5154_v2  ;;  %v5713_v14 = vmul.f32 %v9874_v7, %v5154_v2 }
 0x487   : > { %v5464_v28 = vadd.f32 %v5436_v20, %v5392_v40  ;;  %v5672_v38 = vadd.f32 %v5644_v44, %v5600_v45  ;;  %5402 = vbcast.lane.b32.xlu0 %v9735_v60, 256  ;;  %v9952_v48 = vadd.f32 %v5193_v41, %v5020_v25  ;;  %v5948_v44 = vld [vmem:[%s10821_s10 + $0x20] sm:$0xff] }
 0x488   : > { %v5323_v16 = vpop.permute.xlu0 %5322  ;;  %v9954_v46 = vpop.permute.xlu1 %4984  ;;  %7596 = vmatpush3.msra.mxu0 %v5948_v44 }
 0x489   : > { %10957 = vst [vmem:[#allocation48_spill] sm:$0xff] %v9952_v48  ;;  %v9956_v15 = vadd.f32 %v5505_v54, %v5464_v28  ;;  %v9958_v23 = vadd.f32 %v5713_v14, %v5672_v38  ;;  %v5365_v8 = vmul.f32 %v9794_v58, %v5323_v16  ;;  %v5573_v34 = vmul.f32 %v9848_v53, %v5323_v16  ;;  %v5946_v28 = vld [vmem:[%s10821_s10 + $0x10] sm:$0xff] }
 0x48a   : > { %v5781_v19 = vmul.f32 %v9898_v4, %v5323_v16  ;;  %5475 = vbcast.lane.b32.xlu1 %v9735_v60, 265  ;;  %v5437_v0 = vmul.f32 %v9805_v30, %v9954_v46  ;;  %v5645_v32 = vmul.f32 %v9859_v59, %v9954_v46  ;;  %7597 = vmatprep.subr.mxu0 %v10956_v50 }
 0x48b   : > { %10958 = vst [vmem:[#allocation49_spill] sm:$0xff] %v9956_v15  ;;  %v5393_v13 = vadd.f32 %v5365_v8, %v5220_v24  ;;  %5471 = vbcast.lane.b32.xlu0 %v9735_v60, 257  ;;  %v5601_v40 = vadd.f32 %v5573_v34, %v5532_v57  ;;  %v5947_v57 = vld [vmem:[%s10821_s10 + $0x18] sm:$0xff] }
 0x48c   : > { %v9967_v45 = vadd.f32 %v5781_v19, %v5740_v49  ;;  %v4846_v2 = vpop.permute.xlu1 %4845  ;;  %v4842_v25 = vpop.permute.xlu0 %4841  ;;  %7598 = vmatpush3.msra.mxu0 %v5947_v57  ;;  %v10002_v57 = vmul.f32 %v9812_v62, %v9774_v10 }
 0x48d   : > { %v9971_v20 = vadd.f32 %v5437_v0, %v5393_v13  ;;  %v9976_v24 = vadd.f32 %v5645_v32, %v5601_v40  ;;  %7599 = vmatprep.subr.mxu0 %v10956_v50  ;;  %v4995_v19 = vmul.f32 %v9772_v47, %v4842_v25 }
 0x48e   : > { %5544 = vbcast.lane.b32.xlu1 %v9735_v60, 266  ;;  %7600 = vmatpush3.msra.mxu0 %v5946_v28  ;;  %v10015_v28 = vmul.f32 %v9859_v59, %v9776_v17 }
 0x48f   : > { %10959 = vst [vmem:[#allocation50_spill] sm:$0xff] %v9971_v20  ;;  %10960 = vst [vmem:[#allocation51_spill] sm:$0xff] %v9976_v24  ;;  %5540 = vbcast.lane.b32.xlu0 %v9735_v60, 258  ;;  %7601 = vmatprep.subr.mxu0 %v10956_v50 }
 0x490   : > { %v5058_v49 = vpop.permute.xlu1 %5057  ;;  %v5054_v41 = vpop.permute.xlu0 %5053 }
 0x491   : > { %v5168_v16 = vmul.f32 %v9767_v55, %v5054_v41  ;;  %v10006_v41 = vmul.f32 %v9874_v7, %v9774_v10  ;;  %v5169_v25 = vmul.f32 %v9767_v55, %v5058_v49  ;;  %v10022_v10 = vmul.f32 %v9805_v30, %v9783_v51 }
 0x492   : > { %5616 = vbcast.lane.b32.xlu1 %v9739_v36, 264  ;;  %v4996_v49 = vmul.f32 %v9772_v47, %v4846_v2 }
 0x493   : > { %5612 = vbcast.lane.b32.xlu0 %v9739_v36, 256  ;;  %v5196_v0 = vadd.f32 %v5168_v16, %v4995_v19 }
 0x494   : > { %v5062_v60 = vpop.permute.xlu1 %5061  ;;  %v4853_v38 = vpop.permute.xlu0 %4852  ;;  %v5197_v27 = vadd.f32 %v5169_v25, %v4996_v49  ;;  %v5840_v25 = vadd.f32 %v10041_v37, %v9905_v22 }
 0x495   : > { %v4997_v16 = vmul.f32 %v9772_v47, %v4853_v38  ;;  %v5413_v19 = vmul.f32 %v9805_v30, %v4853_v38  ;;  %v10036_v38 = vmul.f32 %v9874_v7, %v9785_v63  ;;  %v5482_v31 = vmul.f32 %v9812_v62, %v5062_v60 }
 0x496   : > { %5685 = vbcast.lane.b32.xlu1 %v9739_v36, 265 }
 0x497   : > { %5681 = vbcast.lane.b32.xlu0 %v9739_v36, 257 }
 0x498   : > { %v5231_v54 = vpop.permute.xlu1 %5230  ;;  %v5227_v14 = vpop.permute.xlu0 %5226 }
 0x499   : > { %v5341_v13 = vmul.f32 %v9794_v58, %v5227_v14  ;;  %v5170_v14 = vmul.f32 %v9767_v55, %v5062_v60 }
 0x49a   : > { %5754 = vbcast.lane.b32.xlu1 %v9739_v36, 266 }
 0x49b   : > { %5750 = vbcast.lane.b32.xlu0 %v9739_v36, 258  ;;  %v5369_v44 = vadd.f32 %v5341_v13, %v5196_v0  ;;  %v10010_v36 = vmul.f32 %v9805_v30, %v9776_v17  ;;  %v10026_v13 = vmul.f32 %v9859_v59, %v9783_v51  ;;  %v5342_v0 = vmul.f32 %v9794_v58, %v5231_v54 }
 0x49c   : > { %v5066_v8 = vpop.permute.xlu1 %5065  ;;  %v4857_v34 = vpop.permute.xlu0 %4856  ;;  %v10046_v54 = vmul.f32 %v9848_v53, %v9796_v12  ;;  %v5198_v3 = vadd.f32 %v5170_v14, %v4997_v16  ;;  %v10063_v12 = vmul.f32 %v9859_v59, %v9798_v21  ;;  %v10074_v16 = vmul.f32 %v9848_v53, %v9816_v26 }
 0x49d   : > { %v5441_v51 = vadd.f32 %v5413_v19, %v5369_v44  ;;  %v5414_v63 = vmul.f32 %v9805_v30, %v4857_v34  ;;  %v5945_v44 = vld [vmem:[%s10821_s10 + $0x8] sm:$0xff]  ;;  %v5944_v19 = vld [vmem:[%s10821_s10] sm:$0xff]  ;;  %v5370_v49 = vadd.f32 %v5342_v0, %v5197_v27  ;;  %v5171_v27 = vmul.f32 %v9767_v55, %v5066_v8 }
 0x49e   : > { %7602 = vmatpush3.msra.mxu0 %v5945_v44  ;;  %v4998_v22 = vmul.f32 %v9772_v47, %v4857_v34  ;;  %v10086_v44 = vmul.f32 %v9859_v59, %v9832_v35  ;;  %v5841_v34 = vadd.f32 %v10041_v37, %v9914_v56 }
 0x49f   : > { %v5510_v21 = vadd.f32 %v5482_v31, %v5441_v51  ;;  %7603 = vmatprep.subr.mxu0 %v10956_v50  ;;  %v5442_v0 = vadd.f32 %v5414_v63, %v5370_v49  ;;  %v5868_v51 = vmax.f32 %v5840_v25, 0.0 }
 0x4a0   : > { %v9998_v40 = vpop.permute.xlu1 %4863  ;;  %v5235_v32 = vpop.permute.xlu0 %5234  ;;  %7604 = vmatpush3.msra.mxu0 %v5944_v19 }
 0x4a1   : > { %v5343_v2 = vmul.f32 %v9794_v58, %v5235_v32  ;;  %v5551_v61 = vmul.f32 %v9848_v53, %v5235_v32  ;;  %v10070_v32 = vmul.f32 %v9874_v7, %v9814_v11  ;;  %v10082_v11 = vmul.f32 %v9898_v4, %v9816_v26 }
 0x4a2   : > { %v5623_v26 = vmul.f32 %v9859_v59, %v9998_v40 }
 0x4a3   : > { %10961 = vst [vmem:[#allocation52_spill] sm:$0xff] %v10070_v32  ;;  %v5371_v18 = vadd.f32 %v5343_v2, %v5198_v3  ;;  %v5415_v3 = vmul.f32 %v9805_v30, %v9998_v40  ;;  %v5579_v31 = vadd.f32 %v5551_v61, %v5510_v21  ;;  %v5483_v2 = vmul.f32 %v9812_v62, %v5066_v8 }
 0x4a4   : > { %v5239_v17 = vpop.permute.xlu1 %5238  ;;  %v5070_v33 = vpop.permute.xlu0 %5069  ;;  %v5199_v61 = vadd.f32 %v5171_v27, %v4998_v22 }
 0x4a5   : > { %v5344_v50 = vmul.f32 %v9794_v58, %v5239_v17  ;;  %v5443_v49 = vadd.f32 %v5415_v3, %v5371_v18  ;;  %v5552_v35 = vmul.f32 %v9848_v53, %v5239_v17  ;;  %v5484_v43 = vmul.f32 %v9812_v62, %v5070_v33 }
 0x4a6   : > { %v5511_v25 = vadd.f32 %v5483_v2, %v5442_v0  ;;  %v5172_v21 = vmul.f32 %v9767_v55, %v5070_v33  ;;  %v5651_v8 = vadd.f32 %v5623_v26, %v5579_v31  ;;  %v5692_v42 = vmul.f32 %v9874_v7, %v5070_v33 }
 0x4a7   : > { %v10105_v18 = vmul.f32 %v9874_v7, %v9834_v29  ;;  %v4999_v17 = vmul.f32 %v9772_v47, %v9998_v40  ;;  %v5372_v27 = vadd.f32 %v5344_v50, %v5199_v61  ;;  %v10112_v31 = vmul.f32 %v9898_v4, %v9850_v52 }
 0x4a8   : > { %v5074_v60 = vpop.permute.xlu1 %5073  ;;  %v4868_v14 = vpop.permute.xlu0 %4867  ;;  %v10116_v33 = vmul.f32 %v9898_v4, %v9866_v39  ;;  %v5580_v2 = vadd.f32 %v5552_v35, %v5511_v25  ;;  %v5512_v26 = vadd.f32 %v5484_v43, %v5443_v49  ;;  %v10119_v29 = vsel %vm551_vm0, %v5868_v51, 0.0 }
 0x4a9   : > { %v5416_v56 = vmul.f32 %v9805_v30, %v4868_v14  ;;  %v5624_v24 = vmul.f32 %v9859_v59, %v4868_v14  ;;  %10962 = vst [vmem:[#allocation53_spill] sm:$0xff] %v10105_v18  ;;  %10963 = vst [vmem:[#allocation54_spill] sm:$0xff] %v10112_v31  ;;  %v5200_v15 = vadd.f32 %v5172_v21, %v4999_v17  ;;  %v5869_v61 = vmax.f32 %v5841_v34, 0.0 }
 0x4aa   : > { %10964 = vst [vmem:[#allocation55_spill] sm:$0xff] %v10116_v33  ;;  %v5720_v48 = vadd.f32 %v5692_v42, %v5651_v8  ;;  %v5173_v52 = vmul.f32 %v9767_v55, %v5074_v60  ;;  %v5485_v31 = vmul.f32 %v9812_v62, %v5074_v60  ;;  %v5693_v39 = vmul.f32 %v9874_v7, %v5074_v60 }
 0x4ab   : > { %v5444_v40 = vadd.f32 %v5416_v56, %v5372_v27  ;;  %v5652_v32 = vadd.f32 %v5624_v24, %v5580_v2  ;;  %v5000_v51 = vmul.f32 %v9772_v47, %v4868_v14  ;;  %v5842_v42 = vadd.f32 %v10041_v37, %v9930_v1 }
 0x4ac   : > { %v4875_v63 = vpop.permute.xlu1 %4874  ;;  %v5243_v19 = vpop.permute.xlu0 %5242  ;;  %v10138_v1 = vsel %vm5881_vm12, %v5869_v61, 0.0 }
 0x4ad   : > { %v5553_v20 = vmul.f32 %v9848_v53, %v5243_v19  ;;  %v5345_v22 = vmul.f32 %v9794_v58, %v5243_v19  ;;  %v5761_v50 = vmul.f32 %v9898_v4, %v5243_v19  ;;  %v5625_v49 = vmul.f32 %v9859_v59, %v4875_v63 }
 0x4ae   : > { %v5513_v19 = vadd.f32 %v5485_v31, %v5444_v40  ;;  %v5721_v21 = vadd.f32 %v5693_v39, %v5652_v32 }
 0x4af   : > { %v5581_v18 = vadd.f32 %v5553_v20, %v5512_v26  ;;  %v5373_v33 = vadd.f32 %v5345_v22, %v5200_v15  ;;  %v5417_v20 = vmul.f32 %v9805_v30, %v4875_v63  ;;  %v5789_v24 = vadd.f32 %v5761_v50, %v5720_v48 }
 0x4b0   : > { %v5247_v0 = vpop.permute.xlu1 %5246  ;;  %v5078_v3 = vpop.permute.xlu0 %5077  ;;  %v5201_v48 = vadd.f32 %v5173_v52, %v5000_v51 }
 0x4b1   : > { %v5554_v25 = vmul.f32 %v9848_v53, %v5247_v0  ;;  %v5762_v34 = vmul.f32 %v9898_v4, %v5247_v0  ;;  %v5653_v60 = vadd.f32 %v5625_v49, %v5581_v18  ;;  %v5694_v15 = vmul.f32 %v9874_v7, %v5078_v3 }
 0x4b2   : > { %v5346_v14 = vmul.f32 %v9794_v58, %v5247_v0  ;;  %v5445_v8 = vadd.f32 %v5417_v20, %v5373_v33  ;;  %v5174_v17 = vmul.f32 %v9767_v55, %v5078_v3  ;;  %v5486_v27 = vmul.f32 %v9812_v62, %v5078_v3 }
 0x4b3   : > { %v5582_v31 = vadd.f32 %v5554_v25, %v5513_v19  ;;  %v5790_v32 = vadd.f32 %v5762_v34, %v5721_v21  ;;  %v5001_v18 = vmul.f32 %v9772_v47, %v4875_v63  ;;  %v5824_v26 = vadd.f32 %v10041_v37, %v5789_v24 }
 0x4b4   : > { %v5082_v35 = vpop.permute.xlu1 %5081  ;;  %v4879_v43 = vpop.permute.xlu0 %4878  ;;  %v5722_v33 = vadd.f32 %v5694_v15, %v5653_v60  ;;  %v5870_v49 = vmax.f32 %v5842_v42, 0.0  ;;  %v5374_v61 = vadd.f32 %v5346_v14, %v5201_v48  ;;  %v5514_v52 = vadd.f32 %v5486_v27, %v5445_v8 }
 0x4b5   : > { %v5626_v56 = vmul.f32 %v9859_v59, %v4879_v43  ;;  %v5418_v40 = vmul.f32 %v9805_v30, %v4879_v43  ;;  %v5202_v20 = vadd.f32 %v5174_v17, %v5001_v18  ;;  %v5825_v63 = vadd.f32 %v10041_v37, %v5790_v32 }
 0x4b6   : > { %v5695_v34 = vmul.f32 %v9874_v7, %v5082_v35  ;;  %v10151_v21 = vadd.f32 %v10041_v37, %v9942_v6  ;;  %v5852_v60 = vmax.f32 %v5824_v26, 0.0  ;;  %v5175_v42 = vmul.f32 %v9767_v55, %v5082_v35 }
 0x4b7   : > { %v5654_v50 = vadd.f32 %v5626_v56, %v5582_v31  ;;  %v5446_v15 = vadd.f32 %v5418_v40, %v5374_v61  ;;  %v5487_v14 = vmul.f32 %v9812_v62, %v5082_v35  ;;  %v5002_v27 = vmul.f32 %v9772_v47, %v4879_v43 }
 0x4b8   : > { %v4886_v22 = vpop.permute.xlu1 %4885  ;;  %v5251_v2 = vpop.permute.xlu0 %5250  ;;  %v10160_v18 = vsel %vm551_vm0, %v5870_v49, 0.0  ;;  %v5853_v26 = vmax.f32 %v5825_v63, 0.0  ;;  %v5880_v49 = vsel %vm551_vm0, %v5852_v60, 0.0 }
 0x4b9   : > { %v5347_v0 = vmul.f32 %v9794_v58, %v5251_v2  ;;  %v5555_v3 = vmul.f32 %v9848_v53, %v5251_v2  ;;  %v5763_v39 = vmul.f32 %v9898_v4, %v5251_v2  ;;  %v5723_v17 = vadd.f32 %v5695_v34, %v5654_v50  ;;  %10965 = vst [vmem:[#allocation56_spill] sm:$0xff] %v10160_v18 }
 0x4ba   : > { %v5419_v2 = vmul.f32 %v9805_v30, %v4886_v22  ;;  %v5627_v40 = vmul.f32 %v9859_v59, %v4886_v22  ;;  %v5515_v43 = vadd.f32 %v5487_v14, %v5446_v15 }
 0x4bb   : > { %v5791_v24 = vadd.f32 %v5763_v39, %v5722_v33  ;;  %v5375_v56 = vadd.f32 %v5347_v0, %v5202_v20  ;;  %v5583_v8 = vadd.f32 %v5555_v3, %v5514_v52  ;;  %v5203_v52 = vadd.f32 %v5175_v42, %v5002_v27 }
 0x4bc   : > { %v5255_v51 = vpop.permute.xlu1 %5254  ;;  %v5086_v25 = vpop.permute.xlu0 %5085 }
 0x4bd   : > { %v5764_v19 = vmul.f32 %v9898_v4, %v5255_v51  ;;  %v5826_v48 = vadd.f32 %v10041_v37, %v5791_v24  ;;  %v5556_v31 = vmul.f32 %v9848_v53, %v5255_v51  ;;  %v5348_v33 = vmul.f32 %v9794_v58, %v5255_v51 }
 0x4be   : > { %v5447_v50 = vadd.f32 %v5419_v2, %v5375_v56  ;;  %v5655_v3 = vadd.f32 %v5627_v40, %v5583_v8  ;;  %v5488_v39 = vmul.f32 %v9812_v62, %v5086_v25  ;;  %v5696_v61 = vmul.f32 %v9874_v7, %v5086_v25 }
 0x4bf   : > { %v5792_v0 = vadd.f32 %v5764_v19, %v5723_v17  ;;  %v5854_v63 = vmax.f32 %v5826_v48, 0.0  ;;  %v5584_v34 = vadd.f32 %v5556_v31, %v5515_v43  ;;  %v5882_v17 = vsel %vm5881_vm12, %v5853_v26, 0.0 }
 0x4c0   : > { %v5090_v32 = vpop.permute.xlu1 %5089  ;;  %v4890_v6 = vpop.permute.xlu0 %4889  ;;  %v5003_v51 = vmul.f32 %v9772_v47, %v4886_v22  ;;  %v5376_v14 = vadd.f32 %v5348_v33, %v5203_v52  ;;  %v5176_v8 = vmul.f32 %v9767_v55, %v5086_v25  ;;  %v5516_v60 = vadd.f32 %v5488_v39, %v5447_v50 }
 0x4c1   : > { %v5628_v20 = vmul.f32 %v9859_v59, %v4890_v6  ;;  %v5827_v15 = vadd.f32 %v10041_v37, %v5792_v0  ;;  %v5420_v56 = vmul.f32 %v9805_v30, %v4890_v6  ;;  %v5724_v42 = vadd.f32 %v5696_v61, %v5655_v3 }
 0x4c2   : > { %v5177_v27 = vmul.f32 %v9767_v55, %v5090_v32  ;;  %v5884_v31 = vsel %vm551_vm0, %v5854_v63, 0.0  ;;  %v5697_v22 = vmul.f32 %v9874_v7, %v5090_v32  ;;  %v5004_v26 = vmul.f32 %v9772_v47, %v4890_v6 }
 0x4c3   : > { %v5656_v2 = vadd.f32 %v5628_v20, %v5584_v34  ;;  %v5855_v25 = vmax.f32 %v5827_v15, 0.0  ;;  %v5448_v20 = vadd.f32 %v5420_v56, %v5376_v14  ;;  %v5883_v3 = vadd.f32 %v5882_v17, %v5880_v49 }
 0x4c4   : > { %v4897_v24 = vpop.permute.xlu1 %4896  ;;  %v5259_v19 = vpop.permute.xlu0 %5258  ;;  %v5204_v39 = vadd.f32 %v5176_v8, %v5003_v51  ;;  %v10184_v63 = vmul.f32 %v9772_v47, %v9954_v46  ;;  %v5489_v35 = vmul.f32 %v9812_v62, %v5090_v32  ;;  %v5205_v51 = vadd.f32 %v5177_v27, %v5004_v26 }
 0x4c5   : > { %v5557_v40 = vmul.f32 %v9848_v53, %v5259_v19  ;;  %v5765_v48 = vmul.f32 %v9898_v4, %v5259_v19  ;;  %v5349_v0 = vmul.f32 %v9794_v58, %v5259_v19  ;;  %v5725_v34 = vadd.f32 %v5697_v22, %v5656_v2 }
 0x4c6   : > { %v5885_v18 = vadd.f32 %v5884_v31, %v5883_v3  ;;  %v5629_v15 = vmul.f32 %v9859_v59, %v4897_v24  ;;  %v5886_v17 = vsel %vm5881_vm12, %v5855_v25, 0.0  ;;  %v5005_v8 = vmul.f32 %v9772_v47, %v4897_v24 }
 0x4c7   : > { %v5793_v52 = vadd.f32 %v5765_v48, %v5724_v42  ;;  %v5585_v61 = vadd.f32 %v5557_v40, %v5516_v60  ;;  %v5377_v56 = vadd.f32 %v5349_v0, %v5204_v39  ;;  %v5517_v46 = vadd.f32 %v5489_v35, %v5448_v20 }
 0x4c8   : > { %v5263_v33 = vpop.permute.xlu1 %5262  ;;  %v5094_v43 = vpop.permute.xlu0 %5093  ;;  %v5421_v2 = vmul.f32 %v9805_v30, %v4897_v24  ;;  %v5887_v3 = vadd.f32 %v5886_v17, %v5885_v18 }
 0x4c9   : > { %v5766_v50 = vmul.f32 %v9898_v4, %v5263_v33  ;;  %v5828_v6 = vadd.f32 %v10041_v37, %v5793_v52  ;;  %v5558_v19 = vmul.f32 %v9848_v53, %v5263_v33  ;;  %v5350_v32 = vmul.f32 %v9794_v58, %v5263_v33 }
 0x4ca   : > { %v5657_v40 = vadd.f32 %v5629_v15, %v5585_v61  ;;  %v5178_v60 = vmul.f32 %v9767_v55, %v5094_v43  ;;  %v5698_v22 = vmul.f32 %v9874_v7, %v5094_v43  ;;  %v5449_v25 = vadd.f32 %v5421_v2, %v5377_v56 }
 0x4cb   : > { %v5794_v14 = vadd.f32 %v5766_v50, %v5725_v34  ;;  %v5856_v48 = vmax.f32 %v5828_v6, 0.0  ;;  %v5586_v31 = vadd.f32 %v5558_v19, %v5517_v46  ;;  %v5490_v27 = vmul.f32 %v9812_v62, %v5094_v43 }
 0x4cc   : > { %v5098_v42 = vpop.permute.xlu1 %5097  ;;  %v4901_v49 = vpop.permute.xlu0 %4900  ;;  %v10966_v33 = vmax.f32 %v10151_v21, 0.0  ;;  %v10207_v50 = vadd.f32 %v10041_v37, %v9967_v45  ;;  %v5378_v61 = vadd.f32 %v5350_v32, %v5205_v51  ;;  %v5206_v34 = vadd.f32 %v5178_v60, %v5005_v8 }
 0x4cd   : > { %v5630_v0 = vmul.f32 %v9859_v59, %v4901_v49  ;;  %v5829_v52 = vadd.f32 %v10041_v37, %v5794_v14  ;;  %v5422_v35 = vmul.f32 %v9805_v30, %v4901_v49  ;;  %v5888_v19 = vsel %vm551_vm0, %v5856_v48, 0.0 }
 0x4ce   : > { %v10203_v20 = vsel %vm5881_vm12, %v10966_v33, 0.0  ;;  %v5726_v15 = vadd.f32 %v5698_v22, %v5657_v40  ;;  %v5699_v21 = vmul.f32 %v9874_v7, %v5098_v42  ;;  %v5518_v46 = vadd.f32 %v5490_v27, %v5449_v25 }
 0x4cf   : > { %v5658_v39 = vadd.f32 %v5630_v0, %v5586_v31  ;;  %v5857_v14 = vmax.f32 %v5829_v52, 0.0  ;;  %v5179_v45 = vmul.f32 %v9767_v55, %v5098_v42  ;;  %v5450_v2 = vadd.f32 %v5422_v35, %v5378_v61 }
 0x4d0   : > { %v4908_v26 = vpop.permute.xlu1 %4907  ;;  %v5267_v24 = vpop.permute.xlu0 %5266  ;;  %v5889_v31 = vadd.f32 %v5888_v19, %v5887_v3  ;;  %v5491_v48 = vmul.f32 %v9812_v62, %v5098_v42  ;;  %v5006_v40 = vmul.f32 %v9772_v47, %v4901_v49 }
 0x4d1   : > { %v5351_v6 = vmul.f32 %v9794_v58, %v5267_v24  ;;  %v5559_v43 = vmul.f32 %v9848_v53, %v5267_v24  ;;  %v5767_v56 = vmul.f32 %v9898_v4, %v5267_v24  ;;  %v5727_v32 = vadd.f32 %v5699_v21, %v5658_v39 }
 0x4d2   : > { %v5423_v0 = vmul.f32 %v9805_v30, %v4908_v26  ;;  %v5890_v35 = vsel %vm5881_vm12, %v5857_v14, 0.0  ;;  %v5631_v24 = vmul.f32 %v9859_v59, %v4908_v26  ;;  %v5519_v49 = vadd.f32 %v5491_v48, %v5450_v2 }
 0x4d3   : > { %v5379_v51 = vadd.f32 %v5351_v6, %v5206_v34  ;;  %v5795_v8 = vadd.f32 %v5767_v56, %v5726_v15  ;;  %v5587_v22 = vadd.f32 %v5559_v43, %v5518_v46  ;;  %v5207_v43 = vadd.f32 %v5179_v45, %v5006_v40  ;;  %v10242_v40 = vld [vmem:[%s10819_s8] ss:$0 sm:$0xff] }
 0x4d4   : > { %v5271_v18 = vpop.permute.xlu1 %5270  ;;  %v5102_v17 = vpop.permute.xlu0 %5101  ;;  %v5007_v19 = vmul.f32 %v9772_v47, %v4908_v26  ;;  %v5891_v56 = vadd.f32 %v5890_v35, %v5889_v31  ;;  %v10235_v47 = vld [vmem:[%s10819_s8 + $0x1] ss:$0 sm:$0xff] }
 0x4d5   : > { %v5768_v60 = vmul.f32 %v9898_v4, %v5271_v18  ;;  %v5830_v52 = vadd.f32 %v10041_v37, %v5795_v8  ;;  %v5560_v25 = vmul.f32 %v9848_v53, %v5271_v18  ;;  %v5352_v33 = vmul.f32 %v9794_v58, %v5271_v18 }
 0x4d6   : > { %v5180_v3 = vmul.f32 %v9767_v55, %v5102_v17  ;;  %v5451_v34 = vadd.f32 %v5423_v0, %v5379_v51  ;;  %v5492_v6 = vmul.f32 %v9812_v62, %v5102_v17  ;;  %v5659_v15 = vadd.f32 %v5631_v24, %v5587_v22 }
 0x4d7   : > { %v5796_v27 = vadd.f32 %v5768_v60, %v5727_v32  ;;  %v5858_v61 = vmax.f32 %v5830_v52, 0.0  ;;  %v5700_v21 = vmul.f32 %v9874_v7, %v5102_v17  ;;  %v5588_v14 = vadd.f32 %v5560_v25, %v5519_v49 }
 0x4d8   : > { %v5106_v39 = vpop.permute.xlu1 %5105  ;;  %v4912_v42 = vpop.permute.xlu0 %4911  ;;  %v5380_v8 = vadd.f32 %v5352_v33, %v5207_v43  ;;  %v5208_v32 = vadd.f32 %v5180_v3, %v5007_v19  ;;  %v5520_v60 = vadd.f32 %v5492_v6, %v5451_v34 }
 0x4d9   : > { %v5831_v46 = vadd.f32 %v10041_v37, %v5796_v27  ;;  %v5632_v18 = vmul.f32 %v9859_v59, %v4912_v42  ;;  %v5892_v55 = vsel %vm551_vm0, %v5858_v61, 0.0  ;;  %v5424_v2 = vmul.f32 %v9805_v30, %v4912_v42 }
 0x4da   : > { %v5181_v26 = vmul.f32 %v10235_v47, %v5106_v39  ;;  %v5493_v45 = vmul.f32 %v9812_v62, %v5106_v39  ;;  %v5728_v48 = vadd.f32 %v5700_v21, %v5659_v15  ;;  %v5008_v22 = vmul.f32 %v10242_v40, %v4912_v42  ;;  %v10253_v42 = vld [vmem:[%s10819_s8 + $0x2] ss:$0 sm:$0xff] }
 0x4db   : > { %v5660_v17 = vadd.f32 %v5632_v18, %v5588_v14  ;;  %v5893_v25 = vadd.f32 %v5892_v55, %v5891_v56  ;;  %v5859_v27 = vmax.f32 %v5831_v46, 0.0  ;;  %v5701_v35 = vmul.f32 %v9874_v7, %v5106_v39  ;;  %v10264_v18 = vld [vmem:[%s10819_s8 + $0x4] ss:$0 sm:$0xff] }
 0x4dc   : > { %v4919_v51 = vpop.permute.xlu1 %4918  ;;  %v5275_v31 = vpop.permute.xlu0 %5274  ;;  %v5452_v24 = vadd.f32 %v5424_v2, %v5380_v8  ;;  %v5209_v19 = vadd.f32 %v5181_v26, %v5008_v22 }
 0x4dd   : > { %v5353_v0 = vmul.f32 %v9794_v58, %v5275_v31  ;;  %v5561_v52 = vmul.f32 %v9848_v53, %v5275_v31  ;;  %v5769_v62 = vmul.f32 %v9898_v4, %v5275_v31  ;;  %v5425_v33 = vmul.f32 %v9805_v30, %v4919_v51 }
 0x4de   : > { %v5729_v6 = vadd.f32 %v5701_v35, %v5660_v17  ;;  %v5633_v15 = vmul.f32 %v9859_v59, %v4919_v51  ;;  %v5894_v8 = vsel %vm5881_vm12, %v5859_v27, 0.0  ;;  %v5009_v26 = vmul.f32 %v10242_v40, %v4919_v51 }
 0x4df   : > { %v5381_v3 = vadd.f32 %v5353_v0, %v5208_v32  ;;  %v5589_v61 = vadd.f32 %v5561_v52, %v5520_v60  ;;  %v5797_v34 = vadd.f32 %v5769_v62, %v5728_v48  ;;  %v5521_v32 = vadd.f32 %v5493_v45, %v5452_v24  ;;  %v10276_v45 = vld [vmem:[%s10819_s8 + $0x3] ss:$0 sm:$0xff] }
 0x4e0   : > { %v5279_v49 = vpop.permute.xlu1 %5278  ;;  %v5110_v39 = vpop.permute.xlu0 %5109 }
 0x4e1   : > { %v5354_v58 = vmul.f32 %v10253_v42, %v5279_v49  ;;  %v5770_v43 = vmul.f32 %v9898_v4, %v5279_v49  ;;  %v5562_v30 = vmul.f32 %v9848_v53, %v5279_v49  ;;  %v5453_v21 = vadd.f32 %v5425_v33, %v5381_v3 }
 0x4e2   : > { %v5832_v56 = vadd.f32 %v10041_v37, %v5797_v34  ;;  %v5182_v46 = vmul.f32 %v10235_v47, %v5110_v39  ;;  %v5494_v55 = vmul.f32 %v10264_v18, %v5110_v39  ;;  %v5661_v2 = vadd.f32 %v5633_v15, %v5589_v61 }
 0x4e3   : > { %v5798_v14 = vadd.f32 %v5770_v43, %v5729_v6  ;;  %v5702_v60 = vmul.f32 %v9874_v7, %v5110_v39  ;;  %v5382_v17 = vadd.f32 %v5354_v58, %v5209_v19  ;;  %v5590_v52 = vadd.f32 %v5562_v30, %v5521_v32  ;;  %v10286_v19 = vld [vmem:[%s10819_s8 + $0x5] ss:$0 sm:$0xff] }
 0x4e4   : > { %v5114_v53 = vpop.permute.xlu1 %5113  ;;  %v4923_v22 = vpop.permute.xlu0 %4922  ;;  %v5860_v0 = vmax.f32 %v5832_v56, 0.0  ;;  %v5210_v62 = vadd.f32 %v5182_v46, %v5009_v26  ;;  %v5522_v24 = vadd.f32 %v5494_v55, %v5453_v21 }
 0x4e5   : > { %v5833_v31 = vadd.f32 %v10041_v37, %v5798_v14  ;;  %v5183_v48 = vmul.f32 %v10235_v47, %v5114_v53  ;;  %v5010_v35 = vmul.f32 %v10242_v40, %v4923_v22  ;;  %v5426_v27 = vmul.f32 %v10276_v45, %v4923_v22 }
 0x4e6   : > { %v5495_v51 = vmul.f32 %v10264_v18, %v5114_v53  ;;  %v5634_v33 = vmul.f32 %v9859_v59, %v4923_v22  ;;  %v5730_v61 = vadd.f32 %v5702_v60, %v5661_v2  ;;  %v5703_v49 = vmul.f32 %v9874_v7, %v5114_v53 }
 0x4e7   : > { %v5861_v3 = vmax.f32 %v5833_v31, 0.0  ;;  %v5454_v34 = vadd.f32 %v5426_v27, %v5382_v17  ;;  %v5211_v6 = vadd.f32 %v5183_v48, %v5010_v35  ;;  %v5896_v59 = vsel %vm551_vm0, %v5860_v0, 0.0 }
 0x4e8   : > { %v5287_v58 = vpop.permute.xlu1 %5286  ;;  %v5662_v43 = vadd.f32 %v5634_v33, %v5590_v52  ;;  %v5895_v2 = vadd.f32 %v5894_v8, %v5893_v25  ;;  %v5872_v35 = vmax.f32 %v10207_v50, 0.0 }
 0x4e9   : > { %v5356_v39 = vmul.f32 %v10253_v42, %v5287_v58  ;;  %v5564_v15 = vmul.f32 %v10286_v19, %v5287_v58  ;;  %v5283_v30 = vpop.permute.xlu0 %5282  ;;  %v5523_v21 = vadd.f32 %v5495_v51, %v5454_v34  ;;  %v5772_v56 = vmul.f32 %v9898_v4, %v5287_v58 }
 0x4ea   : > { %v5355_v7 = vmul.f32 %v10253_v42, %v5283_v30  ;;  %v5731_v46 = vadd.f32 %v5703_v49, %v5662_v43  ;;  %v5563_v55 = vmul.f32 %v10286_v19, %v5283_v30  ;;  %v5771_v32 = vmul.f32 %v9898_v4, %v5283_v30 }
 0x4eb   : > { %v5384_v14 = vadd.f32 %v5356_v39, %v5211_v6  ;;  %v5898_v60 = vsel %vm5881_vm12, %v5861_v3, 0.0  ;;  %v5592_v53 = vadd.f32 %v5564_v15, %v5523_v21  ;;  %v5897_v27 = vadd.f32 %v5896_v59, %v5895_v2 }
 0x4ec   : > { %v5383_v26 = vadd.f32 %v5355_v7, %v5210_v62  ;;  %v5327_v17 = vpop.permute.xlu1 %5326  ;;  %v5800_v48 = vadd.f32 %v5772_v56, %v5731_v46  ;;  %v5591_v22 = vadd.f32 %v5563_v55, %v5522_v24  ;;  %v5799_v0 = vadd.f32 %v5771_v32, %v5730_v61  ;;  %v10968_v46 = vld [vmem:[#allocation52_spill] sm:$0xff] }
 0x4ed   : > { %v5456_v31 = vadd.f32 %v10022_v10, %v5384_v14  ;;  %v5158_v52 = vpop.permute.xlu0 %5157  ;;  %v5664_v51 = vadd.f32 %v10026_v13, %v5592_v53  ;;  %v5899_v10 = vadd.f32 %v5898_v60, %v5897_v27  ;;  %v5366_v50 = vmul.f32 %v10253_v42, %v5327_v17  ;;  %v10969_v32 = vld [vmem:[#allocation48_spill] sm:$0xff]  ;;  %v10973_v27 = vld [vmem:[#allocation50_spill] sm:$0xff] }
 0x4ee   : > { %v5455_v33 = vadd.f32 %v10010_v36, %v5383_v26  ;;  %v5835_v8 = vadd.f32 %v10041_v37, %v5800_v48  ;;  %v5663_v62 = vadd.f32 %v10015_v28, %v5591_v22  ;;  %v5834_v3 = vadd.f32 %v10041_v37, %v5799_v0  ;;  %v10972_v48 = vld [vmem:[#allocation54_spill] sm:$0xff] }
 0x4ef   : > { %v5525_v25 = vadd.f32 %v10032_v5, %v5456_v31  ;;  %v5733_v24 = vadd.f32 %v10036_v38, %v5664_v51  ;;  %v5574_v5 = vmul.f32 %v10286_v19, %v5327_v17  ;;  %v5782_v38 = vmul.f32 %v9898_v4, %v5327_v17  ;;  %v10967_v4 = vld [vmem:[#allocation53_spill] sm:$0xff] }
 0x4f0   : > { %v5524_v61 = vadd.f32 %v10002_v57, %v5455_v33  ;;  %v5162_v49 = vpop.permute.xlu1 %5161  ;;  %v5732_v36 = vadd.f32 %v10006_v41, %v5663_v62  ;;  %v5862_v34 = vmax.f32 %v5834_v3, 0.0  ;;  %v5863_v6 = vmax.f32 %v5835_v8, 0.0  ;;  %v10971_v17 = vld [vmem:[#allocation49_spill] sm:$0xff] }
 0x4f1   : > { %v5594_v13 = vadd.f32 %v10074_v16, %v5525_v25  ;;  %v4989_v58 = vpop.permute.xlu0 %4988  ;;  %v5802_v28 = vadd.f32 %v10082_v11, %v5733_v24  ;;  %v5194_v16 = vmul.f32 %v10235_v47, %v5158_v52  ;;  %v5810_v11 = vadd.f32 %v5782_v38, %v9958_v23  ;;  %v10970_v23 = vld [vmem:[#allocation55_spill] sm:$0xff]  ;;  %v10342_v3 = vld [vmem:[%s10819_s8 + $0x7] ss:$0 sm:$0xff] }
 0x4f2   : > { %v5593_v43 = vadd.f32 %v10046_v54, %v5524_v61  ;;  %v5801_v39 = vadd.f32 %v10050_v9, %v5732_v36  ;;  %v5900_v15 = vsel %vm551_vm0, %v5862_v34, 0.0  ;;  %v10320_v54 = vsel %vm551_vm0, %v5872_v35, 0.0 }
 0x4f3   : > { %v5666_v57 = vadd.f32 %v10086_v44, %v5594_v13  ;;  %v5837_v41 = vadd.f32 %v10041_v37, %v5802_v28  ;;  %v5901_v59 = vadd.f32 %v5900_v15, %v5899_v10  ;;  %v5506_v9 = vmul.f32 %v10264_v18, %v5158_v52  ;;  %v10354_v28 = vld [vmem:[%s10819_s8 + $0x6] ss:$0 sm:$0xff] }
 0x4f4   : > { %v5665_v30 = vadd.f32 %v10063_v12, %v5593_v43  ;;  %v5335_v21 = vpop.permute.xlu1 %5334  ;;  %v5836_v44 = vadd.f32 %v10041_v37, %v5801_v39  ;;  %v5394_v2 = vadd.f32 %v5366_v50, %v10969_v32  ;;  %v10328_v12 = vadd.f32 %v10041_v37, %v5810_v11 }
 0x4f5   : > { %v5735_v56 = vadd.f32 %v10967_v4, %v5666_v57  ;;  %v5331_v7 = vpop.permute.xlu0 %5330  ;;  %v5865_v14 = vmax.f32 %v5837_v41, 0.0  ;;  %v5902_v53 = vsel %vm5881_vm12, %v5863_v6, 0.0  ;;  %v5602_v31 = vadd.f32 %v5574_v5, %v10971_v17 }
 0x4f6   : > { %v5734_v55 = vadd.f32 %v10968_v46, %v5665_v30  ;;  %v5864_v26 = vmax.f32 %v5836_v44, 0.0  ;;  %v5903_v0 = vadd.f32 %v5902_v53, %v5901_v59  ;;  %v5222_v35 = vadd.f32 %v5194_v16, %v10184_v63  ;;  %v10974_v46 = vld [vmem:[#allocation51_spill] sm:$0xff] }
 0x4f7   : > { %v5804_v60 = vadd.f32 %v10970_v23, %v5735_v56  ;;  %v5534_v51 = vadd.f32 %v5506_v9, %v10973_v27  ;;  %v5906_v8 = vsel %vm5881_vm12, %v5865_v14, 0.0  ;;  %v5714_v10 = vmul.f32 %v10342_v3, %v5158_v52 }
 0x4f8   : > { %v5803_v22 = vadd.f32 %v10972_v48, %v5734_v55  ;;  %v5407_v33 = vpop.permute.xlu1 %5406  ;;  %v5904_v62 = vsel %vm551_vm0, %v5864_v26, 0.0  ;;  %v5873_v50 = vmax.f32 %v10328_v12, 0.0  ;;  %v5195_v13 = vmul.f32 %v10235_v47, %v5162_v49 }
 0x4f9   : > { %v5839_v25 = vadd.f32 %v10041_v37, %v5804_v60  ;;  %v5403_v24 = vpop.permute.xlu0 %5402  ;;  %v5905_v63 = vadd.f32 %v5904_v62, %v5903_v0  ;;  %v5507_v36 = vmul.f32 %v10264_v18, %v5162_v49  ;;  %v5022_v34 = vmul.f32 %v10242_v40, %v4989_v58 }
 0x4fa   : > { %v5838_v61 = vadd.f32 %v10041_v37, %v5803_v22  ;;  %v5438_v5 = vmul.f32 %v10276_v45, %v4989_v58  ;;  %v5646_v52 = vmul.f32 %v10354_v28, %v4989_v58  ;;  %v5715_v57 = vmul.f32 %v10342_v3, %v5162_v49  ;;  %v10364_v58 = vld [vmem:[%s10819_s8 + $0x8] ss:$0 sm:$0xff] }
 0x4fb   : > { %v5867_v6 = vmax.f32 %v5839_v25, 0.0  ;;  %v5907_v38 = vadd.f32 %v5906_v8, %v5905_v63  ;;  %v5368_v16 = vmul.f32 %v10253_v42, %v5335_v21  ;;  %v5576_v40 = vmul.f32 %v10286_v19, %v5335_v21 }
 0x4fc   : > { %v5866_v43 = vmax.f32 %v5838_v61, 0.0  ;;  %v5476_v39 = vpop.permute.xlu1 %5475  ;;  %v5466_v47 = vadd.f32 %v5438_v5, %v5394_v2  ;;  %v5674_v15 = vadd.f32 %v5646_v52, %v5602_v31  ;;  %v5223_v59 = vadd.f32 %v5195_v13, %v5022_v34  ;;  %v10975_v5 = vld [vmem:[#allocation56_spill] sm:$0xff] }
 0x4fd   : > { %v5472_v41 = vpop.permute.xlu0 %5471  ;;  %v5784_v11 = vmul.f32 %v10364_v58, %v5335_v21  ;;  %v5367_v49 = vmul.f32 %v10253_v42, %v5331_v7  ;;  %v5575_v9 = vmul.f32 %v10286_v19, %v5331_v7  ;;  %v5910_v14 = vsel %vm5881_vm12, %v5867_v6, 0.0 }
 0x4fe   : > { %v5908_v30 = vsel %vm551_vm0, %v5866_v43, 0.0  ;;  %v5535_v56 = vadd.f32 %v5507_v36, %v5466_v47  ;;  %v5743_v44 = vadd.f32 %v5715_v57, %v5674_v15  ;;  %v5742_v55 = vadd.f32 %v5714_v10, %v10974_v46 }
 0x4ff   : > { %v5909_v4 = vadd.f32 %v5908_v30, %v5907_v38  ;;  %v5783_v32 = vmul.f32 %v10364_v58, %v5331_v7  ;;  %v5440_v2 = vmul.f32 %v10276_v45, %v5407_v33  ;;  %v5396_v53 = vadd.f32 %v5368_v16, %v5223_v59 }
 0x500   : > { %v5545_v23 = vpop.permute.xlu1 %5544  ;;  %v5812_v26 = vadd.f32 %v5784_v11, %v5743_v44  ;;  %v5648_v21 = vmul.f32 %v10354_v28, %v5407_v33  ;;  %v5395_v17 = vadd.f32 %v5367_v49, %v5222_v35  ;;  %v5439_v48 = vmul.f32 %v10276_v45, %v5403_v24 }
 0x501   : > { %v5911_v60 = vadd.f32 %v5910_v14, %v5909_v4  ;;  %v5541_v42 = vpop.permute.xlu0 %5540  ;;  %v5811_v31 = vadd.f32 %v5783_v32, %v5742_v55  ;;  %v5647_v22 = vmul.f32 %v10354_v28, %v5403_v24  ;;  %v5604_v27 = vadd.f32 %v5576_v40, %v5535_v56 }
 0x502   : > { %v5603_v25 = vadd.f32 %v5575_v9, %v5534_v51  ;;  %v5509_v7 = vmul.f32 %v10264_v18, %v5476_v39  ;;  %v5847_v8 = vadd.f32 %v10041_v37, %v5812_v26  ;;  %v5468_v10 = vadd.f32 %v5440_v2, %v5396_v53 }
 0x503   : > { %v5913_v0 = vadd.f32 %v10119_v29, %v5911_v60  ;;  %v5846_v62 = vadd.f32 %v10041_v37, %v5811_v31  ;;  %v5717_v33 = vmul.f32 %v10342_v3, %v5476_v39  ;;  %v5676_v63 = vadd.f32 %v5648_v21, %v5604_v27 }
 0x504   : > { %v5617_v61 = vpop.permute.xlu1 %5616  ;;  %v5467_v45 = vadd.f32 %v5439_v48, %v5395_v17  ;;  %v5508_v24 = vmul.f32 %v10264_v18, %v5472_v41  ;;  %v5675_v29 = vadd.f32 %v5647_v22, %v5603_v25  ;;  %v5537_v36 = vadd.f32 %v5509_v7, %v5468_v10 }
 0x505   : > { %v5915_v35 = vadd.f32 %v10138_v1, %v5913_v0  ;;  %v5613_v13 = vpop.permute.xlu0 %5612  ;;  %v5716_v51 = vmul.f32 %v10342_v3, %v5472_v41  ;;  %v5578_v34 = vmul.f32 %v10286_v19, %v5545_v23  ;;  %v5874_v6 = vmax.f32 %v5846_v62, 0.0 }
 0x506   : > { %v5745_v43 = vadd.f32 %v5717_v33, %v5676_v63  ;;  %v5786_v38 = vmul.f32 %v10364_v58, %v5545_v23  ;;  %v5536_v57 = vadd.f32 %v5508_v24, %v5467_v45  ;;  %v5577_v47 = vmul.f32 %v10286_v19, %v5541_v42 }
 0x507   : > { %v5917_v52 = vadd.f32 %v10975_v5, %v5915_v35  ;;  %v5744_v39 = vadd.f32 %v5716_v51, %v5675_v29  ;;  %v5606_v1 = vadd.f32 %v5578_v34, %v5537_v36  ;;  %v5785_v40 = vmul.f32 %v10364_v58, %v5541_v42  ;;  %v7529_v51 = vpop.f32.mrf.mxu0 }
 0x508   : > { %v5686_v15 = vpop.permute.xlu1 %5685  ;;  %v5814_v16 = vadd.f32 %v5786_v38, %v5745_v43  ;;  %v5650_v41 = vmul.f32 %v10354_v28, %v5617_v61  ;;  %v5605_v59 = vadd.f32 %v5577_v47, %v5536_v57  ;;  %v5649_v11 = vmul.f32 %v10354_v28, %v5613_v13 }
 0x509   : > { %v5919_v18 = vadd.f32 %v10203_v20, %v5917_v52  ;;  %v5682_v30 = vpop.permute.xlu0 %5681  ;;  %v5719_v49 = vmul.f32 %v10342_v3, %v5686_v15  ;;  %v5922_v19 = vsel %vm5881_vm12, %v5873_v50, 0.0  ;;  %v5813_v20 = vadd.f32 %v5785_v40, %v5744_v39  ;;  %v4231_v34 = vpop.f32.mrf.mxu0 }
 0x50a   : > { %v5718_v4 = vmul.f32 %v10342_v3, %v5682_v30  ;;  %v5875_v44 = vmax.f32 %v5847_v8, 0.0  ;;  %v5849_v9 = vadd.f32 %v10041_v37, %v5814_v16  ;;  %v5678_v14 = vadd.f32 %v5650_v41, %v5606_v1 }
 0x50b   : > { %v5921_v56 = vadd.f32 %v10320_v54, %v5919_v18  ;;  %v5677_v46 = vadd.f32 %v5649_v11, %v5605_v59  ;;  %v5924_v28 = vsel %vm551_vm0, %v5874_v6, 0.0  ;;  %v5848_v2 = vadd.f32 %v10041_v37, %v5813_v20  ;;  %v7532_v5 = vpop.f32.mrf.mxu0 }
 0x50c   : > { %v5755_v55 = vpop.permute.xlu1 %5754  ;;  %v5747_v3 = vadd.f32 %v5719_v49, %v5678_v14  ;;  %v5926_v26 = vsel %vm5881_vm12, %v5875_v44, 0.0  ;;  %v5877_v21 = vmax.f32 %v5849_v9, 0.0 }
 0x50d   : > { %v5923_v32 = vadd.f32 %v5922_v19, %v5921_v56  ;;  %v5751_v23 = vpop.permute.xlu0 %5750  ;;  %v5746_v60 = vadd.f32 %v5718_v4, %v5677_v46  ;;  %v5788_v54 = vmul.f32 %v10364_v58, %v5755_v55  ;;  %v5876_v53 = vmax.f32 %v5848_v2, 0.0  ;;  %v4241_v52 = vpop.f32.mrf.mxu0 }
 0x50e   : > { %v5787_v12 = vmul.f32 %v10364_v58, %v5751_v23  ;;  %v5930_v25 = vsel %vm5881_vm12, %v5877_v21, 0.0  ;;  %v5950_v23 = vld [vmem:[%s10822_s11] sm:$0x1] }
 0x50f   : > { %v5925_v50 = vadd.f32 %v5924_v28, %v5923_v32  ;;  %v5816_v42 = vadd.f32 %v5788_v54, %v5747_v3  ;;  %v5928_v48 = vsel %vm551_vm0, %v5876_v53, 0.0  ;;  %v7535_v6 = vpop.f32.mrf.mxu0 }
 0x510   : > { %v5815_v17 = vadd.f32 %v5787_v12, %v5746_v60 }
 0x511   : > { %v5927_v31 = vadd.f32 %v5926_v26, %v5925_v50  ;;  %v5851_v22 = vadd.f32 %v10041_v37, %v5816_v42  ;;  %v4251_v43 = vpop.f32.mrf.mxu0  ;;  %v6026_v50 = vld [vmem:[%s10824_s13] sm:$0x1] }
 0x512   : > { %v5850_v0 = vadd.f32 %v10041_v37, %v5815_v17  ;;  %v6025_v37 = vld [vmem:[%s10823_s12] sm:$0x7] }
 0x513   : > { %v5929_v27 = vadd.f32 %v5928_v48, %v5927_v31  ;;  %v5879_v7 = vmax.f32 %v5851_v22, 0.0  ;;  %7609 = vmatpush3.msk.msra.mxu1 %vm6031_vm13, %v6025_v37  ;;  %v7538_v38 = vpop.f32.mrf.mxu0  ;;  %v10976_v31 = vld [vmem:[#allocation20_spill] sm:$0xff]  ;;  %v10456_v22 = vld [vmem:[%s10816_s5] ss:$0 sm:$0xff] }
 0x514   : > { %v5878_v8 = vmax.f32 %v5850_v0, 0.0  ;;  %v4391_v48 = vadd.f32 %v7529_v51, %v10976_v31  ;;  %v10977_v0 = vld [vmem:[#allocation21_spill] sm:$0xff] }
 0x515   : > { %v5931_v58 = vadd.f32 %v5930_v25, %v5929_v27  ;;  %v5934_v33 = vsel %vm5881_vm12, %v5879_v7, 0.0  ;;  %v4261_v57 = vpop.f32.mrf.mxu0  ;;  %v4390_v27 = vadd.f32 %v4231_v34, %v10977_v0  ;;  %v10985_v34 = vld [vmem:[#allocation29_spill] sm:$0xff] }
 0x516   : > { %v5932_v62 = vsel %vm551_vm0, %v5878_v8, 0.0  ;;  %v10460_v25 = vadd.f32 %v10456_v22, %v4391_v48  ;;  %v10978_v8 = vld [vmem:[#allocation22_spill] sm:$0xff] }
 0x517   : > { %v5933_v10 = vadd.f32 %v5932_v62, %v5931_v58  ;;  %v7541_v39 = vpop.f32.mrf.mxu0  ;;  %v10463_v7 = vadd.f32 %v10456_v22, %v4390_v27  ;;  %v4393_v58 = vadd.f32 %v7532_v5, %v10978_v8  ;;  %v10979_v62 = vld [vmem:[#allocation23_spill] sm:$0xff] }
 0x518   : > { %v4462_v51 = vmax.f32 %v10460_v25, 0.0 }
 0x519   : > { %v5935_v61 = vadd.f32 %v5934_v33, %v5933_v10  ;;  %v4271_v1 = vpop.f32.mrf.mxu0  ;;  %v4392_v10 = vadd.f32 %v4241_v52, %v10979_v62  ;;  %v10980_v33 = vld [vmem:[#allocation24_spill] sm:$0xff] }
 0x51b   : > { %v5936_v35 = vrot.slane %v5935_v61, 4  ;;  %v7544_v47 = vpop.f32.mrf.mxu0 }
 0x51d   : > { %v5937_v63 = vadd.f32 %v5936_v35, %v5935_v61  ;;  %v4281_v15 = vpop.f32.mrf.mxu0  ;;  %v4395_v61 = vadd.f32 %v7535_v6, %v10980_v33  ;;  %v10981_v35 = vld [vmem:[#allocation25_spill] sm:$0xff] }
 0x51f   : > { %v5938_v45 = vrot.slane %v5937_v63, 2  ;;  %v7547_v18 = vpop.f32.mrf.mxu0 }
 0x521   : > { %v5939_v24 = vadd.f32 %v5938_v45, %v5937_v63  ;;  %v4291_v16 = vpop.f32.mrf.mxu0  ;;  %v4394_v63 = vadd.f32 %v4251_v43, %v10981_v35  ;;  %v10982_v45 = vld [vmem:[#allocation26_spill] sm:$0xff] }
 0x523   : > { %v5940_v13 = vrot.slane %v5939_v24, 1  ;;  %v7550_v40 = vpop.f32.mrf.mxu0 }
 0x525   : > { %v5941_v29 = vadd.f32 %v5940_v13, %v5939_v24  ;;  %v4301_v41 = vpop.f32.mrf.mxu0  ;;  %v4397_v24 = vadd.f32 %v7538_v38, %v10982_v45  ;;  %v10983_v13 = vld [vmem:[#allocation27_spill] sm:$0xff] }
 0x527   : > { %v5943_v36 = vmul.f32 0.0051020407, %v5941_v29  ;;  %v10414_v30 = vpop.f32.mrf.mxu0  ;;  %v4396_v29 = vadd.f32 %v4261_v57, %v10983_v13  ;;  %v4461_v57 = vmax.f32 %v10463_v7, 0.0 }
 0x529   : > { %7606 = vmatmul.mubr.msk.f32.vlgmr.msra.gmra.mxu0 %vm551_vm0, %v5943_v36  ;;  %v10416_v59 = vpop.f32.mrf.mxu0  ;;  %v10984_v36 = vld [vmem:[#allocation28_spill] sm:$0xff] }
 0x52a   : > { %v4399_v37 = vadd.f32 %v7541_v39, %v10984_v36  ;;  %v10482_v39 = vadd.f32 %v10456_v22, %v4393_v58 }
 0x52b   : > { %v10418_v11 = vpop.f32.mrf.mxu0 }
 0x52c   : > { %v4464_v58 = vmax.f32 %v10482_v39, 0.0 }
 0x52d   : > { %v10420_v49 = vpop.f32.mrf.mxu0 }
 0x52f   : > { %v10422_v4 = vpop.f32.mrf.mxu0 }
 0x531   : > { %v10424_v56 = vpop.f32.mrf.mxu0 }
 0x533   : > { %v10426_v19 = vpop.f32.mrf.mxu0 }
 0x535   : > { %v10428_v20 = vpop.f32.mrf.mxu0 }
 0x537   : > { %v10430_v44 = vpop.f32.mrf.mxu0 }
 0x539   : > { %v10432_v9 = vpop.f32.mrf.mxu0 }
 0x53b   : > { %v10434_v14 = vpop.f32.mrf.mxu0 }
 0x53d   : > { %v10436_v46 = vpop.f32.mrf.mxu0 }
 0x53f   : > { %v10438_v55 = vpop.f32.mrf.mxu0 }
 0x541   : > { %v10440_v32 = vpop.f32.mrf.mxu0 }
 0x543   : > { %v10442_v28 = vpop.f32.mrf.mxu0 }
 0x545   : > { %v10444_v2 = vpop.f32.mrf.mxu0 }
 0x5e9   : > { %v6020_v3 = vpop.f32.mrf.mxu0 }
 0x5ea   : > { %v6021_v60 = vadd.f32 %v6020_v3, %v5950_v23  ;;  %v4398_v23 = vadd.f32 %v4271_v1, %v10985_v34  ;;  %v10986_v3 = vld [vmem:[#allocation30_spill] sm:$0xff]  ;;  %v10488_v1 = vadd.f32 %v10456_v22, %v4395_v61 }
 0x5eb   : > { %v7607_v54 = vpop.f32.mrf.mxu0 }
 0x5ec   : > { %v6024_v12 = vmax.f32 %v6021_v60, 0.0  ;;  %v4401_v60 = vadd.f32 %v7544_v47, %v10986_v3  ;;  %v10987_v54 = vld [vmem:[#allocation31_spill] sm:$0xff] }
 0x5ed   : > { %v4400_v5 = vadd.f32 %v4281_v15, %v10987_v54  ;;  %v10491_v15 = vadd.f32 %v10456_v22, %v4394_v63  ;;  %v11008_v3 = vld [vmem:[#allocation47_spill] sm:$0xff] }
 0x5ee   : > { %7611 = vmatmul.mubr.msk.f32.vlgmr.msra.gmra.mxu1 %vm6027_vm14, %v6024_v12  ;;  %v10988_v12 = vld [vmem:[#allocation32_spill] sm:$0xff] }
 0x5ef   : > { %v4403_v52 = vadd.f32 %v7547_v18, %v10988_v12  ;;  %v10494_v18 = vadd.f32 %v10456_v22, %v4397_v24  ;;  %v4465_v33 = vmax.f32 %v10491_v15, 0.0 }
 0x5f1   : > { %v10512_v48 = vadd.f32 %v10456_v22, %v4403_v52  ;;  %v4468_v61 = vmax.f32 %v10494_v18, 0.0  ;;  %v10995_v52 = vld [vmem:[#allocation39_spill] sm:$0xff] }
 0x5f3   : > { %v11010_v15 = vmax.f32 %v10512_v48, 0.0 }
 0x6ae   : > { %v6101_v53 = vpop.f32.mrf.mxu1 }
 0x6af   : > { %v6102_v26 = vadd.f32 %v6101_v53, %v6026_v50  ;;  %v10989_v50 = vld [vmem:[#allocation33_spill] sm:$0xff]  ;;  %v10990_v53 = vld [vmem:[#allocation34_spill] sm:$0xff] }
 0x6b0   : > { %v7612_v21 = vpop.f32.mrf.mxu1  ;;  %v4402_v6 = vadd.f32 %v4291_v16, %v10989_v50  ;;  %v4405_v43 = vadd.f32 %v7550_v40, %v10990_v53  ;;  %v10497_v16 = vadd.f32 %v10456_v22, %v4396_v29  ;;  %v10500_v40 = vadd.f32 %v10456_v22, %v4399_v37  ;;  %v10992_v29 = vld [vmem:[#allocation36_spill] sm:$0xff]  ;;  %v10997_v53 = vld [vmem:[#allocation41_spill] sm:$0xff] }
 0x6b1   : > { %v6105_v42 = vsub.f32 0.0, %v6102_v26  ;;  %v10991_v26 = vld [vmem:[#allocation35_spill] sm:$0xff]  ;;  %v10485_v21 = vadd.f32 %v10456_v22, %v4392_v10  ;;  %v4466_v10 = vmax.f32 %v10488_v1, 0.0  ;;  %v4407_v36 = vadd.f32 %v10414_v30, %v10992_v29 }
 0x6b2   : > { %v4404_v38 = vadd.f32 %v4301_v41, %v10991_v26  ;;  %v10503_v41 = vadd.f32 %v10456_v22, %v4398_v23  ;;  %v10515_v0 = vadd.f32 %v10456_v22, %v4402_v6  ;;  %v10518_v27 = vadd.f32 %v10456_v22, %v4405_v43  ;;  %v10996_v6 = vld [vmem:[#allocation40_spill] sm:$0xff]  ;;  %v10998_v26 = vld [vmem:[#allocation42_spill] sm:$0xff]  ;;  %v11000_v29 = vld [vmem:[#allocation15_spill] sm:$0xff] }
 0x6b3   : > { %v6106_v17 = vmul.f32 1.442695, %v6105_v42  ;;  %v10506_v42 = vadd.f32 %v10456_v22, %v4401_v60  ;;  %v4463_v62 = vmax.f32 %v10485_v21, 0.0  ;;  %v4467_v35 = vmax.f32 %v10497_v16, 0.0  ;;  %v10993_v60 = vld [vmem:[#allocation37_spill] sm:$0xff] }
 0x6b4   : > { %v10521_v8 = vadd.f32 %v10456_v22, %v4404_v38  ;;  %v4470_v63 = vmax.f32 %v10500_v40, 0.0  ;;  %v4469_v45 = vmax.f32 %v10503_v41, 0.0  ;;  %v4406_v54 = vadd.f32 %v10416_v59, %v10993_v60  ;;  %v11001_v60 = vld [vmem:[#allocation18_spill] sm:$0xff] }
 0x6b5   : > { %7674 = vpow2.f32 %v6106_v17  ;;  %v10509_v17 = vadd.f32 %v10456_v22, %v4400_v5  ;;  %v4472_v24 = vmax.f32 %v10506_v42, 0.0  ;;  %v10994_v5 = vld [vmem:[#allocation38_spill] sm:$0xff]  ;;  %v4408_v50 = vadd.f32 %v10420_v49, %v10995_v52  ;;  %v11003_v52 = vld [vmem:[#allocation17_spill] sm:$0xff] }
 0x6b6   : > { %v4409_v12 = vadd.f32 %v10418_v11, %v10994_v5  ;;  %v4411_v30 = vadd.f32 %v10422_v4, %v10996_v6  ;;  %v4410_v43 = vadd.f32 %v10424_v56, %v10997_v53  ;;  %v4413_v38 = vadd.f32 %v10426_v19, %v10998_v26  ;;  %v11002_v5 = vld [vmem:[#allocation16_spill] sm:$0xff]  ;;  %v11004_v6 = vld [vmem:[#allocation19_spill] sm:$0xff]  ;;  %v11006_v26 = vld [vmem:[#allocation45_spill] sm:$0xff] }
 0x6b7   : > { %v4471_v13 = vmax.f32 %v10509_v17, 0.0  ;;  %v4415_v59 = vadd.f32 %v10430_v44, %v11000_v29  ;;  %v4446_v11 = vadd.f32 %v10456_v22, %v4407_v36  ;;  %v4414_v49 = vadd.f32 %v10432_v9, %v11001_v60  ;;  %v11005_v53 = vld [vmem:[#allocation44_spill] sm:$0xff] }
 0x6b8   : > { %v4417_v4 = vadd.f32 %v10434_v14, %v11002_v5  ;;  %v4416_v56 = vadd.f32 %v10436_v46, %v11003_v52  ;;  %v4419_v19 = vadd.f32 %v10438_v55, %v11004_v6  ;;  %v4421_v44 = vadd.f32 %v10442_v28, %v11006_v26 }
 0x6b9   : > { %v4445_v9 = vadd.f32 %v10456_v22, %v4406_v54  ;;  %v4448_v29 = vadd.f32 %v10456_v22, %v4409_v12  ;;  %v4447_v14 = vadd.f32 %v10456_v22, %v4408_v50  ;;  %v4450_v46 = vadd.f32 %v10456_v22, %v4411_v30 }
 0x6ba   : > { %v4449_v60 = vadd.f32 %v10456_v22, %v4410_v43  ;;  %v4452_v55 = vadd.f32 %v10456_v22, %v4413_v38  ;;  %v4454_v5 = vadd.f32 %v10456_v22, %v4415_v59  ;;  %v4478_v28 = vmax.f32 %v4446_v11, 0.0 }
 0x6bb   : > { %v4453_v52 = vadd.f32 %v10456_v22, %v4414_v49  ;;  %v4455_v54 = vadd.f32 %v10456_v22, %v4416_v56  ;;  %v4458_v12 = vadd.f32 %v10456_v22, %v4419_v19  ;;  %v4460_v30 = vadd.f32 %v10456_v22, %v4421_v44 }
 0x6bc   : > { %v4477_v38 = vmax.f32 %v4445_v9, 0.0  ;;  %v4480_v6 = vmax.f32 %v4448_v29, 0.0  ;;  %v4481_v11 = vmax.f32 %v4449_v60, 0.0  ;;  %v4484_v26 = vmax.f32 %v4452_v55, 0.0  ;;  %v7691_v55 = vld [vmem:[%s8005_s21] sm:$0xff] }
 0x6bd   : > { %v4487_v56 = vmax.f32 %v4455_v54, 0.0  ;;  %v4490_v37 = vmax.f32 %v4458_v12, 0.0  ;;  %v4492_v34 = vmax.f32 %v4460_v30, 0.0  ;;  %v11009_v21 = vmax.f32 %v10515_v0, 0.0  ;;  %v7695_v12 = vld [vmem:[%s8005_s21 + $0x20] sm:$0xff] }
 0x6be   : > { %v11011_v18 = vmax.f32 %v10521_v8, 0.0  ;;  %v11012_v41 = vmax.f32 %v10518_v27, 0.0 }
 0x6c2   : > { %v7675_v47 = vpop.eup %7674 }
 0x6c3   : > { %v6108_v31 = vadd.f32 1.0, %v7675_v47  ;;  %v10999_v47 = vld [vmem:[#allocation43_spill] sm:$0xff] }
 0x6c5   : > { %7676 = vrcp.f32 %v6108_v31  ;;  %v4412_v31 = vadd.f32 %v10428_v20, %v10999_v47  ;;  %v4418_v20 = vadd.f32 %v10440_v32, %v11005_v53  ;;  %v11007_v47 = vld [vmem:[#allocation46_spill] sm:$0xff]  ;;  %v4482_v53 = vmax.f32 %v4450_v46, 0.0 }
 0x6c6   : > { %v4420_v36 = vadd.f32 %v10444_v2, %v11007_v47  ;;  %v4456_v2 = vadd.f32 %v10456_v22, %v4417_v4  ;;  %v4486_v47 = vmax.f32 %v4454_v5, 0.0  ;;  %v4485_v4 = vmax.f32 %v4453_v52, 0.0  ;;  %v7692_v5 = vld [vmem:[%s8005_s21 + $0x8] sm:$0xff]  ;;  %v7693_v52 = vld [vmem:[%s8005_s21 + $0x10] sm:$0xff] }
 0x6c7   : > { %v4451_v32 = vadd.f32 %v10456_v22, %v4412_v31  ;;  %v4457_v50 = vadd.f32 %v10456_v22, %v4418_v20  ;;  %v4479_v31 = vmax.f32 %v4447_v14, 0.0 }
 0x6c8   : > { %v4459_v43 = vadd.f32 %v10456_v22, %v4420_v36  ;;  %v4488_v23 = vmax.f32 %v4456_v2, 0.0  ;;  %v7694_v2 = vld [vmem:[%s8005_s21 + $0x18] sm:$0xff] }
 0x6c9   : > { %v4483_v49 = vmax.f32 %v4451_v32, 0.0  ;;  %v4489_v20 = vmax.f32 %v4457_v50, 0.0  ;;  %v7696_v50 = vld [vmem:[%s8005_s21 + $0x28] sm:$0xff] }
 0x6ca   : > { %v4491_v44 = vmax.f32 %v4459_v43, 0.0  ;;  %v7697_v43 = vld [vmem:[%s8005_s21 + $0x30] sm:$0xff] }
 0x6d2   : > { %v7677_v59 = vpop.eup %7676 }
 0x6d3   : > { %v6114_v19 = vrot.slane %v7677_v59, %v11008_v3  ;;  %v7700_v59 = vld [vmem:[%s8005_s21 + $0x48] sm:$0xff] }
 0x6d5   : > { %v6115_v22 = vmul.f32 %v6114_v19, %v4461_v57  ;;  %v6116_v36 = vmul.f32 %v6114_v19, %v4462_v51  ;;  %v6117_v9 = vmul.f32 %v6114_v19, %v4463_v62  ;;  %v6118_v29 = vmul.f32 %v6114_v19, %v4464_v58 }
 0x6d6   : > { %v6119_v14 = vmul.f32 %v6114_v19, %v4465_v33  ;;  %v6120_v3 = vmul.f32 %v6114_v19, %v4466_v10  ;;  %v6121_v46 = vmul.f32 %v6114_v19, %v4467_v35  ;;  %v6122_v7 = vmul.f32 %v6114_v19, %v4468_v61 }
 0x6d7   : > { %v6123_v25 = vmul.f32 %v6114_v19, %v4469_v45  ;;  %v6124_v51 = vmul.f32 %v6114_v19, %v4470_v63  ;;  %v6125_v57 = vmul.f32 %v6114_v19, %v4471_v13  ;;  %v6126_v39 = vmul.f32 %v6114_v19, %v4472_v24 }
 0x6d8   : > { %v6127_v1 = vmul.f32 %v6114_v19, %v11009_v21  ;;  %v6128_v16 = vmul.f32 %v6114_v19, %v11010_v15  ;;  %v6129_v58 = vmul.f32 %v6114_v19, %v11011_v18  ;;  %v6130_v62 = vmul.f32 %v6114_v19, %v11012_v41  ;;  %v7711_v21 = vld [vmem:[%s8005_s21 + $0xa0] sm:$0xff]  ;;  %v7712_v15 = vld [vmem:[%s8005_s21 + $0xa8] sm:$0xff]  ;;  %v7713_v18 = vld [vmem:[%s8005_s21 + $0xb0] sm:$0xff] }
 0x6d9   : > { %v6131_v40 = vmul.f32 %v6114_v19, %v4477_v38  ;;  %v6132_v10 = vmul.f32 %v6114_v19, %v4478_v28  ;;  %v6133_v17 = vmul.f32 %v6114_v19, %v4479_v31  ;;  %v10618_v33 = vmul.f32 %v6114_v19, %v4480_v6  ;;  %v7698_v38 = vld [vmem:[%s8005_s21 + $0x38] sm:$0xff]  ;;  %v7699_v31 = vld [vmem:[%s8005_s21 + $0x40] sm:$0xff] }
 0x6da   : > { %v10620_v42 = vmul.f32 %v6114_v19, %v4481_v11  ;;  %v10622_v0 = vmul.f32 %v6114_v19, %v4482_v53  ;;  %v10624_v48 = vmul.f32 %v6114_v19, %v4483_v49  ;;  %v10626_v8 = vmul.f32 %v6114_v19, %v4484_v26  ;;  %v7701_v26 = vld [vmem:[%s8005_s21 + $0x50] sm:$0xff]  ;;  %v7714_v41 = vld [vmem:[%s8005_s21 + $0xb8] sm:$0xff] }
 0x6db   : > { %v10628_v61 = vmul.f32 %v6114_v19, %v4485_v4  ;;  %v10630_v27 = vmul.f32 %v6114_v19, %v4486_v47  ;;  %v10632_v35 = vmul.f32 %v6114_v19, %v4487_v56  ;;  %v10634_v63 = vmul.f32 %v6114_v19, %v4488_v23  ;;  %v7702_v47 = vld [vmem:[%s8005_s21 + $0x58] sm:$0xff]  ;;  %v7703_v56 = vld [vmem:[%s8005_s21 + $0x60] sm:$0xff] }
 0x6dc   : > { %v10636_v45 = vmul.f32 %v6114_v19, %v4489_v20  ;;  %v10638_v24 = vmul.f32 %v6114_v19, %v4490_v37  ;;  %v10640_v13 = vmul.f32 %v6114_v19, %v4491_v44  ;;  %v10642_v60 = vmul.f32 %v6114_v19, %v4492_v34  ;;  %v7704_v20 = vld [vmem:[%s8005_s21 + $0x68] sm:$0xff] }
 0x6dd   : > { %v6147_v32 = vadd.f32 %v7691_v55, %v6115_v22  ;;  %v6148_v28 = vadd.f32 %v7692_v5, %v6116_v36  ;;  %v6149_v23 = vadd.f32 %v7693_v52, %v6117_v9  ;;  %v6150_v54 = vadd.f32 %v7694_v2, %v6118_v29  ;;  %v7705_v22 = vld [vmem:[%s8005_s21 + $0x70] sm:$0xff]  ;;  %v7706_v9 = vld [vmem:[%s8005_s21 + $0x78] sm:$0xff] }
 0x6de   : > { %v6151_v37 = vadd.f32 %v7695_v12, %v6119_v14  ;;  %v6152_v30 = vadd.f32 %v7696_v50, %v6120_v3  ;;  %v6153_v34 = vadd.f32 %v7697_v43, %v6121_v46  ;;  %v6154_v6 = vadd.f32 %v7698_v38, %v6122_v7  ;;  %v7707_v14 = vld [vmem:[%s8005_s21 + $0x80] sm:$0xff]  ;;  %v7708_v46 = vld [vmem:[%s8005_s21 + $0x88] sm:$0xff]  ;;  %v7721_v55 = vld [vmem:[%s8005_s21 + $0xf0] sm:$0xff] }
 0x6df   : > { %v6155_v53 = vadd.f32 %v7699_v31, %v6123_v25  ;;  %v6156_v11 = vadd.f32 %v7700_v59, %v6124_v51  ;;  %v6157_v49 = vadd.f32 %v7701_v26, %v6125_v57  ;;  %v6158_v4 = vadd.f32 %v7702_v47, %v6126_v39  ;;  %6179 = vst.msk [vmem:[%s10658_s18] sm:$0xff] %vm551_vm0, %v6147_v32  ;;  %v7709_v25 = vld [vmem:[%s8005_s21 + $0x90] sm:$0xff]  ;;  %v7710_v57 = vld [vmem:[%s8005_s21 + $0x98] sm:$0xff] }
 0x6e0   : > { %6180 = vst.msk [vmem:[%s10658_s18 + $0x8] sm:$0xff] %vm551_vm0, %v6148_v28  ;;  %6181 = vst.msk [vmem:[%s10658_s18 + $0x10] sm:$0xff] %vm551_vm0, %v6149_v23  ;;  %v6159_v19 = vadd.f32 %v7703_v56, %v6127_v1  ;;  %v6160_v44 = vadd.f32 %v7704_v20, %v6128_v16  ;;  %v6161_v36 = vadd.f32 %v7705_v22, %v6129_v58  ;;  %v7722_v5 = vld [vmem:[%s8005_s21 + $0xf8] sm:$0xff] }
 0x6e1   : > { %6182 = vst.msk [vmem:[%s10658_s18 + $0x18] sm:$0xff] %vm551_vm0, %v6150_v54  ;;  %v6162_v29 = vadd.f32 %v7706_v9, %v6130_v62  ;;  %6183 = vst.msk [vmem:[%s10658_s18 + $0x20] sm:$0xff] %vm551_vm0, %v6151_v37  ;;  %v6163_v3 = vadd.f32 %v7707_v14, %v6131_v40  ;;  %v6164_v7 = vadd.f32 %v7708_v46, %v6132_v10  ;;  %v7715_v40 = vld [vmem:[%s8005_s21 + $0xc0] sm:$0xff] }
 0x6e2   : > { %6184 = vst.msk [vmem:[%s10658_s18 + $0x28] sm:$0xff] %vm551_vm0, %v6152_v30  ;;  %6185 = vst.msk [vmem:[%s10658_s18 + $0x30] sm:$0xff] %vm551_vm0, %v6153_v34  ;;  %v6165_v51 = vadd.f32 %v7709_v25, %v6133_v17  ;;  %v6166_v39 = vadd.f32 %v7710_v57, %v10618_v33  ;;  %v6167_v1 = vadd.f32 %v7711_v21, %v10620_v42  ;;  %v7716_v17 = vld [vmem:[%s8005_s21 + $0xc8] sm:$0xff]  ;;  %v7717_v42 = vld [vmem:[%s8005_s21 + $0xd0] sm:$0xff] }
 0x6e3   : > { %6186 = vst.msk [vmem:[%s10658_s18 + $0x38] sm:$0xff] %vm551_vm0, %v6154_v6  ;;  %6187 = vst.msk [vmem:[%s10658_s18 + $0x40] sm:$0xff] %vm551_vm0, %v6155_v53  ;;  %v6168_v16 = vadd.f32 %v7712_v15, %v10622_v0  ;;  %v6169_v58 = vadd.f32 %v7713_v18, %v10624_v48  ;;  %v6170_v62 = vadd.f32 %v7714_v41, %v10626_v8  ;;  %v7718_v48 = vld [vmem:[%s8005_s21 + $0xd8] sm:$0xff] }
 0x6e4   : > { %6188 = vst.msk [vmem:[%s10658_s18 + $0x48] sm:$0xff] %vm551_vm0, %v6156_v11  ;;  %6189 = vst.msk [vmem:[%s10658_s18 + $0x50] sm:$0xff] %vm551_vm0, %v6157_v49  ;;  %v6171_v10 = vadd.f32 %v7715_v40, %v10628_v61  ;;  %v6172_v33 = vadd.f32 %v7716_v17, %v10630_v27  ;;  %v6173_v0 = vadd.f32 %v7717_v42, %v10632_v35  ;;  %v7719_v61 = vld [vmem:[%s8005_s21 + $0xe0] sm:$0xff]  ;;  %v7720_v35 = vld [vmem:[%s8005_s21 + $0xe8] sm:$0xff]  ;;  %s6212_s21 = scalar_lea.sflag [#allocation5], %s7999_s14 }
 0x6e5   : > { %6190 = vst.msk [vmem:[%s10658_s18 + $0x58] sm:$0xff] %vm551_vm0, %v6158_v4  ;;  %6191 = vst.msk [vmem:[%s10658_s18 + $0x60] sm:$0xff] %vm551_vm0, %v6159_v19  ;;  %v6174_v8 = vadd.f32 %v7718_v48, %v10634_v63  ;;  %v6175_v27 = vadd.f32 %v7719_v61, %v10636_v45  ;;  %v6176_v63 = vadd.f32 %v7720_v35, %v10638_v24 }
 0x6e6   : > { %6192 = vst.msk [vmem:[%s10658_s18 + $0x68] sm:$0xff] %vm551_vm0, %v6160_v44  ;;  %6193 = vst.msk [vmem:[%s10658_s18 + $0x70] sm:$0xff] %vm551_vm0, %v6161_v36  ;;  %v6177_v32 = vadd.f32 %v7721_v55, %v10640_v13  ;;  %v6178_v28 = vadd.f32 %v7722_v5, %v10642_v60 }
 0x6e7   : > { %6194 = vst.msk [vmem:[%s10658_s18 + $0x78] sm:$0xff] %vm551_vm0, %v6162_v29  ;;  %6195 = vst.msk [vmem:[%s10658_s18 + $0x80] sm:$0xff] %vm551_vm0, %v6163_v3 }
 0x6e8   : > { %6196 = vst.msk [vmem:[%s10658_s18 + $0x88] sm:$0xff] %vm551_vm0, %v6164_v7  ;;  %6197 = vst.msk [vmem:[%s10658_s18 + $0x90] sm:$0xff] %vm551_vm0, %v6165_v51 }
 0x6e9   : > { %6198 = vst.msk [vmem:[%s10658_s18 + $0x98] sm:$0xff] %vm551_vm0, %v6166_v39  ;;  %6199 = vst.msk [vmem:[%s10658_s18 + $0xa0] sm:$0xff] %vm551_vm0, %v6167_v1 }
 0x6ea   : > { %6200 = vst.msk [vmem:[%s10658_s18 + $0xa8] sm:$0xff] %vm551_vm0, %v6168_v16  ;;  %6201 = vst.msk [vmem:[%s10658_s18 + $0xb0] sm:$0xff] %vm551_vm0, %v6169_v58 }
 0x6eb   : > { %6202 = vst.msk [vmem:[%s10658_s18 + $0xb8] sm:$0xff] %vm551_vm0, %v6170_v62  ;;  %6203 = vst.msk [vmem:[%s10658_s18 + $0xc0] sm:$0xff] %vm551_vm0, %v6171_v10 }
 0x6ec   : > { %6204 = vst.msk [vmem:[%s10658_s18 + $0xc8] sm:$0xff] %vm551_vm0, %v6172_v33  ;;  %6205 = vst.msk [vmem:[%s10658_s18 + $0xd0] sm:$0xff] %vm551_vm0, %v6173_v0 }
 0x6ed   : > { %6206 = vst.msk [vmem:[%s10658_s18 + $0xd8] sm:$0xff] %vm551_vm0, %v6174_v8  ;;  %6207 = vst.msk [vmem:[%s10658_s18 + $0xe0] sm:$0xff] %vm551_vm0, %v6175_v27 }
 0x6ee   : > { %6208 = vst.msk [vmem:[%s10658_s18 + $0xe8] sm:$0xff] %vm551_vm0, %v6176_v63  ;;  %6209 = vst.msk [vmem:[%s10658_s18 + $0xf0] sm:$0xff] %vm551_vm0, %v6177_v32 }
 0x6ef   : > { %6210 = vst.msk [vmem:[%s10658_s18 + $0xf8] sm:$0xff] %vm551_vm0, %v6178_v28 }
 0x6f0   : > { %7764 = shalt.err (!%p7761_p0)
}
 0x6f1   : > { %s7765_s27 = scalar_lea.hbm %s10732_s29, 4096  ;;  %s7769_s26 = scalar_lea.hbm %s11013_s23, 8192 }
 0x6f2   : > { %p7766_p2 = scmp.ne.s32.totalorder %s10732_s29, %s7765_s27  ;;  %p7770_p3 = scmp.lt.s32.totalorder %s10732_s29, %s11013_s23 }
 0x6f3   : > { %p7771_p6 = scmp.lt.s32.totalorder %s7769_s26, %s7765_s27 }
 0x6f4   : > { %p7767_p9 = pnand %p7766_p2, %p11015_p13 }
 0x6f5   : > { %p7772_p11 = por %p7771_p6, %p7770_p3 }
 0x6f6   : > { %p7768_p1 = pneg %p7767_p9 }
 0x6f8   : > { %p7773_p12 = pnand %p7772_p11, %p7768_p1 }
 0x6fa   : > { %7776 = shalt.err (!%p7773_p12)
}
 0x6fb   : > { %s7825_s15 = smov 128   ;;  %s7826_s25 = smov 8  }
 0x6fc   : > { %7616 = dma.vmem_to_hbm [thread:$0]  (%p11015_p13), %s10736_s22, 4096, %s10732_s29, %s6212_s21, %s7825_s15, %s7825_s15, %s7826_s25  }
 0x6fd PF: > { %s11016_s24 = sld [smem:[#allocation9_spill]]  ;;  %p11019_p5 = scmp.ge.s32.totalorder %s7815_s16, 2 }
 0x6fe   : > { %s11017_s18 = sld [smem:[#allocation14_spill]] }
 0x703   : > { %s6240_s20 = sand.u32 1, %s11016_s24  }
 0x704   : > { %p11018_p4 = scmp.ne.s32.totalorder %s11017_s18, 0  ;;  %s6241_s27 = scalar_lea.sflag [#allocation5], %s6240_s20 }
 0x706   : > { %p7623_p7 = pnand %p11019_p5, %p11018_p4 }
 0x708   : > { %p7624_p8 = pneg %p7623_p7 }
 0x70a   : > { %7798 = dma.done.wait (%p7624_p8), %s6241_s27, 4096  }
 0x70b   : > { %7800 = vsyncadd (%p7624_p8), %s6241_s27, 4294963200  ;;  %s11020_s16 = sld [smem:[#allocation11_spill]]  ;;  %s11023_s29 = smov %s7807_s30 }
 0x70c   : > { %s11021_s26 = sld [smem:[#allocation10_spill]] }
 0x70d   : > { %s11022_s15 = sld [smem:[#allocation12_spill]] }
 0x711   : > { %p27_p10 = scmp.ge.s32.totalorder %s11020_s16, 4  }
 0x712   : > { %s11024_s30 = smov %s11021_s26 }
 0x713   :  { %29 = sbr.rel (!%p27_p10) target bundleno = 7 (0x7), region = 134 }
 0x718   :  { %6246 = vsyncpa [#allocation4], 1 }
 0x719   :  { %6248 = vsyncpa [#allocation4 + $0x1], 1 }
 0x71a   :  { %6249 = vsyncpa [#allocation5], 1 }
 0x71b   :  { %6251 = vsyncpa [#allocation5 + $0x1], 1 }

</bundles_post_ra>
